<compile_context>
chip_gen: v7x
topology: tpu7x:2x2x1
jax: 0.10.0
libtpu: 0.0.40
codegen_flags: <defaults>
</compile_context>

<pallas_src>
import functools

import jax
import jax.numpy as jnp
from jax.experimental import pallas as pl
from jax.experimental.pallas import tpu as pltpu


# ----------------------------------------------------------------------------
# Input staging shared by all 3x3 convs: zero-pad by 1, phase-decompose for
# stride 2, flatten spatial into the lane axis.
#   returns xf : (B, s*s, Cin, L) bf16  and geometry (tap offsets, out dims).
# ----------------------------------------------------------------------------
def _prep_padded_input(x_nchw, stride):
    B, Cin, H, W = x_nchw.shape
    s = stride
    assert s in (1, 2) and (s == 1 or (H % 2 == 0 and W % 2 == 0))
    xp = jnp.pad(x_nchw.astype(jnp.bfloat16), ((0, 0), (0, 0), (1, 1), (1, 1)))
    Hp, Wp = H + 2, W + 2
    Hs, Ws = Hp // s, Wp // s
    if s == 1:
        ph = xp.reshape(B, 1, Cin, Hp, Wp)
    else:
        # ph[b, ph_h*s+ph_w, c, i, j] = xp[b, c, s*i + ph_h, s*j + ph_w]
        ph = xp.reshape(B, Cin, Hs, s, Ws, s).transpose(0, 3, 5, 1, 2, 4)
        ph = ph.reshape(B, s * s, Cin, Hs, Ws)
    # one extra zero row so flat tap slices never run out of bounds
    ph = jnp.pad(ph, ((0, 0), (0, 0), (0, 0), (0, 1), (0, 0)))
    L = (Hs + 1) * Ws
    xf = ph.reshape(B, s * s, Cin, L)
    Hout = (H + 2 - 3) // s + 1
    Wout = (W + 2 - 3) // s + 1
    # tap (kh, kw) -> (phase index, flat offset into the phase image)
    taps = tuple(((kh % s) * s + (kw % s), (kh // s) * Ws + (kw // s))
                 for kh in range(3) for kw in range(3))
    return xf, dict(L=L, Ws=Ws, Hout=Hout, Wout=Wout, Lout=Hout * Ws, taps=taps)


# ----------------------------------------------------------------------------
# Pallas kernel 1: 3x3 conv for one batch element.
#   x_ref : (1, s*s, Cin, L)   bf16   padded / phase-decomposed flat input
#   w_ref : (9, Cout, Cin)     bf16   one (Cout, Cin) matrix per kernel tap
#   b_ref : (Cout, 1)          f32
#   o_ref : (1, Cout, Lout)    f32    Lout = Hout*Wpad (garbage cols dropped
#                                     by the wrapper reshape/slice)
# ----------------------------------------------------------------------------
def _conv3x3_kernel(x_ref, w_ref, b_ref, o_ref, *, taps, act):
    cout = o_ref.shape[1]
    lout = o_ref.shape[2]
    acc = jnp.zeros((cout, lout), jnp.float32)
    for t, (p, off) in enumerate(taps):
        patch = x_ref[0, p, :, off:off + lout]            # (Cin, Lout), static slice
        acc = acc + jnp.dot(w_ref[t], patch, preferred_element_type=jnp.float32)
    acc = acc + b_ref[...]
    if act == "relu":
        acc = jnp.maximum(acc, 0.0)
    elif act == "tanh":
        acc = jnp.tanh(acc)
    o_ref[0] = acc


def conv2d_3x3(x_nchw, w_taps, b_col, stride, act):
    """3x3 conv, padding=1, stride 1 or 2 (even H, W).  NCHW in / NCHW out."""
    B, Cin, H, W = x_nchw.shape
    Cout = w_taps.shape[1]
    s = stride
    xf, g = _prep_padded_input(x_nchw, s)

    out = pl.pallas_call(
        functools.partial(_conv3x3_kernel, taps=g["taps"], act=act),
        out_shape=jax.ShapeDtypeStruct((B, Cout, g["Lout"]), jnp.float32),
        grid=(B,),
        in_specs=[
            pl.BlockSpec((1, s * s, Cin, g["L"]), lambda b: (b, 0, 0, 0)),
            pl.BlockSpec((9, Cout, Cin), lambda b: (0, 0, 0)),
            pl.BlockSpec((Cout, 1), lambda b: (0, 0)),
        ],
        out_specs=pl.BlockSpec((1, Cout, g["Lout"]), lambda b: (b, 0, 0)),
        compiler_params=pltpu.CompilerParams(dimension_semantics=("parallel",)),
    )(xf, w_taps, b_col)

    # (B, Cout, Hout, Ws) -> drop garbage padded columns -> NCHW
    return out.reshape(B, Cout, g["Hout"], g["Ws"])[:, :, :, :g["Wout"]]


# ----------------------------------------------------------------------------
# Pallas kernel 2: fused decoder tail for one batch element:
#     xr  = res_layer(t) * 2           (doubling folded into wr/br)
#     out = tanh(output_layer(xr))
# The intermediate xr is re-padded *inside VMEM*: wrap-garbage columns are
# masked to zero, then one shifted store into a zeroed scratch yields exactly
# the padded flat layout the second conv needs (left/right/top/bottom pads all
# land on zeros).
#   x_ref  : (1, 1, Cin, L)   bf16   padded flat input t
#   wr_ref : (9, 3, Cin) bf16, br_ref : (3,1) f32   (pre-doubled res_layer)
#   wo_ref : (9, 3, 3)   bf16, bo_ref : (3,1) f32   (output_layer)
#   o_ref  : (1, 3, Lout) f32
#   mid_ref: (3, L) bf16 VMEM scratch (padded intermediate)
# ----------------------------------------------------------------------------
def _res_out_kernel(x_ref, wr_ref, br_ref, wo_ref, bo_ref, o_ref, mid_ref,
                    *, taps1, taps2, lout, ws, wvalid, mid_off):
    cr = wr_ref.shape[1]
    co = wo_ref.shape[1]

    # res_layer (no activation between the two convs in the reference)
    acc = jnp.zeros((cr, lout), jnp.float32)
    for t, (p, off) in enumerate(taps1):
        acc = acc + jnp.dot(wr_ref[t], x_ref[0, p, :, off:off + lout],
                            preferred_element_type=jnp.float32)
    acc = acc + br_ref[...]

    # zero the wrap-around garbage columns so they serve as the zero padding
    col = jax.lax.broadcasted_iota(jnp.int32, (1, lout), 1) % ws
    acc = jnp.where(col < wvalid, acc, 0.0)

    # in-VMEM re-padding: zero scratch, then one shifted static-slice store
    mid_ref[...] = jnp.zeros_like(mid_ref)
    mid_ref[:, mid_off:mid_off + lout] = acc.astype(mid_ref.dtype)

    # output_layer + tanh
    acc2 = jnp.zeros((co, lout), jnp.float32)
    for t, off in enumerate(taps2):
        acc2 = acc2 + jnp.dot(wo_ref[t], mid_ref[:, off:off + lout],
                              preferred_element_type=jnp.float32)
    acc2 = acc2 + bo_ref[...]
    o_ref[0] = jnp.tanh(acc2)


def res_out_fused(t_nchw, pp):
    B, Cin, H, W = t_nchw.shape
    xf, g = _prep_padded_input(t_nchw, 1)
    L, Ws, Hout, Wout, Lout = g["L"], g["Ws"], g["Hout"], g["Wout"], g["Lout"]
    taps2 = tuple(kh * Ws + kw for kh in range(3) for kw in range(3))
    assert L >= Ws + 1 + Lout and L >= (2 * Ws + 2) + Lout

    out = pl.pallas_call(
        functools.partial(_res_out_kernel, taps1=g["taps"], taps2=taps2,
                          lout=Lout, ws=Ws, wvalid=Wout, mid_off=Ws + 1),
        out_shape=jax.ShapeDtypeStruct((B, 3, Lout), jnp.float32),
        grid=(B,),
        in_specs=[
            pl.BlockSpec((1, 1, Cin, L), lambda b: (b, 0, 0, 0)),
            pl.BlockSpec((9, 3, Cin), lambda b: (0, 0, 0)),
            pl.BlockSpec((3, 1), lambda b: (0, 0)),
            pl.BlockSpec((9, 3, 3), lambda b: (0, 0, 0)),
            pl.BlockSpec((3, 1), lambda b: (0, 0)),
        ],
        out_specs=pl.BlockSpec((1, 3, Lout), lambda b: (b, 0, 0)),
        scratch_shapes=[pltpu.VMEM((3, L), jnp.bfloat16)],
        compiler_params=pltpu.CompilerParams(dimension_semantics=("parallel",)),
    )(xf, pp["res_w"], pp["res_b"], pp["out_w"], pp["out_b"])

    return out.reshape(B, 3, Hout, Ws)[:, :, :, :Wout]


# ----------------------------------------------------------------------------
# Pallas kernel 3: multi-head self-attention for one batch element.
#   Fused QKV matmul; per-head attention accumulated directly into the output
#   projection (no concatenation); scale folded into Wq; EUP reciprocal.
# ----------------------------------------------------------------------------
def _mhsa_kernel(x_ref, wqkv_ref, bqkv_ref, wo_ref, bo_ref, o_ref,
                 *, num_heads, head_dim):
    x = x_ref[0]                                                   # (N, C) bf16
    C = num_heads * head_dim
    qkv = jnp.dot(x, wqkv_ref[...],
                  preferred_element_type=jnp.float32) + bqkv_ref[...]   # (N, 3C)
    acc = jnp.zeros((x.shape[0], C), jnp.float32)
    for hh in range(num_heads):
        lo = hh * head_dim
        q = qkv[:, lo:lo + head_dim]               # 1/sqrt(Dh) already folded in
        k = qkv[:, C + lo:C + lo + head_dim]
        v = qkv[:, 2 * C + lo:2 * C + lo + head_dim]
        s = jax.lax.dot_general(q, k, (((1,), (1,)), ((), ())),
                                preferred_element_type=jnp.float32)     # q @ k.T
        s = s - jnp.max(s, axis=-1, keepdims=True)
        e = jnp.exp(s)
        pw = e * pl.reciprocal(jnp.sum(e, axis=-1, keepdims=True), approx=True)
        a = jnp.dot(pw, v, preferred_element_type=jnp.float32)          # (N, Dh)
        acc = acc + jnp.dot(a, wo_ref[hh], preferred_element_type=jnp.float32)
    o_ref[0] = acc + bo_ref[...]


def mhsa(x_seq, pp, num_heads, head_dim):
    B, N, C = x_seq.shape
    return pl.pallas_call(
        functools.partial(_mhsa_kernel, num_heads=num_heads, head_dim=head_dim),
        out_shape=jax.ShapeDtypeStruct((B, N, C), jnp.float32),
        grid=(B,),
        in_specs=[
            pl.BlockSpec((1, N, C), lambda b: (b, 0, 0)),
            pl.BlockSpec((C, 3 * C), lambda b: (0, 0)),
            pl.BlockSpec((1, 3 * C), lambda b: (0, 0)),
            pl.BlockSpec((num_heads, head_dim, C), lambda b: (0, 0, 0)),
            pl.BlockSpec((1, C), lambda b: (0, 0)),
        ],
        out_specs=pl.BlockSpec((1, N, C), lambda b: (b, 0, 0)),
        compiler_params=pltpu.CompilerParams(dimension_semantics=("parallel",)),
    )(x_seq, pp["wqkv"], pp["bqkv"], pp["wo_h"], pp["bo"])


# ----------------------------------------------------------------------------
# Decoder glue: nearest x2 upsample (broadcast + reshape; XLA fuses with the
# neighbouring add / next kernel's input staging — tiny tensors).
# ----------------------------------------------------------------------------
def _upsample2(x):
    B, C, h, w = x.shape
    y = jnp.broadcast_to(x[:, :, :, None, :, None], (B, C, h, 2, w, 2))
    return y.reshape(B, C, 2 * h, 2 * w)


# ----------------------------------------------------------------------------
# Denoiser forward.
# ----------------------------------------------------------------------------
def denoiser_forward(x, pp, num_heads=4):
    x1 = conv2d_3x3(x,  pp["c1_w"], pp["c1_b"], 1, "relu")
    x2 = conv2d_3x3(x1, pp["c2_w"], pp["c2_b"], 2, "relu")
    x3 = conv2d_3x3(x2, pp["c3_w"], pp["c3_b"], 2, "relu")
    x4 = conv2d_3x3(x3, pp["c4_w"], pp["c4_b"], 2, "relu")

    B, C, h, w = x4.shape
    # PyTorch: x4.reshape(B, h*w, -1) on the contiguous NCHW tensor (flat reinterp.)
    x_seq = x4.reshape(B, h * w, C).astype(jnp.bfloat16)
    attn = mhsa(x_seq, pp, num_heads, C // num_heads)
    # PyTorch: .reshape(B, h, w, C).permute(0, 3, 1, 2)
    xb = jnp.transpose(attn.reshape(B, h, w, C), (0, 3, 1, 2))

    # nearest x2 upsample + residual adds (spatial dims are even, so the
    # reference's F.interpolate fallback never triggers).
    # TODO(synk): odd-spatial F.interpolate fallback not implemented (unreachable here).
    t = _upsample2(xb)
    t = _upsample2(t + x3)
    t = _upsample2(t + x2)
    t = t + x1

    # fused: tanh(output_layer(res_layer(t) + res_layer(t))), doubling folded
    # into the pre-scaled res weights.
    return res_out_fused(t, pp)


# ----------------------------------------------------------------------------
# Parameter init (module shapes) + one-time packing into kernel layouts.
# ----------------------------------------------------------------------------
def init_params(key, num_filters):
    C = num_filters
    keys = jax.random.split(key, 12)

    def kaiming_conv(k, cout, cin):
        fan_in = cin * 9
        bound = (6.0 / fan_in) ** 0.5
        return jax.random.uniform(k, (cout, cin, 3, 3), jnp.float32, -bound, bound)

    def xavier_linear(k, c):
        bound = (6.0 / (2.0 * c)) ** 0.5
        return jax.random.uniform(k, (c, c), jnp.float32, -bound, bound)

    z = lambda n: jnp.zeros((n,), jnp.float32)
    return {
        "conv1_w": kaiming_conv(keys[0], C, 48), "conv1_b": z(C),
        "conv2_w": kaiming_conv(keys[1], C, C),  "conv2_b": z(C),
        "conv3_w": kaiming_conv(keys[2], C, C),  "conv3_b": z(C),
        "conv4_w": kaiming_conv(keys[3], C, C),  "conv4_b": z(C),
        # Linear weights stored as (in, out); y = x @ W + b
        "wq": xavier_linear(keys[4], C), "bq": z(C),
        "wk": xavier_linear(keys[5], C), "bk": z(C),
        "wv": xavier_linear(keys[6], C), "bv": z(C),
        "wo": xavier_linear(keys[7], C), "bo": z(C),
        "res_w": kaiming_conv(keys[8], 3, C), "res_b": z(3),
        "out_w": kaiming_conv(keys[9], 3, 3), "out_b": z(3),
    }


def _pack_conv(w_oihw, b, scale=1.0):
    cout, cin = w_oihw.shape[0], w_oihw.shape[1]
    w_taps = (jnp.transpose(w_oihw, (2, 3, 0, 1)).reshape(9, cout, cin)
              * scale).astype(jnp.bfloat16)
    b_col = (b * scale).astype(jnp.float32).reshape(cout, 1)
    return w_taps, b_col


def prepare_params(p, num_heads):
    C = p["wq"].shape[0]
    Dh = C // num_heads
    scale = 1.0 / (Dh ** 0.5)
    packed = {}
    packed["c1_w"], packed["c1_b"] = _pack_conv(p["conv1_w"], p["conv1_b"])
    packed["c2_w"], packed["c2_b"] = _pack_conv(p["conv2_w"], p["conv2_b"])
    packed["c3_w"], packed["c3_b"] = _pack_conv(p["conv3_w"], p["conv3_b"])
    packed["c4_w"], packed["c4_b"] = _pack_conv(p["conv4_w"], p["conv4_b"])
    # fold the `xr + xr` doubling into the res_layer parameters (conv is linear)
    packed["res_w"], packed["res_b"] = _pack_conv(p["res_w"], p["res_b"], scale=2.0)
    packed["out_w"], packed["out_b"] = _pack_conv(p["out_w"], p["out_b"])
    # fused QKV with 1/sqrt(head_dim) folded into the query projection
    packed["wqkv"] = jnp.concatenate(
        [p["wq"] * scale, p["wk"], p["wv"]], axis=1).astype(jnp.bfloat16)
    packed["bqkv"] = jnp.concatenate(
        [p["bq"] * scale, p["bk"], p["bv"]]).reshape(1, 3 * C).astype(jnp.float32)
    # per-head rows of the combine_heads weight (heads accumulate into the output)
    packed["wo_h"] = p["wo"].reshape(num_heads, Dh, C).astype(jnp.float32)
    packed["bo"] = p["bo"].reshape(1, C).astype(jnp.float32)
    return packed


if __name__ == "__main__":
    num_filters = 32            # divisible by num_heads=4
    num_heads = 4
    B, Cin, H, W = 2, 48, 16, 16   # conv1 expects 48 input channels

    key = jax.random.PRNGKey(0)
    kx, kp = jax.random.split(key)
    x = jax.random.normal(kx, (B, Cin, H, W), jnp.float32)
    params = init_params(kp, num_filters)
    packed = prepare_params(params, num_heads)

    fwd = jax.jit(functools.partial(denoiser_forward, num_heads=num_heads))
    out = fwd(x, packed)
    jax.block_until_ready(out)

    assert out.shape == (B, 3, H, W), out.shape
    assert bool(jnp.all(jnp.isfinite(out)))
    print("KERNEL_OK")
</pallas_src>

<mosaic_0001>
module attributes {stable_mosaic.version = 11 : i64} {
  func.func @_conv3x3_kernel(%arg0: i32, %arg1: memref<1x1x48x342xbf16, #tpu.memory_space<vmem>>, %arg2: memref<9x32x48xbf16, #tpu.memory_space<vmem>>, %arg3: memref<32x1xf32, #tpu.memory_space<vmem>>, %arg4: memref<1x32x288xf32, #tpu.memory_space<vmem>>) attributes {dimension_semantics = [#tpu.dimension_semantics<parallel>], iteration_bounds = array<i64: 2>, scalar_prefetch = 0 : i64, scratch_operands = 0 : i64, tpu.core_type = #tpu.core_type<tc>, window_params = [{transform_indices = @transform_0, window_bounds = array<i64: 1, 1, 48, 342>}, {pipeline_mode = #tpu.pipeline_mode<synchronous>, transform_indices = @transform_1, window_bounds = array<i64: 9, 32, 48>}, {pipeline_mode = #tpu.pipeline_mode<synchronous>, transform_indices = @transform_2, window_bounds = array<i64: 32, 1>}, {transform_indices = @transform_3, window_bounds = array<i64: 1, 32, 288>}]} {
    %cst = arith.constant 0.000000e+00 : f32
    %0 = vector.broadcast %cst : f32 to vector<32x288xf32>
    %c0 = arith.constant 0 : index
    %c0_0 = arith.constant 0 : index
    %c0_1 = arith.constant 0 : index
    %c0_2 = arith.constant 0 : index
    %1 = vector.load %arg1[%c0, %c0_0, %c0_1, %c0_2] : memref<1x1x48x342xbf16, #tpu.memory_space<vmem>>, vector<1x1x48x288xbf16>
    %2 = vector.shape_cast %1 : vector<1x1x48x288xbf16> to vector<48x288xbf16>
    %c0_3 = arith.constant 0 : index
    %c0_4 = arith.constant 0 : index
    %c0_5 = arith.constant 0 : index
    %3 = vector.load %arg2[%c0_3, %c0_4, %c0_5] : memref<9x32x48xbf16, #tpu.memory_space<vmem>>, vector<1x32x48xbf16>
    %4 = vector.shape_cast %3 : vector<1x32x48xbf16> to vector<32x48xbf16>
    %cst_6 = arith.constant dense<0.000000e+00> : vector<32x288xf32>
    %5 = tpu.matmul %4, %2, %cst_6 {dimension_numbers = #tpu.dot_dimension_numbers<[1], [0], [0], [1], [0, 0, 1, 1], [], []>} : vector<32x48xbf16>, vector<48x288xbf16>, vector<32x288xf32> -> vector<32x288xf32>
    %6 = arith.addf %0, %5 : vector<32x288xf32>
    %c0_7 = arith.constant 0 : index
    %c0_8 = arith.constant 0 : index
    %c0_9 = arith.constant 0 : index
    %c1 = arith.constant 1 : index
    %7 = vector.load %arg1[%c0_7, %c0_8, %c0_9, %c1] : memref<1x1x48x342xbf16, #tpu.memory_space<vmem>>, vector<1x1x48x288xbf16>
    %8 = vector.shape_cast %7 : vector<1x1x48x288xbf16> to vector<48x288xbf16>
    %c1_10 = arith.constant 1 : index
    %c0_11 = arith.constant 0 : index
    %c0_12 = arith.constant 0 : index
    %9 = vector.load %arg2[%c1_10, %c0_11, %c0_12] : memref<9x32x48xbf16, #tpu.memory_space<vmem>>, vector<1x32x48xbf16>
    %10 = vector.shape_cast %9 : vector<1x32x48xbf16> to vector<32x48xbf16>
    %cst_13 = arith.constant dense<0.000000e+00> : vector<32x288xf32>
    %11 = tpu.matmul %10, %8, %cst_13 {dimension_numbers = #tpu.dot_dimension_numbers<[1], [0], [0], [1], [0, 0, 1, 1], [], []>} : vector<32x48xbf16>, vector<48x288xbf16>, vector<32x288xf32> -> vector<32x288xf32>
    %12 = arith.addf %6, %11 : vector<32x288xf32>
    %c0_14 = arith.constant 0 : index
    %c0_15 = arith.constant 0 : index
    %c0_16 = arith.constant 0 : index
    %c2 = arith.constant 2 : index
    %13 = vector.load %arg1[%c0_14, %c0_15, %c0_16, %c2] : memref<1x1x48x342xbf16, #tpu.memory_space<vmem>>, vector<1x1x48x288xbf16>
    %14 = vector.shape_cast %13 : vector<1x1x48x288xbf16> to vector<48x288xbf16>
    %c2_17 = arith.constant 2 : index
    %c0_18 = arith.constant 0 : index
    %c0_19 = arith.constant 0 : index
    %15 = vector.load %arg2[%c2_17, %c0_18, %c0_19] : memref<9x32x48xbf16, #tpu.memory_space<vmem>>, vector<1x32x48xbf16>
    %16 = vector.shape_cast %15 : vector<1x32x48xbf16> to vector<32x48xbf16>
    %cst_20 = arith.constant dense<0.000000e+00> : vector<32x288xf32>
    %17 = tpu.matmul %16, %14, %cst_20 {dimension_numbers = #tpu.dot_dimension_numbers<[1], [0], [0], [1], [0, 0, 1, 1], [], []>} : vector<32x48xbf16>, vector<48x288xbf16>, vector<32x288xf32> -> vector<32x288xf32>
    %18 = arith.addf %12, %17 : vector<32x288xf32>
    %c0_21 = arith.constant 0 : index
    %c0_22 = arith.constant 0 : index
    %c0_23 = arith.constant 0 : index
    %c18 = arith.constant 18 : index
    %19 = vector.load %arg1[%c0_21, %c0_22, %c0_23, %c18] : memref<1x1x48x342xbf16, #tpu.memory_space<vmem>>, vector<1x1x48x288xbf16>
    %20 = vector.shape_cast %19 : vector<1x1x48x288xbf16> to vector<48x288xbf16>
    %c3 = arith.constant 3 : index
    %c0_24 = arith.constant 0 : index
    %c0_25 = arith.constant 0 : index
    %21 = vector.load %arg2[%c3, %c0_24, %c0_25] : memref<9x32x48xbf16, #tpu.memory_space<vmem>>, vector<1x32x48xbf16>
    %22 = vector.shape_cast %21 : vector<1x32x48xbf16> to vector<32x48xbf16>
    %cst_26 = arith.constant dense<0.000000e+00> : vector<32x288xf32>
    %23 = tpu.matmul %22, %20, %cst_26 {dimension_numbers = #tpu.dot_dimension_numbers<[1], [0], [0], [1], [0, 0, 1, 1], [], []>} : vector<32x48xbf16>, vector<48x288xbf16>, vector<32x288xf32> -> vector<32x288xf32>
    %24 = arith.addf %18, %23 : vector<32x288xf32>
    %c0_27 = arith.constant 0 : index
    %c0_28 = arith.constant 0 : index
    %c0_29 = arith.constant 0 : index
    %c19 = arith.constant 19 : index
    %25 = vector.load %arg1[%c0_27, %c0_28, %c0_29, %c19] : memref<1x1x48x342xbf16, #tpu.memory_space<vmem>>, vector<1x1x48x288xbf16>
    %26 = vector.shape_cast %25 : vector<1x1x48x288xbf16> to vector<48x288xbf16>
    %c4 = arith.constant 4 : index
    %c0_30 = arith.constant 0 : index
    %c0_31 = arith.constant 0 : index
    %27 = vector.load %arg2[%c4, %c0_30, %c0_31] : memref<9x32x48xbf16, #tpu.memory_space<vmem>>, vector<1x32x48xbf16>
    %28 = vector.shape_cast %27 : vector<1x32x48xbf16> to vector<32x48xbf16>
    %cst_32 = arith.constant dense<0.000000e+00> : vector<32x288xf32>
    %29 = tpu.matmul %28, %26, %cst_32 {dimension_numbers = #tpu.dot_dimension_numbers<[1], [0], [0], [1], [0, 0, 1, 1], [], []>} : vector<32x48xbf16>, vector<48x288xbf16>, vector<32x288xf32> -> vector<32x288xf32>
    %30 = arith.addf %24, %29 : vector<32x288xf32>
    %c0_33 = arith.constant 0 : index
    %c0_34 = arith.constant 0 : index
    %c0_35 = arith.constant 0 : index
    %c20 = arith.constant 20 : index
    %31 = vector.load %arg1[%c0_33, %c0_34, %c0_35, %c20] : memref<1x1x48x342xbf16, #tpu.memory_space<vmem>>, vector<1x1x48x288xbf16>
    %32 = vector.shape_cast %31 : vector<1x1x48x288xbf16> to vector<48x288xbf16>
    %c5 = arith.constant 5 : index
    %c0_36 = arith.constant 0 : index
    %c0_37 = arith.constant 0 : index
    %33 = vector.load %arg2[%c5, %c0_36, %c0_37] : memref<9x32x48xbf16, #tpu.memory_space<vmem>>, vector<1x32x48xbf16>
    %34 = vector.shape_cast %33 : vector<1x32x48xbf16> to vector<32x48xbf16>
    %cst_38 = arith.constant dense<0.000000e+00> : vector<32x288xf32>
    %35 = tpu.matmul %34, %32, %cst_38 {dimension_numbers = #tpu.dot_dimension_numbers<[1], [0], [0], [1], [0, 0, 1, 1], [], []>} : vector<32x48xbf16>, vector<48x288xbf16>, vector<32x288xf32> -> vector<32x288xf32>
    %36 = arith.addf %30, %35 : vector<32x288xf32>
    %c0_39 = arith.constant 0 : index
    %c0_40 = arith.constant 0 : index
    %c0_41 = arith.constant 0 : index
    %c36 = arith.constant 36 : index
    %37 = vector.load %arg1[%c0_39, %c0_40, %c0_41, %c36] : memref<1x1x48x342xbf16, #tpu.memory_space<vmem>>, vector<1x1x48x288xbf16>
    %38 = vector.shape_cast %37 : vector<1x1x48x288xbf16> to vector<48x288xbf16>
    %c6 = arith.constant 6 : index
    %c0_42 = arith.constant 0 : index
    %c0_43 = arith.constant 0 : index
    %39 = vector.load %arg2[%c6, %c0_42, %c0_43] : memref<9x32x48xbf16, #tpu.memory_space<vmem>>, vector<1x32x48xbf16>
    %40 = vector.shape_cast %39 : vector<1x32x48xbf16> to vector<32x48xbf16>
    %cst_44 = arith.constant dense<0.000000e+00> : vector<32x288xf32>
    %41 = tpu.matmul %40, %38, %cst_44 {dimension_numbers = #tpu.dot_dimension_numbers<[1], [0], [0], [1], [0, 0, 1, 1], [], []>} : vector<32x48xbf16>, vector<48x288xbf16>, vector<32x288xf32> -> vector<32x288xf32>
    %42 = arith.addf %36, %41 : vector<32x288xf32>
    %c0_45 = arith.constant 0 : index
    %c0_46 = arith.constant 0 : index
    %c0_47 = arith.constant 0 : index
    %c37 = arith.constant 37 : index
    %43 = vector.load %arg1[%c0_45, %c0_46, %c0_47, %c37] : memref<1x1x48x342xbf16, #tpu.memory_space<vmem>>, vector<1x1x48x288xbf16>
    %44 = vector.shape_cast %43 : vector<1x1x48x288xbf16> to vector<48x288xbf16>
    %c7 = arith.constant 7 : index
    %c0_48 = arith.constant 0 : index
    %c0_49 = arith.constant 0 : index
    %45 = vector.load %arg2[%c7, %c0_48, %c0_49] : memref<9x32x48xbf16, #tpu.memory_space<vmem>>, vector<1x32x48xbf16>
    %46 = vector.shape_cast %45 : vector<1x32x48xbf16> to vector<32x48xbf16>
    %cst_50 = arith.constant dense<0.000000e+00> : vector<32x288xf32>
    %47 = tpu.matmul %46, %44, %cst_50 {dimension_numbers = #tpu.dot_dimension_numbers<[1], [0], [0], [1], [0, 0, 1, 1], [], []>} : vector<32x48xbf16>, vector<48x288xbf16>, vector<32x288xf32> -> vector<32x288xf32>
    %48 = arith.addf %42, %47 : vector<32x288xf32>
    %c0_51 = arith.constant 0 : index
    %c0_52 = arith.constant 0 : index
    %c0_53 = arith.constant 0 : index
    %c38 = arith.constant 38 : index
    %49 = vector.load %arg1[%c0_51, %c0_52, %c0_53, %c38] : memref<1x1x48x342xbf16, #tpu.memory_space<vmem>>, vector<1x1x48x288xbf16>
    %50 = vector.shape_cast %49 : vector<1x1x48x288xbf16> to vector<48x288xbf16>
    %c8 = arith.constant 8 : index
    %c0_54 = arith.constant 0 : index
    %c0_55 = arith.constant 0 : index
    %51 = vector.load %arg2[%c8, %c0_54, %c0_55] : memref<9x32x48xbf16, #tpu.memory_space<vmem>>, vector<1x32x48xbf16>
    %52 = vector.shape_cast %51 : vector<1x32x48xbf16> to vector<32x48xbf16>
    %cst_56 = arith.constant dense<0.000000e+00> : vector<32x288xf32>
    %53 = tpu.matmul %52, %50, %cst_56 {dimension_numbers = #tpu.dot_dimension_numbers<[1], [0], [0], [1], [0, 0, 1, 1], [], []>} : vector<32x48xbf16>, vector<48x288xbf16>, vector<32x288xf32> -> vector<32x288xf32>
    %54 = arith.addf %48, %53 : vector<32x288xf32>
    %c0_57 = arith.constant 0 : index
    %c0_58 = arith.constant 0 : index
    %55 = vector.load %arg3[%c0_57, %c0_58] : memref<32x1xf32, #tpu.memory_space<vmem>>, vector<32x1xf32>
    %56 = vector.broadcast %55 : vector<32x1xf32> to vector<32x288xf32>
    %57 = arith.addf %54, %56 : vector<32x288xf32>
    %cst_59 = arith.constant 0.000000e+00 : f32
    %58 = vector.broadcast %cst_59 : f32 to vector<32x288xf32>
    %59 = arith.maximumf %57, %58 : vector<32x288xf32>
    %c0_60 = arith.constant 0 : index
    %c0_61 = arith.constant 0 : index
    %c0_62 = arith.constant 0 : index
    %60 = vector.load %arg4[%c0_60, %c0_61, %c0_62] : memref<1x32x288xf32, #tpu.memory_space<vmem>>, vector<1x32x288xf32>
    %61 = vector.shape_cast %60 : vector<1x32x288xf32> to vector<32x288xf32>
    %62 = vector.shape_cast %59 : vector<32x288xf32> to vector<1x32x288xf32>
    tpu.vector_store %arg4[%c0_60, %c0_61, %c0_62], %62 {strides = array<i32>} : memref<1x32x288xf32, #tpu.memory_space<vmem>>, vector<1x32x288xf32>,
    return
  }
  func.func @transform_0(%arg0: i32) -> (i32, i32, i32, i32) {
    %c0_i32 = arith.constant 0 : i32
    %c0_i32_0 = arith.constant 0 : i32
    %c0_i32_1 = arith.constant 0 : i32
    %c0_i32_2 = arith.constant 0 : i32
    return %arg0, %c0_i32, %c0_i32_0, %c0_i32_1 : i32, i32, i32, i32
  }
  func.func @transform_1(%arg0: i32) -> (i32, i32, i32) {
    %c0_i32 = arith.constant 0 : i32
    %c0_i32_0 = arith.constant 0 : i32
    %c0_i32_1 = arith.constant 0 : i32
    %c0_i32_2 = arith.constant 0 : i32
    return %c0_i32, %c0_i32_0, %c0_i32_1 : i32, i32, i32
  }
  func.func @transform_2(%arg0: i32) -> (i32, i32) {
    %c0_i32 = arith.constant 0 : i32
    %c0_i32_0 = arith.constant 0 : i32
    %c0_i32_1 = arith.constant 0 : i32
    return %c0_i32, %c0_i32_0 : i32, i32
  }
  func.func @transform_3(%arg0: i32) -> (i32, i32, i32) {
    %c0_i32 = arith.constant 0 : i32
    %c0_i32_0 = arith.constant 0 : i32
    %c0_i32_1 = arith.constant 0 : i32
    return %arg0, %c0_i32, %c0_i32_0 : i32, i32, i32
  }
}

module attributes {stable_mosaic.version = 11 : i64} {
  func.func @_conv3x3_kernel(%arg0: i32, %arg1: memref<1x4x32x90xbf16, #tpu.memory_space<vmem>>, %arg2: memref<9x32x32xbf16, #tpu.memory_space<vmem>>, %arg3: memref<32x1xf32, #tpu.memory_space<vmem>>, %arg4: memref<1x32x72xf32, #tpu.memory_space<vmem>>) attributes {dimension_semantics = [#tpu.dimension_semantics<parallel>], iteration_bounds = array<i64: 2>, scalar_prefetch = 0 : i64, scratch_operands = 0 : i64, tpu.core_type = #tpu.core_type<tc>, window_params = [{transform_indices = @transform_0, window_bounds = array<i64: 1, 4, 32, 90>}, {pipeline_mode = #tpu.pipeline_mode<synchronous>, transform_indices = @transform_1, window_bounds = array<i64: 9, 32, 32>}, {pipeline_mode = #tpu.pipeline_mode<synchronous>, transform_indices = @transform_2, window_bounds = array<i64: 32, 1>}, {transform_indices = @transform_3, window_bounds = array<i64: 1, 32, 72>}]} {
    %cst = arith.constant 0.000000e+00 : f32
    %0 = vector.broadcast %cst : f32 to vector<32x72xf32>
    %c0 = arith.constant 0 : index
    %c0_0 = arith.constant 0 : index
    %c0_1 = arith.constant 0 : index
    %c0_2 = arith.constant 0 : index
    %1 = vector.load %arg1[%c0, %c0_0, %c0_1, %c0_2] : memref<1x4x32x90xbf16, #tpu.memory_space<vmem>>, vector<1x1x32x72xbf16>
    %2 = vector.shape_cast %1 : vector<1x1x32x72xbf16> to vector<32x72xbf16>
    %c0_3 = arith.constant 0 : index
    %c0_4 = arith.constant 0 : index
    %c0_5 = arith.constant 0 : index
    %3 = vector.load %arg2[%c0_3, %c0_4, %c0_5] : memref<9x32x32xbf16, #tpu.memory_space<vmem>>, vector<1x32x32xbf16>
    %4 = vector.shape_cast %3 : vector<1x32x32xbf16> to vector<32x32xbf16>
    %cst_6 = arith.constant dense<0.000000e+00> : vector<32x72xf32>
    %5 = tpu.matmul %4, %2, %cst_6 {dimension_numbers = #tpu.dot_dimension_numbers<[1], [0], [0], [1], [0, 0, 1, 1], [], []>} : vector<32x32xbf16>, vector<32x72xbf16>, vector<32x72xf32> -> vector<32x72xf32>
    %6 = arith.addf %0, %5 : vector<32x72xf32>
    %c0_7 = arith.constant 0 : index
    %c1 = arith.constant 1 : index
    %c0_8 = arith.constant 0 : index
    %c0_9 = arith.constant 0 : index
    %7 = vector.load %arg1[%c0_7, %c1, %c0_8, %c0_9] : memref<1x4x32x90xbf16, #tpu.memory_space<vmem>>, vector<1x1x32x72xbf16>
    %8 = vector.shape_cast %7 : vector<1x1x32x72xbf16> to vector<32x72xbf16>
    %c1_10 = arith.constant 1 : index
    %c0_11 = arith.constant 0 : index
    %c0_12 = arith.constant 0 : index
    %9 = vector.load %arg2[%c1_10, %c0_11, %c0_12] : memref<9x32x32xbf16, #tpu.memory_space<vmem>>, vector<1x32x32xbf16>
    %10 = vector.shape_cast %9 : vector<1x32x32xbf16> to vector<32x32xbf16>
    %cst_13 = arith.constant dense<0.000000e+00> : vector<32x72xf32>
    %11 = tpu.matmul %10, %8, %cst_13 {dimension_numbers = #tpu.dot_dimension_numbers<[1], [0], [0], [1], [0, 0, 1, 1], [], []>} : vector<32x32xbf16>, vector<32x72xbf16>, vector<32x72xf32> -> vector<32x72xf32>
    %12 = arith.addf %6, %11 : vector<32x72xf32>
    %c0_14 = arith.constant 0 : index
    %c0_15 = arith.constant 0 : index
    %c0_16 = arith.constant 0 : index
    %c1_17 = arith.constant 1 : index
    %13 = vector.load %arg1[%c0_14, %c0_15, %c0_16, %c1_17] : memref<1x4x32x90xbf16, #tpu.memory_space<vmem>>, vector<1x1x32x72xbf16>
    %14 = vector.shape_cast %13 : vector<1x1x32x72xbf16> to vector<32x72xbf16>
    %c2 = arith.constant 2 : index
    %c0_18 = arith.constant 0 : index
    %c0_19 = arith.constant 0 : index
    %15 = vector.load %arg2[%c2, %c0_18, %c0_19] : memref<9x32x32xbf16, #tpu.memory_space<vmem>>, vector<1x32x32xbf16>
    %16 = vector.shape_cast %15 : vector<1x32x32xbf16> to vector<32x32xbf16>
    %cst_20 = arith.constant dense<0.000000e+00> : vector<32x72xf32>
    %17 = tpu.matmul %16, %14, %cst_20 {dimension_numbers = #tpu.dot_dimension_numbers<[1], [0], [0], [1], [0, 0, 1, 1], [], []>} : vector<32x32xbf16>, vector<32x72xbf16>, vector<32x72xf32> -> vector<32x72xf32>
    %18 = arith.addf %12, %17 : vector<32x72xf32>
    %c0_21 = arith.constant 0 : index
    %c2_22 = arith.constant 2 : index
    %c0_23 = arith.constant 0 : index
    %c0_24 = arith.constant 0 : index
    %19 = vector.load %arg1[%c0_21, %c2_22, %c0_23, %c0_24] : memref<1x4x32x90xbf16, #tpu.memory_space<vmem>>, vector<1x1x32x72xbf16>
    %20 = vector.shape_cast %19 : vector<1x1x32x72xbf16> to vector<32x72xbf16>
    %c3 = arith.constant 3 : index
    %c0_25 = arith.constant 0 : index
    %c0_26 = arith.constant 0 : index
    %21 = vector.load %arg2[%c3, %c0_25, %c0_26] : memref<9x32x32xbf16, #tpu.memory_space<vmem>>, vector<1x32x32xbf16>
    %22 = vector.shape_cast %21 : vector<1x32x32xbf16> to vector<32x32xbf16>
    %cst_27 = arith.constant dense<0.000000e+00> : vector<32x72xf32>
    %23 = tpu.matmul %22, %20, %cst_27 {dimension_numbers = #tpu.dot_dimension_numbers<[1], [0], [0], [1], [0, 0, 1, 1], [], []>} : vector<32x32xbf16>, vector<32x72xbf16>, vector<32x72xf32> -> vector<32x72xf32>
    %24 = arith.addf %18, %23 : vector<32x72xf32>
    %c0_28 = arith.constant 0 : index
    %c3_29 = arith.constant 3 : index
    %c0_30 = arith.constant 0 : index
    %c0_31 = arith.constant 0 : index
    %25 = vector.load %arg1[%c0_28, %c3_29, %c0_30, %c0_31] : memref<1x4x32x90xbf16, #tpu.memory_space<vmem>>, vector<1x1x32x72xbf16>
    %26 = vector.shape_cast %25 : vector<1x1x32x72xbf16> to vector<32x72xbf16>
    %c4 = arith.constant 4 : index
    %c0_32 = arith.constant 0 : index
    %c0_33 = arith.constant 0 : index
    %27 = vector.load %arg2[%c4, %c0_32, %c0_33] : memref<9x32x32xbf16, #tpu.memory_space<vmem>>, vector<1x32x32xbf16>
    %28 = vector.shape_cast %27 : vector<1x32x32xbf16> to vector<32x32xbf16>
    %cst_34 = arith.constant dense<0.000000e+00> : vector<32x72xf32>
    %29 = tpu.matmul %28, %26, %cst_34 {dimension_numbers = #tpu.dot_dimension_numbers<[1], [0], [0], [1], [0, 0, 1, 1], [], []>} : vector<32x32xbf16>, vector<32x72xbf16>, vector<32x72xf32> -> vector<32x72xf32>
    %30 = arith.addf %24, %29 : vector<32x72xf32>
    %c0_35 = arith.constant 0 : index
    %c2_36 = arith.constant 2 : index
    %c0_37 = arith.constant 0 : index
    %c1_38 = arith.constant 1 : index
    %31 = vector.load %arg1[%c0_35, %c2_36, %c0_37, %c1_38] : memref<1x4x32x90xbf16, #tpu.memory_space<vmem>>, vector<1x1x32x72xbf16>
    %32 = vector.shape_cast %31 : vector<1x1x32x72xbf16> to vector<32x72xbf16>
    %c5 = arith.constant 5 : index
    %c0_39 = arith.constant 0 : index
    %c0_40 = arith.constant 0 : index
    %33 = vector.load %arg2[%c5, %c0_39, %c0_40] : memref<9x32x32xbf16, #tpu.memory_space<vmem>>, vector<1x32x32xbf16>
    %34 = vector.shape_cast %33 : vector<1x32x32xbf16> to vector<32x32xbf16>
    %cst_41 = arith.constant dense<0.000000e+00> : vector<32x72xf32>
    %35 = tpu.matmul %34, %32, %cst_41 {dimension_numbers = #tpu.dot_dimension_numbers<[1], [0], [0], [1], [0, 0, 1, 1], [], []>} : vector<32x32xbf16>, vector<32x72xbf16>, vector<32x72xf32> -> vector<32x72xf32>
    %36 = arith.addf %30, %35 : vector<32x72xf32>
    %c0_42 = arith.constant 0 : index
    %c0_43 = arith.constant 0 : index
    %c0_44 = arith.constant 0 : index
    %c9 = arith.constant 9 : index
    %37 = vector.load %arg1[%c0_42, %c0_43, %c0_44, %c9] : memref<1x4x32x90xbf16, #tpu.memory_space<vmem>>, vector<1x1x32x72xbf16>
    %38 = vector.shape_cast %37 : vector<1x1x32x72xbf16> to vector<32x72xbf16>
    %c6 = arith.constant 6 : index
    %c0_45 = arith.constant 0 : index
    %c0_46 = arith.constant 0 : index
    %39 = vector.load %arg2[%c6, %c0_45, %c0_46] : memref<9x32x32xbf16, #tpu.memory_space<vmem>>, vector<1x32x32xbf16>
    %40 = vector.shape_cast %39 : vector<1x32x32xbf16> to vector<32x32xbf16>
    %cst_47 = arith.constant dense<0.000000e+00> : vector<32x72xf32>
    %41 = tpu.matmul %40, %38, %cst_47 {dimension_numbers = #tpu.dot_dimension_numbers<[1], [0], [0], [1], [0, 0, 1, 1], [], []>} : vector<32x32xbf16>, vector<32x72xbf16>, vector<32x72xf32> -> vector<32x72xf32>
    %42 = arith.addf %36, %41 : vector<32x72xf32>
    %c0_48 = arith.constant 0 : index
    %c1_49 = arith.constant 1 : index
    %c0_50 = arith.constant 0 : index
    %c9_51 = arith.constant 9 : index
    %43 = vector.load %arg1[%c0_48, %c1_49, %c0_50, %c9_51] : memref<1x4x32x90xbf16, #tpu.memory_space<vmem>>, vector<1x1x32x72xbf16>
    %44 = vector.shape_cast %43 : vector<1x1x32x72xbf16> to vector<32x72xbf16>
    %c7 = arith.constant 7 : index
    %c0_52 = arith.constant 0 : index
    %c0_53 = arith.constant 0 : index
    %45 = vector.load %arg2[%c7, %c0_52, %c0_53] : memref<9x32x32xbf16, #tpu.memory_space<vmem>>, vector<1x32x32xbf16>
    %46 = vector.shape_cast %45 : vector<1x32x32xbf16> to vector<32x32xbf16>
    %cst_54 = arith.constant dense<0.000000e+00> : vector<32x72xf32>
    %47 = tpu.matmul %46, %44, %cst_54 {dimension_numbers = #tpu.dot_dimension_numbers<[1], [0], [0], [1], [0, 0, 1, 1], [], []>} : vector<32x32xbf16>, vector<32x72xbf16>, vector<32x72xf32> -> vector<32x72xf32>
    %48 = arith.addf %42, %47 : vector<32x72xf32>
    %c0_55 = arith.constant 0 : index
    %c0_56 = arith.constant 0 : index
    %c0_57 = arith.constant 0 : index
    %c10 = arith.constant 10 : index
    %49 = vector.load %arg1[%c0_55, %c0_56, %c0_57, %c10] : memref<1x4x32x90xbf16, #tpu.memory_space<vmem>>, vector<1x1x32x72xbf16>
    %50 = vector.shape_cast %49 : vector<1x1x32x72xbf16> to vector<32x72xbf16>
    %c8 = arith.constant 8 : index
    %c0_58 = arith.constant 0 : index
    %c0_59 = arith.constant 0 : index
    %51 = vector.load %arg2[%c8, %c0_58, %c0_59] : memref<9x32x32xbf16, #tpu.memory_space<vmem>>, vector<1x32x32xbf16>
    %52 = vector.shape_cast %51 : vector<1x32x32xbf16> to vector<32x32xbf16>
    %cst_60 = arith.constant dense<0.000000e+00> : vector<32x72xf32>
    %53 = tpu.matmul %52, %50, %cst_60 {dimension_numbers = #tpu.dot_dimension_numbers<[1], [0], [0], [1], [0, 0, 1, 1], [], []>} : vector<32x32xbf16>, vector<32x72xbf16>, vector<32x72xf32> -> vector<32x72xf32>
    %54 = arith.addf %48, %53 : vector<32x72xf32>
    %c0_61 = arith.constant 0 : index
    %c0_62 = arith.constant 0 : index
    %55 = vector.load %arg3[%c0_61, %c0_62] : memref<32x1xf32, #tpu.memory_space<vmem>>, vector<32x1xf32>
    %56 = vector.broadcast %55 : vector<32x1xf32> to vector<32x72xf32>
    %57 = arith.addf %54, %56 : vector<32x72xf32>
    %cst_63 = arith.constant 0.000000e+00 : f32
    %58 = vector.broadcast %cst_63 : f32 to vector<32x72xf32>
    %59 = arith.maximumf %57, %58 : vector<32x72xf32>
    %c0_64 = arith.constant 0 : index
    %c0_65 = arith.constant 0 : index
    %c0_66 = arith.constant 0 : index
    %60 = vector.load %arg4[%c0_64, %c0_65, %c0_66] : memref<1x32x72xf32, #tpu.memory_space<vmem>>, vector<1x32x72xf32>
    %61 = vector.shape_cast %60 : vector<1x32x72xf32> to vector<32x72xf32>
    %62 = vector.shape_cast %59 : vector<32x72xf32> to vector<1x32x72xf32>
    tpu.vector_store %arg4[%c0_64, %c0_65, %c0_66], %62 {strides = array<i32>} : memref<1x32x72xf32, #tpu.memory_space<vmem>>, vector<1x32x72xf32>,
    return
  }
  func.func @transform_0(%arg0: i32) -> (i32, i32, i32, i32) {
    %c0_i32 = arith.constant 0 : i32
    %c0_i32_0 = arith.constant 0 : i32
    %c0_i32_1 = arith.constant 0 : i32
    %c0_i32_2 = arith.constant 0 : i32
    return %arg0, %c0_i32, %c0_i32_0, %c0_i32_1 : i32, i32, i32, i32
  }
  func.func @transform_1(%arg0: i32) -> (i32, i32, i32) {
    %c0_i32 = arith.constant 0 : i32
    %c0_i32_0 = arith.constant 0 : i32
    %c0_i32_1 = arith.constant 0 : i32
    %c0_i32_2 = arith.constant 0 : i32
    return %c0_i32, %c0_i32_0, %c0_i32_1 : i32, i32, i32
  }
  func.func @transform_2(%arg0: i32) -> (i32, i32) {
    %c0_i32 = arith.constant 0 : i32
    %c0_i32_0 = arith.constant 0 : i32
    %c0_i32_1 = arith.constant 0 : i32
    return %c0_i32, %c0_i32_0 : i32, i32
  }
  func.func @transform_3(%arg0: i32) -> (i32, i32, i32) {
    %c0_i32 = arith.constant 0 : i32
    %c0_i32_0 = arith.constant 0 : i32
    %c0_i32_1 = arith.constant 0 : i32
    return %arg0, %c0_i32, %c0_i32_0 : i32, i32, i32
  }
}

module attributes {stable_mosaic.version = 11 : i64} {
  func.func @_conv3x3_kernel(%arg0: i32, %arg1: memref<1x4x32x30xbf16, #tpu.memory_space<vmem>>, %arg2: memref<9x32x32xbf16, #tpu.memory_space<vmem>>, %arg3: memref<32x1xf32, #tpu.memory_space<vmem>>, %arg4: memref<1x32x20xf32, #tpu.memory_space<vmem>>) attributes {dimension_semantics = [#tpu.dimension_semantics<parallel>], iteration_bounds = array<i64: 2>, scalar_prefetch = 0 : i64, scratch_operands = 0 : i64, tpu.core_type = #tpu.core_type<tc>, window_params = [{transform_indices = @transform_0, window_bounds = array<i64: 1, 4, 32, 30>}, {pipeline_mode = #tpu.pipeline_mode<synchronous>, transform_indices = @transform_1, window_bounds = array<i64: 9, 32, 32>}, {pipeline_mode = #tpu.pipeline_mode<synchronous>, transform_indices = @transform_2, window_bounds = array<i64: 32, 1>}, {transform_indices = @transform_3, window_bounds = array<i64: 1, 32, 20>}]} {
    %cst = arith.constant 0.000000e+00 : f32
    %0 = vector.broadcast %cst : f32 to vector<32x20xf32>
    %c0 = arith.constant 0 : index
    %c0_0 = arith.constant 0 : index
    %c0_1 = arith.constant 0 : index
    %c0_2 = arith.constant 0 : index
    %1 = vector.load %arg1[%c0, %c0_0, %c0_1, %c0_2] : memref<1x4x32x30xbf16, #tpu.memory_space<vmem>>, vector<1x1x32x20xbf16>
    %2 = vector.shape_cast %1 : vector<1x1x32x20xbf16> to vector<32x20xbf16>
    %c0_3 = arith.constant 0 : index
    %c0_4 = arith.constant 0 : index
    %c0_5 = arith.constant 0 : index
    %3 = vector.load %arg2[%c0_3, %c0_4, %c0_5] : memref<9x32x32xbf16, #tpu.memory_space<vmem>>, vector<1x32x32xbf16>
    %4 = vector.shape_cast %3 : vector<1x32x32xbf16> to vector<32x32xbf16>
    %cst_6 = arith.constant dense<0.000000e+00> : vector<32x20xf32>
    %5 = tpu.matmul %4, %2, %cst_6 {dimension_numbers = #tpu.dot_dimension_numbers<[1], [0], [0], [1], [0, 0, 1, 1], [], []>} : vector<32x32xbf16>, vector<32x20xbf16>, vector<32x20xf32> -> vector<32x20xf32>
    %6 = arith.addf %0, %5 : vector<32x20xf32>
    %c0_7 = arith.constant 0 : index
    %c1 = arith.constant 1 : index
    %c0_8 = arith.constant 0 : index
    %c0_9 = arith.constant 0 : index
    %7 = vector.load %arg1[%c0_7, %c1, %c0_8, %c0_9] : memref<1x4x32x30xbf16, #tpu.memory_space<vmem>>, vector<1x1x32x20xbf16>
    %8 = vector.shape_cast %7 : vector<1x1x32x20xbf16> to vector<32x20xbf16>
    %c1_10 = arith.constant 1 : index
    %c0_11 = arith.constant 0 : index
    %c0_12 = arith.constant 0 : index
    %9 = vector.load %arg2[%c1_10, %c0_11, %c0_12] : memref<9x32x32xbf16, #tpu.memory_space<vmem>>, vector<1x32x32xbf16>
    %10 = vector.shape_cast %9 : vector<1x32x32xbf16> to vector<32x32xbf16>
    %cst_13 = arith.constant dense<0.000000e+00> : vector<32x20xf32>
    %11 = tpu.matmul %10, %8, %cst_13 {dimension_numbers = #tpu.dot_dimension_numbers<[1], [0], [0], [1], [0, 0, 1, 1], [], []>} : vector<32x32xbf16>, vector<32x20xbf16>, vector<32x20xf32> -> vector<32x20xf32>
    %12 = arith.addf %6, %11 : vector<32x20xf32>
    %c0_14 = arith.constant 0 : index
    %c0_15 = arith.constant 0 : index
    %c0_16 = arith.constant 0 : index
    %c1_17 = arith.constant 1 : index
    %13 = vector.load %arg1[%c0_14, %c0_15, %c0_16, %c1_17] : memref<1x4x32x30xbf16, #tpu.memory_space<vmem>>, vector<1x1x32x20xbf16>
    %14 = vector.shape_cast %13 : vector<1x1x32x20xbf16> to vector<32x20xbf16>
    %c2 = arith.constant 2 : index
    %c0_18 = arith.constant 0 : index
    %c0_19 = arith.constant 0 : index
    %15 = vector.load %arg2[%c2, %c0_18, %c0_19] : memref<9x32x32xbf16, #tpu.memory_space<vmem>>, vector<1x32x32xbf16>
    %16 = vector.shape_cast %15 : vector<1x32x32xbf16> to vector<32x32xbf16>
    %cst_20 = arith.constant dense<0.000000e+00> : vector<32x20xf32>
    %17 = tpu.matmul %16, %14, %cst_20 {dimension_numbers = #tpu.dot_dimension_numbers<[1], [0], [0], [1], [0, 0, 1, 1], [], []>} : vector<32x32xbf16>, vector<32x20xbf16>, vector<32x20xf32> -> vector<32x20xf32>
    %18 = arith.addf %12, %17 : vector<32x20xf32>
    %c0_21 = arith.constant 0 : index
    %c2_22 = arith.constant 2 : index
    %c0_23 = arith.constant 0 : index
    %c0_24 = arith.constant 0 : index
    %19 = vector.load %arg1[%c0_21, %c2_22, %c0_23, %c0_24] : memref<1x4x32x30xbf16, #tpu.memory_space<vmem>>, vector<1x1x32x20xbf16>
    %20 = vector.shape_cast %19 : vector<1x1x32x20xbf16> to vector<32x20xbf16>
    %c3 = arith.constant 3 : index
    %c0_25 = arith.constant 0 : index
    %c0_26 = arith.constant 0 : index
    %21 = vector.load %arg2[%c3, %c0_25, %c0_26] : memref<9x32x32xbf16, #tpu.memory_space<vmem>>, vector<1x32x32xbf16>
    %22 = vector.shape_cast %21 : vector<1x32x32xbf16> to vector<32x32xbf16>
    %cst_27 = arith.constant dense<0.000000e+00> : vector<32x20xf32>
    %23 = tpu.matmul %22, %20, %cst_27 {dimension_numbers = #tpu.dot_dimension_numbers<[1], [0], [0], [1], [0, 0, 1, 1], [], []>} : vector<32x32xbf16>, vector<32x20xbf16>, vector<32x20xf32> -> vector<32x20xf32>
    %24 = arith.addf %18, %23 : vector<32x20xf32>
    %c0_28 = arith.constant 0 : index
    %c3_29 = arith.constant 3 : index
    %c0_30 = arith.constant 0 : index
    %c0_31 = arith.constant 0 : index
    %25 = vector.load %arg1[%c0_28, %c3_29, %c0_30, %c0_31] : memref<1x4x32x30xbf16, #tpu.memory_space<vmem>>, vector<1x1x32x20xbf16>
    %26 = vector.shape_cast %25 : vector<1x1x32x20xbf16> to vector<32x20xbf16>
    %c4 = arith.constant 4 : index
    %c0_32 = arith.constant 0 : index
    %c0_33 = arith.constant 0 : index
    %27 = vector.load %arg2[%c4, %c0_32, %c0_33] : memref<9x32x32xbf16, #tpu.memory_space<vmem>>, vector<1x32x32xbf16>
    %28 = vector.shape_cast %27 : vector<1x32x32xbf16> to vector<32x32xbf16>
    %cst_34 = arith.constant dense<0.000000e+00> : vector<32x20xf32>
    %29 = tpu.matmul %28, %26, %cst_34 {dimension_numbers = #tpu.dot_dimension_numbers<[1], [0], [0], [1], [0, 0, 1, 1], [], []>} : vector<32x32xbf16>, vector<32x20xbf16>, vector<32x20xf32> -> vector<32x20xf32>
    %30 = arith.addf %24, %29 : vector<32x20xf32>
    %c0_35 = arith.constant 0 : index
    %c2_36 = arith.constant 2 : index
    %c0_37 = arith.constant 0 : index
    %c1_38 = arith.constant 1 : index
    %31 = vector.load %arg1[%c0_35, %c2_36, %c0_37, %c1_38] : memref<1x4x32x30xbf16, #tpu.memory_space<vmem>>, vector<1x1x32x20xbf16>
    %32 = vector.shape_cast %31 : vector<1x1x32x20xbf16> to vector<32x20xbf16>
    %c5 = arith.constant 5 : index
    %c0_39 = arith.constant 0 : index
    %c0_40 = arith.constant 0 : index
    %33 = vector.load %arg2[%c5, %c0_39, %c0_40] : memref<9x32x32xbf16, #tpu.memory_space<vmem>>, vector<1x32x32xbf16>
    %34 = vector.shape_cast %33 : vector<1x32x32xbf16> to vector<32x32xbf16>
    %cst_41 = arith.constant dense<0.000000e+00> : vector<32x20xf32>
    %35 = tpu.matmul %34, %32, %cst_41 {dimension_numbers = #tpu.dot_dimension_numbers<[1], [0], [0], [1], [0, 0, 1, 1], [], []>} : vector<32x32xbf16>, vector<32x20xbf16>, vector<32x20xf32> -> vector<32x20xf32>
    %36 = arith.addf %30, %35 : vector<32x20xf32>
    %c0_42 = arith.constant 0 : index
    %c0_43 = arith.constant 0 : index
    %c0_44 = arith.constant 0 : index
    %c5_45 = arith.constant 5 : index
    %37 = vector.load %arg1[%c0_42, %c0_43, %c0_44, %c5_45] : memref<1x4x32x30xbf16, #tpu.memory_space<vmem>>, vector<1x1x32x20xbf16>
    %38 = vector.shape_cast %37 : vector<1x1x32x20xbf16> to vector<32x20xbf16>
    %c6 = arith.constant 6 : index
    %c0_46 = arith.constant 0 : index
    %c0_47 = arith.constant 0 : index
    %39 = vector.load %arg2[%c6, %c0_46, %c0_47] : memref<9x32x32xbf16, #tpu.memory_space<vmem>>, vector<1x32x32xbf16>
    %40 = vector.shape_cast %39 : vector<1x32x32xbf16> to vector<32x32xbf16>
    %cst_48 = arith.constant dense<0.000000e+00> : vector<32x20xf32>
    %41 = tpu.matmul %40, %38, %cst_48 {dimension_numbers = #tpu.dot_dimension_numbers<[1], [0], [0], [1], [0, 0, 1, 1], [], []>} : vector<32x32xbf16>, vector<32x20xbf16>, vector<32x20xf32> -> vector<32x20xf32>
    %42 = arith.addf %36, %41 : vector<32x20xf32>
    %c0_49 = arith.constant 0 : index
    %c1_50 = arith.constant 1 : index
    %c0_51 = arith.constant 0 : index
    %c5_52 = arith.constant 5 : index
    %43 = vector.load %arg1[%c0_49, %c1_50, %c0_51, %c5_52] : memref<1x4x32x30xbf16, #tpu.memory_space<vmem>>, vector<1x1x32x20xbf16>
    %44 = vector.shape_cast %43 : vector<1x1x32x20xbf16> to vector<32x20xbf16>
    %c7 = arith.constant 7 : index
    %c0_53 = arith.constant 0 : index
    %c0_54 = arith.constant 0 : index
    %45 = vector.load %arg2[%c7, %c0_53, %c0_54] : memref<9x32x32xbf16, #tpu.memory_space<vmem>>, vector<1x32x32xbf16>
    %46 = vector.shape_cast %45 : vector<1x32x32xbf16> to vector<32x32xbf16>
    %cst_55 = arith.constant dense<0.000000e+00> : vector<32x20xf32>
    %47 = tpu.matmul %46, %44, %cst_55 {dimension_numbers = #tpu.dot_dimension_numbers<[1], [0], [0], [1], [0, 0, 1, 1], [], []>} : vector<32x32xbf16>, vector<32x20xbf16>, vector<32x20xf32> -> vector<32x20xf32>
    %48 = arith.addf %42, %47 : vector<32x20xf32>
    %c0_56 = arith.constant 0 : index
    %c0_57 = arith.constant 0 : index
    %c0_58 = arith.constant 0 : index
    %c6_59 = arith.constant 6 : index
    %49 = vector.load %arg1[%c0_56, %c0_57, %c0_58, %c6_59] : memref<1x4x32x30xbf16, #tpu.memory_space<vmem>>, vector<1x1x32x20xbf16>
    %50 = vector.shape_cast %49 : vector<1x1x32x20xbf16> to vector<32x20xbf16>
    %c8 = arith.constant 8 : index
    %c0_60 = arith.constant 0 : index
    %c0_61 = arith.constant 0 : index
    %51 = vector.load %arg2[%c8, %c0_60, %c0_61] : memref<9x32x32xbf16, #tpu.memory_space<vmem>>, vector<1x32x32xbf16>
    %52 = vector.shape_cast %51 : vector<1x32x32xbf16> to vector<32x32xbf16>
    %cst_62 = arith.constant dense<0.000000e+00> : vector<32x20xf32>
    %53 = tpu.matmul %52, %50, %cst_62 {dimension_numbers = #tpu.dot_dimension_numbers<[1], [0], [0], [1], [0, 0, 1, 1], [], []>} : vector<32x32xbf16>, vector<32x20xbf16>, vector<32x20xf32> -> vector<32x20xf32>
    %54 = arith.addf %48, %53 : vector<32x20xf32>
    %c0_63 = arith.constant 0 : index
    %c0_64 = arith.constant 0 : index
    %55 = vector.load %arg3[%c0_63, %c0_64] : memref<32x1xf32, #tpu.memory_space<vmem>>, vector<32x1xf32>
    %56 = vector.broadcast %55 : vector<32x1xf32> to vector<32x20xf32>
    %57 = arith.addf %54, %56 : vector<32x20xf32>
    %cst_65 = arith.constant 0.000000e+00 : f32
    %58 = vector.broadcast %cst_65 : f32 to vector<32x20xf32>
    %59 = arith.maximumf %57, %58 : vector<32x20xf32>
    %c0_66 = arith.constant 0 : index
    %c0_67 = arith.constant 0 : index
    %c0_68 = arith.constant 0 : index
    %60 = vector.load %arg4[%c0_66, %c0_67, %c0_68] : memref<1x32x20xf32, #tpu.memory_space<vmem>>, vector<1x32x20xf32>
    %61 = vector.shape_cast %60 : vector<1x32x20xf32> to vector<32x20xf32>
    %62 = vector.shape_cast %59 : vector<32x20xf32> to vector<1x32x20xf32>
    tpu.vector_store %arg4[%c0_66, %c0_67, %c0_68], %62 {strides = array<i32>} : memref<1x32x20xf32, #tpu.memory_space<vmem>>, vector<1x32x20xf32>,
    return
  }
  func.func @transform_0(%arg0: i32) -> (i32, i32, i32, i32) {
    %c0_i32 = arith.constant 0 : i32
    %c0_i32_0 = arith.constant 0 : i32
    %c0_i32_1 = arith.constant 0 : i32
    %c0_i32_2 = arith.constant 0 : i32
    return %arg0, %c0_i32, %c0_i32_0, %c0_i32_1 : i32, i32, i32, i32
  }
  func.func @transform_1(%arg0: i32) -> (i32, i32, i32) {
    %c0_i32 = arith.constant 0 : i32
    %c0_i32_0 = arith.constant 0 : i32
    %c0_i32_1 = arith.constant 0 : i32
    %c0_i32_2 = arith.constant 0 : i32
    return %c0_i32, %c0_i32_0, %c0_i32_1 : i32, i32, i32
  }
  func.func @transform_2(%arg0: i32) -> (i32, i32) {
    %c0_i32 = arith.constant 0 : i32
    %c0_i32_0 = arith.constant 0 : i32
    %c0_i32_1 = arith.constant 0 : i32
    return %c0_i32, %c0_i32_0 : i32, i32
  }
  func.func @transform_3(%arg0: i32) -> (i32, i32, i32) {
    %c0_i32 = arith.constant 0 : i32
    %c0_i32_0 = arith.constant 0 : i32
    %c0_i32_1 = arith.constant 0 : i32
    return %arg0, %c0_i32, %c0_i32_0 : i32, i32, i32
  }
}

module attributes {stable_mosaic.version = 11 : i64} {
  func.func @_conv3x3_kernel(%arg0: i32, %arg1: memref<1x4x32x12xbf16, #tpu.memory_space<vmem>>, %arg2: memref<9x32x32xbf16, #tpu.memory_space<vmem>>, %arg3: memref<32x1xf32, #tpu.memory_space<vmem>>, %arg4: memref<1x32x6xf32, #tpu.memory_space<vmem>>) attributes {dimension_semantics = [#tpu.dimension_semantics<parallel>], iteration_bounds = array<i64: 2>, scalar_prefetch = 0 : i64, scratch_operands = 0 : i64, tpu.core_type = #tpu.core_type<tc>, window_params = [{transform_indices = @transform_0, window_bounds = array<i64: 1, 4, 32, 12>}, {pipeline_mode = #tpu.pipeline_mode<synchronous>, transform_indices = @transform_1, window_bounds = array<i64: 9, 32, 32>}, {pipeline_mode = #tpu.pipeline_mode<synchronous>, transform_indices = @transform_2, window_bounds = array<i64: 32, 1>}, {transform_indices = @transform_3, window_bounds = array<i64: 1, 32, 6>}]} {
    %cst = arith.constant 0.000000e+00 : f32
    %0 = vector.broadcast %cst : f32 to vector<32x6xf32>
    %c0 = arith.constant 0 : index
    %c0_0 = arith.constant 0 : index
    %c0_1 = arith.constant 0 : index
    %c0_2 = arith.constant 0 : index
    %1 = vector.load %arg1[%c0, %c0_0, %c0_1, %c0_2] : memref<1x4x32x12xbf16, #tpu.memory_space<vmem>>, vector<1x1x32x6xbf16>
    %2 = vector.shape_cast %1 : vector<1x1x32x6xbf16> to vector<32x6xbf16>
    %c0_3 = arith.constant 0 : index
    %c0_4 = arith.constant 0 : index
    %c0_5 = arith.constant 0 : index
    %3 = vector.load %arg2[%c0_3, %c0_4, %c0_5] : memref<9x32x32xbf16, #tpu.memory_space<vmem>>, vector<1x32x32xbf16>
    %4 = vector.shape_cast %3 : vector<1x32x32xbf16> to vector<32x32xbf16>
    %cst_6 = arith.constant dense<0.000000e+00> : vector<32x6xf32>
    %5 = tpu.matmul %4, %2, %cst_6 {dimension_numbers = #tpu.dot_dimension_numbers<[1], [0], [0], [1], [0, 0, 1, 1], [], []>} : vector<32x32xbf16>, vector<32x6xbf16>, vector<32x6xf32> -> vector<32x6xf32>
    %6 = arith.addf %0, %5 : vector<32x6xf32>
    %c0_7 = arith.constant 0 : index
    %c1 = arith.constant 1 : index
    %c0_8 = arith.constant 0 : index
    %c0_9 = arith.constant 0 : index
    %7 = vector.load %arg1[%c0_7, %c1, %c0_8, %c0_9] : memref<1x4x32x12xbf16, #tpu.memory_space<vmem>>, vector<1x1x32x6xbf16>
    %8 = vector.shape_cast %7 : vector<1x1x32x6xbf16> to vector<32x6xbf16>
    %c1_10 = arith.constant 1 : index
    %c0_11 = arith.constant 0 : index
    %c0_12 = arith.constant 0 : index
    %9 = vector.load %arg2[%c1_10, %c0_11, %c0_12] : memref<9x32x32xbf16, #tpu.memory_space<vmem>>, vector<1x32x32xbf16>
    %10 = vector.shape_cast %9 : vector<1x32x32xbf16> to vector<32x32xbf16>
    %cst_13 = arith.constant dense<0.000000e+00> : vector<32x6xf32>
    %11 = tpu.matmul %10, %8, %cst_13 {dimension_numbers = #tpu.dot_dimension_numbers<[1], [0], [0], [1], [0, 0, 1, 1], [], []>} : vector<32x32xbf16>, vector<32x6xbf16>, vector<32x6xf32> -> vector<32x6xf32>
    %12 = arith.addf %6, %11 : vector<32x6xf32>
    %c0_14 = arith.constant 0 : index
    %c0_15 = arith.constant 0 : index
    %c0_16 = arith.constant 0 : index
    %c1_17 = arith.constant 1 : index
    %13 = vector.load %arg1[%c0_14, %c0_15, %c0_16, %c1_17] : memref<1x4x32x12xbf16, #tpu.memory_space<vmem>>, vector<1x1x32x6xbf16>
    %14 = vector.shape_cast %13 : vector<1x1x32x6xbf16> to vector<32x6xbf16>
    %c2 = arith.constant 2 : index
    %c0_18 = arith.constant 0 : index
    %c0_19 = arith.constant 0 : index
    %15 = vector.load %arg2[%c2, %c0_18, %c0_19] : memref<9x32x32xbf16, #tpu.memory_space<vmem>>, vector<1x32x32xbf16>
    %16 = vector.shape_cast %15 : vector<1x32x32xbf16> to vector<32x32xbf16>
    %cst_20 = arith.constant dense<0.000000e+00> : vector<32x6xf32>
    %17 = tpu.matmul %16, %14, %cst_20 {dimension_numbers = #tpu.dot_dimension_numbers<[1], [0], [0], [1], [0, 0, 1, 1], [], []>} : vector<32x32xbf16>, vector<32x6xbf16>, vector<32x6xf32> -> vector<32x6xf32>
    %18 = arith.addf %12, %17 : vector<32x6xf32>
    %c0_21 = arith.constant 0 : index
    %c2_22 = arith.constant 2 : index
    %c0_23 = arith.constant 0 : index
    %c0_24 = arith.constant 0 : index
    %19 = vector.load %arg1[%c0_21, %c2_22, %c0_23, %c0_24] : memref<1x4x32x12xbf16, #tpu.memory_space<vmem>>, vector<1x1x32x6xbf16>
    %20 = vector.shape_cast %19 : vector<1x1x32x6xbf16> to vector<32x6xbf16>
    %c3 = arith.constant 3 : index
    %c0_25 = arith.constant 0 : index
    %c0_26 = arith.constant 0 : index
    %21 = vector.load %arg2[%c3, %c0_25, %c0_26] : memref<9x32x32xbf16, #tpu.memory_space<vmem>>, vector<1x32x32xbf16>
    %22 = vector.shape_cast %21 : vector<1x32x32xbf16> to vector<32x32xbf16>
    %cst_27 = arith.constant dense<0.000000e+00> : vector<32x6xf32>
    %23 = tpu.matmul %22, %20, %cst_27 {dimension_numbers = #tpu.dot_dimension_numbers<[1], [0], [0], [1], [0, 0, 1, 1], [], []>} : vector<32x32xbf16>, vector<32x6xbf16>, vector<32x6xf32> -> vector<32x6xf32>
    %24 = arith.addf %18, %23 : vector<32x6xf32>
    %c0_28 = arith.constant 0 : index
    %c3_29 = arith.constant 3 : index
    %c0_30 = arith.constant 0 : index
    %c0_31 = arith.constant 0 : index
    %25 = vector.load %arg1[%c0_28, %c3_29, %c0_30, %c0_31] : memref<1x4x32x12xbf16, #tpu.memory_space<vmem>>, vector<1x1x32x6xbf16>
    %26 = vector.shape_cast %25 : vector<1x1x32x6xbf16> to vector<32x6xbf16>
    %c4 = arith.constant 4 : index
    %c0_32 = arith.constant 0 : index
    %c0_33 = arith.constant 0 : index
    %27 = vector.load %arg2[%c4, %c0_32, %c0_33] : memref<9x32x32xbf16, #tpu.memory_space<vmem>>, vector<1x32x32xbf16>
    %28 = vector.shape_cast %27 : vector<1x32x32xbf16> to vector<32x32xbf16>
    %cst_34 = arith.constant dense<0.000000e+00> : vector<32x6xf32>
    %29 = tpu.matmul %28, %26, %cst_34 {dimension_numbers = #tpu.dot_dimension_numbers<[1], [0], [0], [1], [0, 0, 1, 1], [], []>} : vector<32x32xbf16>, vector<32x6xbf16>, vector<32x6xf32> -> vector<32x6xf32>
    %30 = arith.addf %24, %29 : vector<32x6xf32>
    %c0_35 = arith.constant 0 : index
    %c2_36 = arith.constant 2 : index
    %c0_37 = arith.constant 0 : index
    %c1_38 = arith.constant 1 : index
    %31 = vector.load %arg1[%c0_35, %c2_36, %c0_37, %c1_38] : memref<1x4x32x12xbf16, #tpu.memory_space<vmem>>, vector<1x1x32x6xbf16>
    %32 = vector.shape_cast %31 : vector<1x1x32x6xbf16> to vector<32x6xbf16>
    %c5 = arith.constant 5 : index
    %c0_39 = arith.constant 0 : index
    %c0_40 = arith.constant 0 : index
    %33 = vector.load %arg2[%c5, %c0_39, %c0_40] : memref<9x32x32xbf16, #tpu.memory_space<vmem>>, vector<1x32x32xbf16>
    %34 = vector.shape_cast %33 : vector<1x32x32xbf16> to vector<32x32xbf16>
    %cst_41 = arith.constant dense<0.000000e+00> : vector<32x6xf32>
    %35 = tpu.matmul %34, %32, %cst_41 {dimension_numbers = #tpu.dot_dimension_numbers<[1], [0], [0], [1], [0, 0, 1, 1], [], []>} : vector<32x32xbf16>, vector<32x6xbf16>, vector<32x6xf32> -> vector<32x6xf32>
    %36 = arith.addf %30, %35 : vector<32x6xf32>
    %c0_42 = arith.constant 0 : index
    %c0_43 = arith.constant 0 : index
    %c0_44 = arith.constant 0 : index
    %c3_45 = arith.constant 3 : index
    %37 = vector.load %arg1[%c0_42, %c0_43, %c0_44, %c3_45] : memref<1x4x32x12xbf16, #tpu.memory_space<vmem>>, vector<1x1x32x6xbf16>
    %38 = vector.shape_cast %37 : vector<1x1x32x6xbf16> to vector<32x6xbf16>
    %c6 = arith.constant 6 : index
    %c0_46 = arith.constant 0 : index
    %c0_47 = arith.constant 0 : index
    %39 = vector.load %arg2[%c6, %c0_46, %c0_47] : memref<9x32x32xbf16, #tpu.memory_space<vmem>>, vector<1x32x32xbf16>
    %40 = vector.shape_cast %39 : vector<1x32x32xbf16> to vector<32x32xbf16>
    %cst_48 = arith.constant dense<0.000000e+00> : vector<32x6xf32>
    %41 = tpu.matmul %40, %38, %cst_48 {dimension_numbers = #tpu.dot_dimension_numbers<[1], [0], [0], [1], [0, 0, 1, 1], [], []>} : vector<32x32xbf16>, vector<32x6xbf16>, vector<32x6xf32> -> vector<32x6xf32>
    %42 = arith.addf %36, %41 : vector<32x6xf32>
    %c0_49 = arith.constant 0 : index
    %c1_50 = arith.constant 1 : index
    %c0_51 = arith.constant 0 : index
    %c3_52 = arith.constant 3 : index
    %43 = vector.load %arg1[%c0_49, %c1_50, %c0_51, %c3_52] : memref<1x4x32x12xbf16, #tpu.memory_space<vmem>>, vector<1x1x32x6xbf16>
    %44 = vector.shape_cast %43 : vector<1x1x32x6xbf16> to vector<32x6xbf16>
    %c7 = arith.constant 7 : index
    %c0_53 = arith.constant 0 : index
    %c0_54 = arith.constant 0 : index
    %45 = vector.load %arg2[%c7, %c0_53, %c0_54] : memref<9x32x32xbf16, #tpu.memory_space<vmem>>, vector<1x32x32xbf16>
    %46 = vector.shape_cast %45 : vector<1x32x32xbf16> to vector<32x32xbf16>
    %cst_55 = arith.constant dense<0.000000e+00> : vector<32x6xf32>
    %47 = tpu.matmul %46, %44, %cst_55 {dimension_numbers = #tpu.dot_dimension_numbers<[1], [0], [0], [1], [0, 0, 1, 1], [], []>} : vector<32x32xbf16>, vector<32x6xbf16>, vector<32x6xf32> -> vector<32x6xf32>
    %48 = arith.addf %42, %47 : vector<32x6xf32>
    %c0_56 = arith.constant 0 : index
    %c0_57 = arith.constant 0 : index
    %c0_58 = arith.constant 0 : index
    %c4_59 = arith.constant 4 : index
    %49 = vector.load %arg1[%c0_56, %c0_57, %c0_58, %c4_59] : memref<1x4x32x12xbf16, #tpu.memory_space<vmem>>, vector<1x1x32x6xbf16>
    %50 = vector.shape_cast %49 : vector<1x1x32x6xbf16> to vector<32x6xbf16>
    %c8 = arith.constant 8 : index
    %c0_60 = arith.constant 0 : index
    %c0_61 = arith.constant 0 : index
    %51 = vector.load %arg2[%c8, %c0_60, %c0_61] : memref<9x32x32xbf16, #tpu.memory_space<vmem>>, vector<1x32x32xbf16>
    %52 = vector.shape_cast %51 : vector<1x32x32xbf16> to vector<32x32xbf16>
    %cst_62 = arith.constant dense<0.000000e+00> : vector<32x6xf32>
    %53 = tpu.matmul %52, %50, %cst_62 {dimension_numbers = #tpu.dot_dimension_numbers<[1], [0], [0], [1], [0, 0, 1, 1], [], []>} : vector<32x32xbf16>, vector<32x6xbf16>, vector<32x6xf32> -> vector<32x6xf32>
    %54 = arith.addf %48, %53 : vector<32x6xf32>
    %c0_63 = arith.constant 0 : index
    %c0_64 = arith.constant 0 : index
    %55 = vector.load %arg3[%c0_63, %c0_64] : memref<32x1xf32, #tpu.memory_space<vmem>>, vector<32x1xf32>
    %56 = vector.broadcast %55 : vector<32x1xf32> to vector<32x6xf32>
    %57 = arith.addf %54, %56 : vector<32x6xf32>
    %cst_65 = arith.constant 0.000000e+00 : f32
    %58 = vector.broadcast %cst_65 : f32 to vector<32x6xf32>
    %59 = arith.maximumf %57, %58 : vector<32x6xf32>
    %c0_66 = arith.constant 0 : index
    %c0_67 = arith.constant 0 : index
    %c0_68 = arith.constant 0 : index
    %60 = vector.load %arg4[%c0_66, %c0_67, %c0_68] : memref<1x32x6xf32, #tpu.memory_space<vmem>>, vector<1x32x6xf32>
    %61 = vector.shape_cast %60 : vector<1x32x6xf32> to vector<32x6xf32>
    %62 = vector.shape_cast %59 : vector<32x6xf32> to vector<1x32x6xf32>
    tpu.vector_store %arg4[%c0_66, %c0_67, %c0_68], %62 {strides = array<i32>} : memref<1x32x6xf32, #tpu.memory_space<vmem>>, vector<1x32x6xf32>,
    return
  }
  func.func @transform_0(%arg0: i32) -> (i32, i32, i32, i32) {
    %c0_i32 = arith.constant 0 : i32
    %c0_i32_0 = arith.constant 0 : i32
    %c0_i32_1 = arith.constant 0 : i32
    %c0_i32_2 = arith.constant 0 : i32
    return %arg0, %c0_i32, %c0_i32_0, %c0_i32_1 : i32, i32, i32, i32
  }
  func.func @transform_1(%arg0: i32) -> (i32, i32, i32) {
    %c0_i32 = arith.constant 0 : i32
    %c0_i32_0 = arith.constant 0 : i32
    %c0_i32_1 = arith.constant 0 : i32
    %c0_i32_2 = arith.constant 0 : i32
    return %c0_i32, %c0_i32_0, %c0_i32_1 : i32, i32, i32
  }
  func.func @transform_2(%arg0: i32) -> (i32, i32) {
    %c0_i32 = arith.constant 0 : i32
    %c0_i32_0 = arith.constant 0 : i32
    %c0_i32_1 = arith.constant 0 : i32
    return %c0_i32, %c0_i32_0 : i32, i32
  }
  func.func @transform_3(%arg0: i32) -> (i32, i32, i32) {
    %c0_i32 = arith.constant 0 : i32
    %c0_i32_0 = arith.constant 0 : i32
    %c0_i32_1 = arith.constant 0 : i32
    return %arg0, %c0_i32, %c0_i32_0 : i32, i32, i32
  }
}

module attributes {stable_mosaic.version = 11 : i64} {
  func.func @_mhsa_kernel(%arg0: i32, %arg1: memref<1x4x32xbf16, #tpu.memory_space<vmem>>, %arg2: memref<32x96xbf16, #tpu.memory_space<vmem>>, %arg3: memref<1x96xf32, #tpu.memory_space<vmem>>, %arg4: memref<4x8x32xf32, #tpu.memory_space<vmem>>, %arg5: memref<1x32xf32, #tpu.memory_space<vmem>>, %arg6: memref<1x4x32xf32, #tpu.memory_space<vmem>>) attributes {dimension_semantics = [#tpu.dimension_semantics<parallel>], iteration_bounds = array<i64: 2>, scalar_prefetch = 0 : i64, scratch_operands = 0 : i64, tpu.core_type = #tpu.core_type<tc>, window_params = [{transform_indices = @transform_0, window_bounds = array<i64: 1, 4, 32>}, {pipeline_mode = #tpu.pipeline_mode<synchronous>, transform_indices = @transform_1, window_bounds = array<i64: 32, 96>}, {pipeline_mode = #tpu.pipeline_mode<synchronous>, transform_indices = @transform_2, window_bounds = array<i64: 1, 96>}, {pipeline_mode = #tpu.pipeline_mode<synchronous>, transform_indices = @transform_3, window_bounds = array<i64: 4, 8, 32>}, {pipeline_mode = #tpu.pipeline_mode<synchronous>, transform_indices = @transform_4, window_bounds = array<i64: 1, 32>}, {transform_indices = @transform_5, window_bounds = array<i64: 1, 4, 32>}]} {
    %c0 = arith.constant 0 : index
    %c0_0 = arith.constant 0 : index
    %c0_1 = arith.constant 0 : index
    %0 = vector.load %arg1[%c0, %c0_0, %c0_1] : memref<1x4x32xbf16, #tpu.memory_space<vmem>>, vector<1x4x32xbf16>
    %1 = vector.shape_cast %0 : vector<1x4x32xbf16> to vector<4x32xbf16>
    %c0_2 = arith.constant 0 : index
    %c0_3 = arith.constant 0 : index
    %2 = vector.load %arg2[%c0_2, %c0_3] : memref<32x96xbf16, #tpu.memory_space<vmem>>, vector<32x96xbf16>
    %cst = arith.constant dense<0.000000e+00> : vector<4x96xf32>
    %3 = tpu.matmul %1, %2, %cst {dimension_numbers = #tpu.dot_dimension_numbers<[1], [0], [0], [1], [0, 0, 1, 1], [], []>} : vector<4x32xbf16>, vector<32x96xbf16>, vector<4x96xf32> -> vector<4x96xf32>
    %c0_4 = arith.constant 0 : index
    %c0_5 = arith.constant 0 : index
    %4 = vector.load %arg3[%c0_4, %c0_5] : memref<1x96xf32, #tpu.memory_space<vmem>>, vector<1x96xf32>
    %5 = vector.broadcast %4 : vector<1x96xf32> to vector<4x96xf32>
    %6 = arith.addf %3, %5 : vector<4x96xf32>
    %cst_6 = arith.constant 0.000000e+00 : f32
    %7 = vector.broadcast %cst_6 : f32 to vector<4x32xf32>
    %8 = vector.extract_strided_slice %6 {offsets = [0, 0], sizes = [4, 8], strides = [1, 1]} : vector<4x96xf32> to vector<4x8xf32>
    %9 = vector.extract_strided_slice %6 {offsets = [0, 32], sizes = [4, 8], strides = [1, 1]} : vector<4x96xf32> to vector<4x8xf32>
    %10 = vector.extract_strided_slice %6 {offsets = [0, 64], sizes = [4, 8], strides = [1, 1]} : vector<4x96xf32> to vector<4x8xf32>
    %cst_7 = arith.constant dense<0.000000e+00> : vector<4x4xf32>
    %11 = tpu.matmul %8, %9, %cst_7 {dimension_numbers = #tpu.dot_dimension_numbers<[1], [1], [0], [0], [0, 0, 1, 0], [], []>} : vector<4x8xf32>, vector<4x8xf32>, vector<4x4xf32> -> vector<4x4xf32>
    %cst_8 = arith.constant dense<0xFF800000> : vector<4xf32>
    %12 = vector.multi_reduction <maximumf>, %11, %cst_8 [1] : vector<4x4xf32> to vector<4xf32>
    %13 = vector.shape_cast %12 : vector<4xf32> to vector<4x1xf32>
    %14 = vector.broadcast %13 : vector<4x1xf32> to vector<4x4xf32>
    %15 = arith.subf %11, %14 : vector<4x4xf32>
    %16 = math.exp %15 : vector<4x4xf32>
    %cst_9 = arith.constant dense<0.000000e+00> : vector<4xf32>
    %17 = vector.multi_reduction <add>, %16, %cst_9 [1] : vector<4x4xf32> to vector<4xf32>
    %18 = vector.shape_cast %17 : vector<4xf32> to vector<4x1xf32>
    %19 = tpu.reciprocal %18 {approx = true} : vector<4x1xf32> -> vector<4x1xf32>
    %20 = vector.broadcast %19 : vector<4x1xf32> to vector<4x4xf32>
    %21 = arith.mulf %16, %20 : vector<4x4xf32>
    %cst_10 = arith.constant dense<0.000000e+00> : vector<4x8xf32>
    %22 = tpu.matmul %21, %10, %cst_10 {dimension_numbers = #tpu.dot_dimension_numbers<[1], [0], [0], [1], [0, 0, 1, 1], [], []>} : vector<4x4xf32>, vector<4x8xf32>, vector<4x8xf32> -> vector<4x8xf32>
    %c0_11 = arith.constant 0 : index
    %c0_12 = arith.constant 0 : index
    %c0_13 = arith.constant 0 : index
    %23 = vector.load %arg4[%c0_11, %c0_12, %c0_13] : memref<4x8x32xf32, #tpu.memory_space<vmem>>, vector<1x8x32xf32>
    %24 = vector.shape_cast %23 : vector<1x8x32xf32> to vector<8x32xf32>
    %cst_14 = arith.constant dense<0.000000e+00> : vector<4x32xf32>
    %25 = tpu.matmul %22, %24, %cst_14 {dimension_numbers = #tpu.dot_dimension_numbers<[1], [0], [0], [1], [0, 0, 1, 1], [], []>} : vector<4x8xf32>, vector<8x32xf32>, vector<4x32xf32> -> vector<4x32xf32>
    %26 = arith.addf %7, %25 : vector<4x32xf32>
    %27 = vector.extract_strided_slice %6 {offsets = [0, 8], sizes = [4, 8], strides = [1, 1]} : vector<4x96xf32> to vector<4x8xf32>
    %28 = vector.extract_strided_slice %6 {offsets = [0, 40], sizes = [4, 8], strides = [1, 1]} : vector<4x96xf32> to vector<4x8xf32>
    %29 = vector.extract_strided_slice %6 {offsets = [0, 72], sizes = [4, 8], strides = [1, 1]} : vector<4x96xf32> to vector<4x8xf32>
    %cst_15 = arith.constant dense<0.000000e+00> : vector<4x4xf32>
    %30 = tpu.matmul %27, %28, %cst_15 {dimension_numbers = #tpu.dot_dimension_numbers<[1], [1], [0], [0], [0, 0, 1, 0], [], []>} : vector<4x8xf32>, vector<4x8xf32>, vector<4x4xf32> -> vector<4x4xf32>
    %cst_16 = arith.constant dense<0xFF800000> : vector<4xf32>
    %31 = vector.multi_reduction <maximumf>, %30, %cst_16 [1] : vector<4x4xf32> to vector<4xf32>
    %32 = vector.shape_cast %31 : vector<4xf32> to vector<4x1xf32>
    %33 = vector.broadcast %32 : vector<4x1xf32> to vector<4x4xf32>
    %34 = arith.subf %30, %33 : vector<4x4xf32>
    %35 = math.exp %34 : vector<4x4xf32>
    %cst_17 = arith.constant dense<0.000000e+00> : vector<4xf32>
    %36 = vector.multi_reduction <add>, %35, %cst_17 [1] : vector<4x4xf32> to vector<4xf32>
    %37 = vector.shape_cast %36 : vector<4xf32> to vector<4x1xf32>
    %38 = tpu.reciprocal %37 {approx = true} : vector<4x1xf32> -> vector<4x1xf32>
    %39 = vector.broadcast %38 : vector<4x1xf32> to vector<4x4xf32>
    %40 = arith.mulf %35, %39 : vector<4x4xf32>
    %cst_18 = arith.constant dense<0.000000e+00> : vector<4x8xf32>
    %41 = tpu.matmul %40, %29, %cst_18 {dimension_numbers = #tpu.dot_dimension_numbers<[1], [0], [0], [1], [0, 0, 1, 1], [], []>} : vector<4x4xf32>, vector<4x8xf32>, vector<4x8xf32> -> vector<4x8xf32>
    %c1 = arith.constant 1 : index
    %c0_19 = arith.constant 0 : index
    %c0_20 = arith.constant 0 : index
    %42 = vector.load %arg4[%c1, %c0_19, %c0_20] : memref<4x8x32xf32, #tpu.memory_space<vmem>>, vector<1x8x32xf32>
    %43 = vector.shape_cast %42 : vector<1x8x32xf32> to vector<8x32xf32>
    %cst_21 = arith.constant dense<0.000000e+00> : vector<4x32xf32>
    %44 = tpu.matmul %41, %43, %cst_21 {dimension_numbers = #tpu.dot_dimension_numbers<[1], [0], [0], [1], [0, 0, 1, 1], [], []>} : vector<4x8xf32>, vector<8x32xf32>, vector<4x32xf32> -> vector<4x32xf32>
    %45 = arith.addf %26, %44 : vector<4x32xf32>
    %46 = vector.extract_strided_slice %6 {offsets = [0, 16], sizes = [4, 8], strides = [1, 1]} : vector<4x96xf32> to vector<4x8xf32>
    %47 = vector.extract_strided_slice %6 {offsets = [0, 48], sizes = [4, 8], strides = [1, 1]} : vector<4x96xf32> to vector<4x8xf32>
    %48 = vector.extract_strided_slice %6 {offsets = [0, 80], sizes = [4, 8], strides = [1, 1]} : vector<4x96xf32> to vector<4x8xf32>
    %cst_22 = arith.constant dense<0.000000e+00> : vector<4x4xf32>
    %49 = tpu.matmul %46, %47, %cst_22 {dimension_numbers = #tpu.dot_dimension_numbers<[1], [1], [0], [0], [0, 0, 1, 0], [], []>} : vector<4x8xf32>, vector<4x8xf32>, vector<4x4xf32> -> vector<4x4xf32>
    %cst_23 = arith.constant dense<0xFF800000> : vector<4xf32>
    %50 = vector.multi_reduction <maximumf>, %49, %cst_23 [1] : vector<4x4xf32> to vector<4xf32>
    %51 = vector.shape_cast %50 : vector<4xf32> to vector<4x1xf32>
    %52 = vector.broadcast %51 : vector<4x1xf32> to vector<4x4xf32>
    %53 = arith.subf %49, %52 : vector<4x4xf32>
    %54 = math.exp %53 : vector<4x4xf32>
    %cst_24 = arith.constant dense<0.000000e+00> : vector<4xf32>
    %55 = vector.multi_reduction <add>, %54, %cst_24 [1] : vector<4x4xf32> to vector<4xf32>
    %56 = vector.shape_cast %55 : vector<4xf32> to vector<4x1xf32>
    %57 = tpu.reciprocal %56 {approx = true} : vector<4x1xf32> -> vector<4x1xf32>
    %58 = vector.broadcast %57 : vector<4x1xf32> to vector<4x4xf32>
    %59 = arith.mulf %54, %58 : vector<4x4xf32>
    %cst_25 = arith.constant dense<0.000000e+00> : vector<4x8xf32>
    %60 = tpu.matmul %59, %48, %cst_25 {dimension_numbers = #tpu.dot_dimension_numbers<[1], [0], [0], [1], [0, 0, 1, 1], [], []>} : vector<4x4xf32>, vector<4x8xf32>, vector<4x8xf32> -> vector<4x8xf32>
    %c2 = arith.constant 2 : index
    %c0_26 = arith.constant 0 : index
    %c0_27 = arith.constant 0 : index
    %61 = vector.load %arg4[%c2, %c0_26, %c0_27] : memref<4x8x32xf32, #tpu.memory_space<vmem>>, vector<1x8x32xf32>
    %62 = vector.shape_cast %61 : vector<1x8x32xf32> to vector<8x32xf32>
    %cst_28 = arith.constant dense<0.000000e+00> : vector<4x32xf32>
    %63 = tpu.matmul %60, %62, %cst_28 {dimension_numbers = #tpu.dot_dimension_numbers<[1], [0], [0], [1], [0, 0, 1, 1], [], []>} : vector<4x8xf32>, vector<8x32xf32>, vector<4x32xf32> -> vector<4x32xf32>
    %64 = arith.addf %45, %63 : vector<4x32xf32>
    %65 = vector.extract_strided_slice %6 {offsets = [0, 24], sizes = [4, 8], strides = [1, 1]} : vector<4x96xf32> to vector<4x8xf32>
    %66 = vector.extract_strided_slice %6 {offsets = [0, 56], sizes = [4, 8], strides = [1, 1]} : vector<4x96xf32> to vector<4x8xf32>
    %67 = vector.extract_strided_slice %6 {offsets = [0, 88], sizes = [4, 8], strides = [1, 1]} : vector<4x96xf32> to vector<4x8xf32>
    %cst_29 = arith.constant dense<0.000000e+00> : vector<4x4xf32>
    %68 = tpu.matmul %65, %66, %cst_29 {dimension_numbers = #tpu.dot_dimension_numbers<[1], [1], [0], [0], [0, 0, 1, 0], [], []>} : vector<4x8xf32>, vector<4x8xf32>, vector<4x4xf32> -> vector<4x4xf32>
    %cst_30 = arith.constant dense<0xFF800000> : vector<4xf32>
    %69 = vector.multi_reduction <maximumf>, %68, %cst_30 [1] : vector<4x4xf32> to vector<4xf32>
    %70 = vector.shape_cast %69 : vector<4xf32> to vector<4x1xf32>
    %71 = vector.broadcast %70 : vector<4x1xf32> to vector<4x4xf32>
    %72 = arith.subf %68, %71 : vector<4x4xf32>
    %73 = math.exp %72 : vector<4x4xf32>
    %cst_31 = arith.constant dense<0.000000e+00> : vector<4xf32>
    %74 = vector.multi_reduction <add>, %73, %cst_31 [1] : vector<4x4xf32> to vector<4xf32>
    %75 = vector.shape_cast %74 : vector<4xf32> to vector<4x1xf32>
    %76 = tpu.reciprocal %75 {approx = true} : vector<4x1xf32> -> vector<4x1xf32>
    %77 = vector.broadcast %76 : vector<4x1xf32> to vector<4x4xf32>
    %78 = arith.mulf %73, %77 : vector<4x4xf32>
    %cst_32 = arith.constant dense<0.000000e+00> : vector<4x8xf32>
    %79 = tpu.matmul %78, %67, %cst_32 {dimension_numbers = #tpu.dot_dimension_numbers<[1], [0], [0], [1], [0, 0, 1, 1], [], []>} : vector<4x4xf32>, vector<4x8xf32>, vector<4x8xf32> -> vector<4x8xf32>
    %c3 = arith.constant 3 : index
    %c0_33 = arith.constant 0 : index
    %c0_34 = arith.constant 0 : index
    %80 = vector.load %arg4[%c3, %c0_33, %c0_34] : memref<4x8x32xf32, #tpu.memory_space<vmem>>, vector<1x8x32xf32>
    %81 = vector.shape_cast %80 : vector<1x8x32xf32> to vector<8x32xf32>
    %cst_35 = arith.constant dense<0.000000e+00> : vector<4x32xf32>
    %82 = tpu.matmul %79, %81, %cst_35 {dimension_numbers = #tpu.dot_dimension_numbers<[1], [0], [0], [1], [0, 0, 1, 1], [], []>} : vector<4x8xf32>, vector<8x32xf32>, vector<4x32xf32> -> vector<4x32xf32>
    %83 = arith.addf %64, %82 : vector<4x32xf32>
    %c0_36 = arith.constant 0 : index
    %c0_37 = arith.constant 0 : index
    %84 = vector.load %arg5[%c0_36, %c0_37] : memref<1x32xf32, #tpu.memory_space<vmem>>, vector<1x32xf32>
    %85 = vector.broadcast %84 : vector<1x32xf32> to vector<4x32xf32>
    %86 = arith.addf %83, %85 : vector<4x32xf32>
    %c0_38 = arith.constant 0 : index
    %c0_39 = arith.constant 0 : index
    %c0_40 = arith.constant 0 : index
    %87 = vector.load %arg6[%c0_38, %c0_39, %c0_40] : memref<1x4x32xf32, #tpu.memory_space<vmem>>, vector<1x4x32xf32>
    %88 = vector.shape_cast %87 : vector<1x4x32xf32> to vector<4x32xf32>
    %89 = vector.shape_cast %86 : vector<4x32xf32> to vector<1x4x32xf32>
    tpu.vector_store %arg6[%c0_38, %c0_39, %c0_40], %89 {strides = array<i32>} : memref<1x4x32xf32, #tpu.memory_space<vmem>>, vector<1x4x32xf32>,
    return
  }
  func.func @transform_0(%arg0: i32) -> (i32, i32, i32) {
    %c0_i32 = arith.constant 0 : i32
    %c0_i32_0 = arith.constant 0 : i32
    %c0_i32_1 = arith.constant 0 : i32
    return %arg0, %c0_i32, %c0_i32_0 : i32, i32, i32
  }
  func.func @transform_1(%arg0: i32) -> (i32, i32) {
    %c0_i32 = arith.constant 0 : i32
    %c0_i32_0 = arith.constant 0 : i32
    %c0_i32_1 = arith.constant 0 : i32
    return %c0_i32, %c0_i32_0 : i32, i32
  }
  func.func @transform_2(%arg0: i32) -> (i32, i32) {
    %c0_i32 = arith.constant 0 : i32
    %c0_i32_0 = arith.constant 0 : i32
    %c0_i32_1 = arith.constant 0 : i32
    return %c0_i32, %c0_i32_0 : i32, i32
  }
  func.func @transform_3(%arg0: i32) -> (i32, i32, i32) {
    %c0_i32 = arith.constant 0 : i32
    %c0_i32_0 = arith.constant 0 : i32
    %c0_i32_1 = arith.constant 0 : i32
    %c0_i32_2 = arith.constant 0 : i32
    return %c0_i32, %c0_i32_0, %c0_i32_1 : i32, i32, i32
  }
  func.func @transform_4(%arg0: i32) -> (i32, i32) {
    %c0_i32 = arith.constant 0 : i32
    %c0_i32_0 = arith.constant 0 : i32
    %c0_i32_1 = arith.constant 0 : i32
    return %c0_i32, %c0_i32_0 : i32, i32
  }
  func.func @transform_5(%arg0: i32) -> (i32, i32, i32) {
    %c0_i32 = arith.constant 0 : i32
    %c0_i32_0 = arith.constant 0 : i32
    %c0_i32_1 = arith.constant 0 : i32
    return %arg0, %c0_i32, %c0_i32_0 : i32, i32, i32
  }
}

module attributes {stable_mosaic.version = 11 : i64} {
  func.func @_res_out_kernel(%arg0: i32, %arg1: memref<1x1x32x342xbf16, #tpu.memory_space<vmem>>, %arg2: memref<9x3x32xbf16, #tpu.memory_space<vmem>>, %arg3: memref<3x1xf32, #tpu.memory_space<vmem>>, %arg4: memref<9x3x3xbf16, #tpu.memory_space<vmem>>, %arg5: memref<3x1xf32, #tpu.memory_space<vmem>>, %arg6: memref<1x3x288xf32, #tpu.memory_space<vmem>>, %arg7: memref<3x342xbf16, #tpu.memory_space<vmem>>) attributes {dimension_semantics = [#tpu.dimension_semantics<parallel>], iteration_bounds = array<i64: 2>, scalar_prefetch = 0 : i64, scratch_operands = 1 : i64, tpu.core_type = #tpu.core_type<tc>, window_params = [{transform_indices = @transform_0, window_bounds = array<i64: 1, 1, 32, 342>}, {pipeline_mode = #tpu.pipeline_mode<synchronous>, transform_indices = @transform_1, window_bounds = array<i64: 9, 3, 32>}, {pipeline_mode = #tpu.pipeline_mode<synchronous>, transform_indices = @transform_2, window_bounds = array<i64: 3, 1>}, {pipeline_mode = #tpu.pipeline_mode<synchronous>, transform_indices = @transform_3, window_bounds = array<i64: 9, 3, 3>}, {pipeline_mode = #tpu.pipeline_mode<synchronous>, transform_indices = @transform_4, window_bounds = array<i64: 3, 1>}, {transform_indices = @transform_5, window_bounds = array<i64: 1, 3, 288>}]} {
    %cst = arith.constant 0.000000e+00 : f32
    %0 = vector.broadcast %cst : f32 to vector<3x288xf32>
    %c0 = arith.constant 0 : index
    %c0_0 = arith.constant 0 : index
    %c0_1 = arith.constant 0 : index
    %1 = vector.load %arg2[%c0, %c0_0, %c0_1] : memref<9x3x32xbf16, #tpu.memory_space<vmem>>, vector<1x3x32xbf16>
    %2 = vector.shape_cast %1 : vector<1x3x32xbf16> to vector<3x32xbf16>
    %c0_2 = arith.constant 0 : index
    %c0_3 = arith.constant 0 : index
    %c0_4 = arith.constant 0 : index
    %c0_5 = arith.constant 0 : index
    %3 = vector.load %arg1[%c0_2, %c0_3, %c0_4, %c0_5] : memref<1x1x32x342xbf16, #tpu.memory_space<vmem>>, vector<1x1x32x288xbf16>
    %4 = vector.shape_cast %3 : vector<1x1x32x288xbf16> to vector<32x288xbf16>
    %cst_6 = arith.constant dense<0.000000e+00> : vector<3x288xf32>
    %5 = tpu.matmul %2, %4, %cst_6 {dimension_numbers = #tpu.dot_dimension_numbers<[1], [0], [0], [1], [0, 0, 1, 1], [], []>} : vector<3x32xbf16>, vector<32x288xbf16>, vector<3x288xf32> -> vector<3x288xf32>
    %6 = arith.addf %0, %5 : vector<3x288xf32>
    %c1 = arith.constant 1 : index
    %c0_7 = arith.constant 0 : index
    %c0_8 = arith.constant 0 : index
    %7 = vector.load %arg2[%c1, %c0_7, %c0_8] : memref<9x3x32xbf16, #tpu.memory_space<vmem>>, vector<1x3x32xbf16>
    %8 = vector.shape_cast %7 : vector<1x3x32xbf16> to vector<3x32xbf16>
    %c0_9 = arith.constant 0 : index
    %c0_10 = arith.constant 0 : index
    %c0_11 = arith.constant 0 : index
    %c1_12 = arith.constant 1 : index
    %9 = vector.load %arg1[%c0_9, %c0_10, %c0_11, %c1_12] : memref<1x1x32x342xbf16, #tpu.memory_space<vmem>>, vector<1x1x32x288xbf16>
    %10 = vector.shape_cast %9 : vector<1x1x32x288xbf16> to vector<32x288xbf16>
    %cst_13 = arith.constant dense<0.000000e+00> : vector<3x288xf32>
    %11 = tpu.matmul %8, %10, %cst_13 {dimension_numbers = #tpu.dot_dimension_numbers<[1], [0], [0], [1], [0, 0, 1, 1], [], []>} : vector<3x32xbf16>, vector<32x288xbf16>, vector<3x288xf32> -> vector<3x288xf32>
    %12 = arith.addf %6, %11 : vector<3x288xf32>
    %c2 = arith.constant 2 : index
    %c0_14 = arith.constant 0 : index
    %c0_15 = arith.constant 0 : index
    %13 = vector.load %arg2[%c2, %c0_14, %c0_15] : memref<9x3x32xbf16, #tpu.memory_space<vmem>>, vector<1x3x32xbf16>
    %14 = vector.shape_cast %13 : vector<1x3x32xbf16> to vector<3x32xbf16>
    %c0_16 = arith.constant 0 : index
    %c0_17 = arith.constant 0 : index
    %c0_18 = arith.constant 0 : index
    %c2_19 = arith.constant 2 : index
    %15 = vector.load %arg1[%c0_16, %c0_17, %c0_18, %c2_19] : memref<1x1x32x342xbf16, #tpu.memory_space<vmem>>, vector<1x1x32x288xbf16>
    %16 = vector.shape_cast %15 : vector<1x1x32x288xbf16> to vector<32x288xbf16>
    %cst_20 = arith.constant dense<0.000000e+00> : vector<3x288xf32>
    %17 = tpu.matmul %14, %16, %cst_20 {dimension_numbers = #tpu.dot_dimension_numbers<[1], [0], [0], [1], [0, 0, 1, 1], [], []>} : vector<3x32xbf16>, vector<32x288xbf16>, vector<3x288xf32> -> vector<3x288xf32>
    %18 = arith.addf %12, %17 : vector<3x288xf32>
    %c3 = arith.constant 3 : index
    %c0_21 = arith.constant 0 : index
    %c0_22 = arith.constant 0 : index
    %19 = vector.load %arg2[%c3, %c0_21, %c0_22] : memref<9x3x32xbf16, #tpu.memory_space<vmem>>, vector<1x3x32xbf16>
    %20 = vector.shape_cast %19 : vector<1x3x32xbf16> to vector<3x32xbf16>
    %c0_23 = arith.constant 0 : index
    %c0_24 = arith.constant 0 : index
    %c0_25 = arith.constant 0 : index
    %c18 = arith.constant 18 : index
    %21 = vector.load %arg1[%c0_23, %c0_24, %c0_25, %c18] : memref<1x1x32x342xbf16, #tpu.memory_space<vmem>>, vector<1x1x32x288xbf16>
    %22 = vector.shape_cast %21 : vector<1x1x32x288xbf16> to vector<32x288xbf16>
    %cst_26 = arith.constant dense<0.000000e+00> : vector<3x288xf32>
    %23 = tpu.matmul %20, %22, %cst_26 {dimension_numbers = #tpu.dot_dimension_numbers<[1], [0], [0], [1], [0, 0, 1, 1], [], []>} : vector<3x32xbf16>, vector<32x288xbf16>, vector<3x288xf32> -> vector<3x288xf32>
    %24 = arith.addf %18, %23 : vector<3x288xf32>
    %c4 = arith.constant 4 : index
    %c0_27 = arith.constant 0 : index
    %c0_28 = arith.constant 0 : index
    %25 = vector.load %arg2[%c4, %c0_27, %c0_28] : memref<9x3x32xbf16, #tpu.memory_space<vmem>>, vector<1x3x32xbf16>
    %26 = vector.shape_cast %25 : vector<1x3x32xbf16> to vector<3x32xbf16>
    %c0_29 = arith.constant 0 : index
    %c0_30 = arith.constant 0 : index
    %c0_31 = arith.constant 0 : index
    %c19 = arith.constant 19 : index
    %27 = vector.load %arg1[%c0_29, %c0_30, %c0_31, %c19] : memref<1x1x32x342xbf16, #tpu.memory_space<vmem>>, vector<1x1x32x288xbf16>
    %28 = vector.shape_cast %27 : vector<1x1x32x288xbf16> to vector<32x288xbf16>
    %cst_32 = arith.constant dense<0.000000e+00> : vector<3x288xf32>
    %29 = tpu.matmul %26, %28, %cst_32 {dimension_numbers = #tpu.dot_dimension_numbers<[1], [0], [0], [1], [0, 0, 1, 1], [], []>} : vector<3x32xbf16>, vector<32x288xbf16>, vector<3x288xf32> -> vector<3x288xf32>
    %30 = arith.addf %24, %29 : vector<3x288xf32>
    %c5 = arith.constant 5 : index
    %c0_33 = arith.constant 0 : index
    %c0_34 = arith.constant 0 : index
    %31 = vector.load %arg2[%c5, %c0_33, %c0_34] : memref<9x3x32xbf16, #tpu.memory_space<vmem>>, vector<1x3x32xbf16>
    %32 = vector.shape_cast %31 : vector<1x3x32xbf16> to vector<3x32xbf16>
    %c0_35 = arith.constant 0 : index
    %c0_36 = arith.constant 0 : index
    %c0_37 = arith.constant 0 : index
    %c20 = arith.constant 20 : index
    %33 = vector.load %arg1[%c0_35, %c0_36, %c0_37, %c20] : memref<1x1x32x342xbf16, #tpu.memory_space<vmem>>, vector<1x1x32x288xbf16>
    %34 = vector.shape_cast %33 : vector<1x1x32x288xbf16> to vector<32x288xbf16>
    %cst_38 = arith.constant dense<0.000000e+00> : vector<3x288xf32>
    %35 = tpu.matmul %32, %34, %cst_38 {dimension_numbers = #tpu.dot_dimension_numbers<[1], [0], [0], [1], [0, 0, 1, 1], [], []>} : vector<3x32xbf16>, vector<32x288xbf16>, vector<3x288xf32> -> vector<3x288xf32>
    %36 = arith.addf %30, %35 : vector<3x288xf32>
    %c6 = arith.constant 6 : index
    %c0_39 = arith.constant 0 : index
    %c0_40 = arith.constant 0 : index
    %37 = vector.load %arg2[%c6, %c0_39, %c0_40] : memref<9x3x32xbf16, #tpu.memory_space<vmem>>, vector<1x3x32xbf16>
    %38 = vector.shape_cast %37 : vector<1x3x32xbf16> to vector<3x32xbf16>
    %c0_41 = arith.constant 0 : index
    %c0_42 = arith.constant 0 : index
    %c0_43 = arith.constant 0 : index
    %c36 = arith.constant 36 : index
    %39 = vector.load %arg1[%c0_41, %c0_42, %c0_43, %c36] : memref<1x1x32x342xbf16, #tpu.memory_space<vmem>>, vector<1x1x32x288xbf16>
    %40 = vector.shape_cast %39 : vector<1x1x32x288xbf16> to vector<32x288xbf16>
    %cst_44 = arith.constant dense<0.000000e+00> : vector<3x288xf32>
    %41 = tpu.matmul %38, %40, %cst_44 {dimension_numbers = #tpu.dot_dimension_numbers<[1], [0], [0], [1], [0, 0, 1, 1], [], []>} : vector<3x32xbf16>, vector<32x288xbf16>, vector<3x288xf32> -> vector<3x288xf32>
    %42 = arith.addf %36, %41 : vector<3x288xf32>
    %c7 = arith.constant 7 : index
    %c0_45 = arith.constant 0 : index
    %c0_46 = arith.constant 0 : index
    %43 = vector.load %arg2[%c7, %c0_45, %c0_46] : memref<9x3x32xbf16, #tpu.memory_space<vmem>>, vector<1x3x32xbf16>
    %44 = vector.shape_cast %43 : vector<1x3x32xbf16> to vector<3x32xbf16>
    %c0_47 = arith.constant 0 : index
    %c0_48 = arith.constant 0 : index
    %c0_49 = arith.constant 0 : index
    %c37 = arith.constant 37 : index
    %45 = vector.load %arg1[%c0_47, %c0_48, %c0_49, %c37] : memref<1x1x32x342xbf16, #tpu.memory_space<vmem>>, vector<1x1x32x288xbf16>
    %46 = vector.shape_cast %45 : vector<1x1x32x288xbf16> to vector<32x288xbf16>
    %cst_50 = arith.constant dense<0.000000e+00> : vector<3x288xf32>
    %47 = tpu.matmul %44, %46, %cst_50 {dimension_numbers = #tpu.dot_dimension_numbers<[1], [0], [0], [1], [0, 0, 1, 1], [], []>} : vector<3x32xbf16>, vector<32x288xbf16>, vector<3x288xf32> -> vector<3x288xf32>
    %48 = arith.addf %42, %47 : vector<3x288xf32>
    %c8 = arith.constant 8 : index
    %c0_51 = arith.constant 0 : index
    %c0_52 = arith.constant 0 : index
    %49 = vector.load %arg2[%c8, %c0_51, %c0_52] : memref<9x3x32xbf16, #tpu.memory_space<vmem>>, vector<1x3x32xbf16>
    %50 = vector.shape_cast %49 : vector<1x3x32xbf16> to vector<3x32xbf16>
    %c0_53 = arith.constant 0 : index
    %c0_54 = arith.constant 0 : index
    %c0_55 = arith.constant 0 : index
    %c38 = arith.constant 38 : index
    %51 = vector.load %arg1[%c0_53, %c0_54, %c0_55, %c38] : memref<1x1x32x342xbf16, #tpu.memory_space<vmem>>, vector<1x1x32x288xbf16>
    %52 = vector.shape_cast %51 : vector<1x1x32x288xbf16> to vector<32x288xbf16>
    %cst_56 = arith.constant dense<0.000000e+00> : vector<3x288xf32>
    %53 = tpu.matmul %50, %52, %cst_56 {dimension_numbers = #tpu.dot_dimension_numbers<[1], [0], [0], [1], [0, 0, 1, 1], [], []>} : vector<3x32xbf16>, vector<32x288xbf16>, vector<3x288xf32> -> vector<3x288xf32>
    %54 = arith.addf %48, %53 : vector<3x288xf32>
    %c0_57 = arith.constant 0 : index
    %c0_58 = arith.constant 0 : index
    %55 = vector.load %arg3[%c0_57, %c0_58] : memref<3x1xf32, #tpu.memory_space<vmem>>, vector<3x1xf32>
    %56 = vector.broadcast %55 : vector<3x1xf32> to vector<3x288xf32>
    %57 = arith.addf %54, %56 : vector<3x288xf32>
    %58 = tpu.iota {dimensions = array<i32: 1>} : vector<1x288xi32>
    %c18_i32 = arith.constant 18 : i32
    %c0_i32 = arith.constant 0 : i32
    %59 = arith.cmpi eq, %c18_i32, %c0_i32 : i32
    %c1_i32 = arith.constant 1 : i32
    %60 = arith.select %59, %c1_i32, %c18_i32 : i32
    %61 = vector.broadcast %60 : i32 to vector<1x288xi32>
    %62 = arith.remsi %58, %61 : vector<1x288xi32>
    %c0_i32_59 = arith.constant 0 : i32
    %63 = vector.broadcast %c0_i32_59 : i32 to vector<1x288xi32>
    %64 = arith.cmpi ne, %62, %63 : vector<1x288xi32>
    %c0_i32_60 = arith.constant 0 : i32
    %65 = vector.broadcast %c0_i32_60 : i32 to vector<1x288xi32>
    %66 = arith.cmpi slt, %62, %65 : vector<1x288xi32>
    %c0_i32_61 = arith.constant 0 : i32
    %67 = arith.cmpi slt, %60, %c0_i32_61 : i32
    %68 = vector.broadcast %67 : i1 to vector<1x288xi1>
    %69 = vector.broadcast %68 : vector<1x288xi1> to vector<1x288xi1>
    %70 = arith.xori %66, %69 : vector<1x288xi1>
    %71 = arith.andi %70, %64 : vector<1x288xi1>
    %72 = vector.broadcast %60 : i32 to vector<1x288xi32>
    %73 = arith.addi %62, %72 : vector<1x288xi32>
    %74 = arith.select %71, %73, %62 : vector<1x288xi1>, vector<1x288xi32>
    %c16_i32 = arith.constant 16 : i32
    %75 = vector.broadcast %c16_i32 : i32 to vector<1x288xi32>
    %76 = arith.cmpi slt, %74, %75 : vector<1x288xi32>
    %cst_62 = arith.constant 0.000000e+00 : f32
    %77 = vector.shape_cast %76 : vector<1x288xi1> to vector<1x288xi1>
    %78 = vector.broadcast %77 : vector<1x288xi1> to vector<3x288xi1>
    %79 = vector.broadcast %cst_62 : f32 to vector<3x288xf32>
    %80 = arith.select %78, %57, %79 : vector<3x288xi1>, vector<3x288xf32>
    %cst_63 = arith.constant 0.000000e+00 : bf16
    %81 = vector.broadcast %cst_63 : bf16 to vector<3x342xbf16>
    %c0_64 = arith.constant 0 : index
    %c0_65 = arith.constant 0 : index
    %82 = vector.load %arg7[%c0_64, %c0_65] : memref<3x342xbf16, #tpu.memory_space<vmem>>, vector<3x342xbf16>
    tpu.vector_store %arg7[%c0_64, %c0_65], %81 {strides = array<i32>} : memref<3x342xbf16, #tpu.memory_space<vmem>>, vector<3x342xbf16>,
    %83 = arith.truncf %80 : vector<3x288xf32> to vector<3x288xbf16>
    %c0_66 = arith.constant 0 : index
    %c19_67 = arith.constant 19 : index
    %84 = vector.load %arg7[%c0_66, %c19_67] : memref<3x342xbf16, #tpu.memory_space<vmem>>, vector<3x288xbf16>
    tpu.vector_store %arg7[%c0_66, %c19_67], %83 {strides = array<i32>} : memref<3x342xbf16, #tpu.memory_space<vmem>>, vector<3x288xbf16>,
    %cst_68 = arith.constant 0.000000e+00 : f32
    %85 = vector.broadcast %cst_68 : f32 to vector<3x288xf32>
    %c0_69 = arith.constant 0 : index
    %c0_70 = arith.constant 0 : index
    %c0_71 = arith.constant 0 : index
    %86 = vector.load %arg4[%c0_69, %c0_70, %c0_71] : memref<9x3x3xbf16, #tpu.memory_space<vmem>>, vector<1x3x3xbf16>
    %87 = vector.shape_cast %86 : vector<1x3x3xbf16> to vector<3x3xbf16>
    %c0_72 = arith.constant 0 : index
    %c0_73 = arith.constant 0 : index
    %88 = vector.load %arg7[%c0_72, %c0_73] : memref<3x342xbf16, #tpu.memory_space<vmem>>, vector<3x288xbf16>
    %cst_74 = arith.constant dense<0.000000e+00> : vector<3x288xf32>
    %89 = tpu.matmul %87, %88, %cst_74 {dimension_numbers = #tpu.dot_dimension_numbers<[1], [0], [0], [1], [0, 0, 1, 1], [], []>} : vector<3x3xbf16>, vector<3x288xbf16>, vector<3x288xf32> -> vector<3x288xf32>
    %90 = arith.addf %85, %89 : vector<3x288xf32>
    %c1_75 = arith.constant 1 : index
    %c0_76 = arith.constant 0 : index
    %c0_77 = arith.constant 0 : index
    %91 = vector.load %arg4[%c1_75, %c0_76, %c0_77] : memref<9x3x3xbf16, #tpu.memory_space<vmem>>, vector<1x3x3xbf16>
    %92 = vector.shape_cast %91 : vector<1x3x3xbf16> to vector<3x3xbf16>
    %c0_78 = arith.constant 0 : index
    %c1_79 = arith.constant 1 : index
    %93 = vector.load %arg7[%c0_78, %c1_79] : memref<3x342xbf16, #tpu.memory_space<vmem>>, vector<3x288xbf16>
    %cst_80 = arith.constant dense<0.000000e+00> : vector<3x288xf32>
    %94 = tpu.matmul %92, %93, %cst_80 {dimension_numbers = #tpu.dot_dimension_numbers<[1], [0], [0], [1], [0, 0, 1, 1], [], []>} : vector<3x3xbf16>, vector<3x288xbf16>, vector<3x288xf32> -> vector<3x288xf32>
    %95 = arith.addf %90, %94 : vector<3x288xf32>
    %c2_81 = arith.constant 2 : index
    %c0_82 = arith.constant 0 : index
    %c0_83 = arith.constant 0 : index
    %96 = vector.load %arg4[%c2_81, %c0_82, %c0_83] : memref<9x3x3xbf16, #tpu.memory_space<vmem>>, vector<1x3x3xbf16>
    %97 = vector.shape_cast %96 : vector<1x3x3xbf16> to vector<3x3xbf16>
    %c0_84 = arith.constant 0 : index
    %c2_85 = arith.constant 2 : index
    %98 = vector.load %arg7[%c0_84, %c2_85] : memref<3x342xbf16, #tpu.memory_space<vmem>>, vector<3x288xbf16>
    %cst_86 = arith.constant dense<0.000000e+00> : vector<3x288xf32>
    %99 = tpu.matmul %97, %98, %cst_86 {dimension_numbers = #tpu.dot_dimension_numbers<[1], [0], [0], [1], [0, 0, 1, 1], [], []>} : vector<3x3xbf16>, vector<3x288xbf16>, vector<3x288xf32> -> vector<3x288xf32>
    %100 = arith.addf %95, %99 : vector<3x288xf32>
    %c3_87 = arith.constant 3 : index
    %c0_88 = arith.constant 0 : index
    %c0_89 = arith.constant 0 : index
    %101 = vector.load %arg4[%c3_87, %c0_88, %c0_89] : memref<9x3x3xbf16, #tpu.memory_space<vmem>>, vector<1x3x3xbf16>
    %102 = vector.shape_cast %101 : vector<1x3x3xbf16> to vector<3x3xbf16>
    %c0_90 = arith.constant 0 : index
    %c18_91 = arith.constant 18 : index
    %103 = vector.load %arg7[%c0_90, %c18_91] : memref<3x342xbf16, #tpu.memory_space<vmem>>, vector<3x288xbf16>
    %cst_92 = arith.constant dense<0.000000e+00> : vector<3x288xf32>
    %104 = tpu.matmul %102, %103, %cst_92 {dimension_numbers = #tpu.dot_dimension_numbers<[1], [0], [0], [1], [0, 0, 1, 1], [], []>} : vector<3x3xbf16>, vector<3x288xbf16>, vector<3x288xf32> -> vector<3x288xf32>
    %105 = arith.addf %100, %104 : vector<3x288xf32>
    %c4_93 = arith.constant 4 : index
    %c0_94 = arith.constant 0 : index
    %c0_95 = arith.constant 0 : index
    %106 = vector.load %arg4[%c4_93, %c0_94, %c0_95] : memref<9x3x3xbf16, #tpu.memory_space<vmem>>, vector<1x3x3xbf16>
    %107 = vector.shape_cast %106 : vector<1x3x3xbf16> to vector<3x3xbf16>
    %c0_96 = arith.constant 0 : index
    %c19_97 = arith.constant 19 : index
    %108 = vector.load %arg7[%c0_96, %c19_97] : memref<3x342xbf16, #tpu.memory_space<vmem>>, vector<3x288xbf16>
    %cst_98 = arith.constant dense<0.000000e+00> : vector<3x288xf32>
    %109 = tpu.matmul %107, %108, %cst_98 {dimension_numbers = #tpu.dot_dimension_numbers<[1], [0], [0], [1], [0, 0, 1, 1], [], []>} : vector<3x3xbf16>, vector<3x288xbf16>, vector<3x288xf32> -> vector<3x288xf32>
    %110 = arith.addf %105, %109 : vector<3x288xf32>
    %c5_99 = arith.constant 5 : index
    %c0_100 = arith.constant 0 : index
    %c0_101 = arith.constant 0 : index
    %111 = vector.load %arg4[%c5_99, %c0_100, %c0_101] : memref<9x3x3xbf16, #tpu.memory_space<vmem>>, vector<1x3x3xbf16>
    %112 = vector.shape_cast %111 : vector<1x3x3xbf16> to vector<3x3xbf16>
    %c0_102 = arith.constant 0 : index
    %c20_103 = arith.constant 20 : index
    %113 = vector.load %arg7[%c0_102, %c20_103] : memref<3x342xbf16, #tpu.memory_space<vmem>>, vector<3x288xbf16>
    %cst_104 = arith.constant dense<0.000000e+00> : vector<3x288xf32>
    %114 = tpu.matmul %112, %113, %cst_104 {dimension_numbers = #tpu.dot_dimension_numbers<[1], [0], [0], [1], [0, 0, 1, 1], [], []>} : vector<3x3xbf16>, vector<3x288xbf16>, vector<3x288xf32> -> vector<3x288xf32>
    %115 = arith.addf %110, %114 : vector<3x288xf32>
    %c6_105 = arith.constant 6 : index
    %c0_106 = arith.constant 0 : index
    %c0_107 = arith.constant 0 : index
    %116 = vector.load %arg4[%c6_105, %c0_106, %c0_107] : memref<9x3x3xbf16, #tpu.memory_space<vmem>>, vector<1x3x3xbf16>
    %117 = vector.shape_cast %116 : vector<1x3x3xbf16> to vector<3x3xbf16>
    %c0_108 = arith.constant 0 : index
    %c36_109 = arith.constant 36 : index
    %118 = vector.load %arg7[%c0_108, %c36_109] : memref<3x342xbf16, #tpu.memory_space<vmem>>, vector<3x288xbf16>
    %cst_110 = arith.constant dense<0.000000e+00> : vector<3x288xf32>
    %119 = tpu.matmul %117, %118, %cst_110 {dimension_numbers = #tpu.dot_dimension_numbers<[1], [0], [0], [1], [0, 0, 1, 1], [], []>} : vector<3x3xbf16>, vector<3x288xbf16>, vector<3x288xf32> -> vector<3x288xf32>
    %120 = arith.addf %115, %119 : vector<3x288xf32>
    %c7_111 = arith.constant 7 : index
    %c0_112 = arith.constant 0 : index
    %c0_113 = arith.constant 0 : index
    %121 = vector.load %arg4[%c7_111, %c0_112, %c0_113] : memref<9x3x3xbf16, #tpu.memory_space<vmem>>, vector<1x3x3xbf16>
    %122 = vector.shape_cast %121 : vector<1x3x3xbf16> to vector<3x3xbf16>
    %c0_114 = arith.constant 0 : index
    %c37_115 = arith.constant 37 : index
    %123 = vector.load %arg7[%c0_114, %c37_115] : memref<3x342xbf16, #tpu.memory_space<vmem>>, vector<3x288xbf16>
    %cst_116 = arith.constant dense<0.000000e+00> : vector<3x288xf32>
    %124 = tpu.matmul %122, %123, %cst_116 {dimension_numbers = #tpu.dot_dimension_numbers<[1], [0], [0], [1], [0, 0, 1, 1], [], []>} : vector<3x3xbf16>, vector<3x288xbf16>, vector<3x288xf32> -> vector<3x288xf32>
    %125 = arith.addf %120, %124 : vector<3x288xf32>
    %c8_117 = arith.constant 8 : index
    %c0_118 = arith.constant 0 : index
    %c0_119 = arith.constant 0 : index
    %126 = vector.load %arg4[%c8_117, %c0_118, %c0_119] : memref<9x3x3xbf16, #tpu.memory_space<vmem>>, vector<1x3x3xbf16>
    %127 = vector.shape_cast %126 : vector<1x3x3xbf16> to vector<3x3xbf16>
    %c0_120 = arith.constant 0 : index
    %c38_121 = arith.constant 38 : index
    %128 = vector.load %arg7[%c0_120, %c38_121] : memref<3x342xbf16, #tpu.memory_space<vmem>>, vector<3x288xbf16>
    %cst_122 = arith.constant dense<0.000000e+00> : vector<3x288xf32>
    %129 = tpu.matmul %127, %128, %cst_122 {dimension_numbers = #tpu.dot_dimension_numbers<[1], [0], [0], [1], [0, 0, 1, 1], [], []>} : vector<3x3xbf16>, vector<3x288xbf16>, vector<3x288xf32> -> vector<3x288xf32>
    %130 = arith.addf %125, %129 : vector<3x288xf32>
    %c0_123 = arith.constant 0 : index
    %c0_124 = arith.constant 0 : index
    %131 = vector.load %arg5[%c0_123, %c0_124] : memref<3x1xf32, #tpu.memory_space<vmem>>, vector<3x1xf32>
    %132 = vector.broadcast %131 : vector<3x1xf32> to vector<3x288xf32>
    %133 = arith.addf %130, %132 : vector<3x288xf32>
    %134 = math.tanh %133 : vector<3x288xf32>
    %c0_125 = arith.constant 0 : index
    %c0_126 = arith.constant 0 : index
    %c0_127 = arith.constant 0 : index
    %135 = vector.load %arg6[%c0_125, %c0_126, %c0_127] : memref<1x3x288xf32, #tpu.memory_space<vmem>>, vector<1x3x288xf32>
    %136 = vector.shape_cast %135 : vector<1x3x288xf32> to vector<3x288xf32>
    %137 = vector.shape_cast %134 : vector<3x288xf32> to vector<1x3x288xf32>
    tpu.vector_store %arg6[%c0_125, %c0_126, %c0_127], %137 {strides = array<i32>} : memref<1x3x288xf32, #tpu.memory_space<vmem>>, vector<1x3x288xf32>,
    return
  }
  func.func @transform_0(%arg0: i32) -> (i32, i32, i32, i32) {
    %c0_i32 = arith.constant 0 : i32
    %c0_i32_0 = arith.constant 0 : i32
    %c0_i32_1 = arith.constant 0 : i32
    %c0_i32_2 = arith.constant 0 : i32
    return %arg0, %c0_i32, %c0_i32_0, %c0_i32_1 : i32, i32, i32, i32
  }
  func.func @transform_1(%arg0: i32) -> (i32, i32, i32) {
    %c0_i32 = arith.constant 0 : i32
    %c0_i32_0 = arith.constant 0 : i32
    %c0_i32_1 = arith.constant 0 : i32
    %c0_i32_2 = arith.constant 0 : i32
    return %c0_i32, %c0_i32_0, %c0_i32_1 : i32, i32, i32
  }
  func.func @transform_2(%arg0: i32) -> (i32, i32) {
    %c0_i32 = arith.constant 0 : i32
    %c0_i32_0 = arith.constant 0 : i32
    %c0_i32_1 = arith.constant 0 : i32
    return %c0_i32, %c0_i32_0 : i32, i32
  }
  func.func @transform_3(%arg0: i32) -> (i32, i32, i32) {
    %c0_i32 = arith.constant 0 : i32
    %c0_i32_0 = arith.constant 0 : i32
    %c0_i32_1 = arith.constant 0 : i32
    %c0_i32_2 = arith.constant 0 : i32
    return %c0_i32, %c0_i32_0, %c0_i32_1 : i32, i32, i32
  }
  func.func @transform_4(%arg0: i32) -> (i32, i32) {
    %c0_i32 = arith.constant 0 : i32
    %c0_i32_0 = arith.constant 0 : i32
    %c0_i32_1 = arith.constant 0 : i32
    return %c0_i32, %c0_i32_0 : i32, i32
  }
  func.func @transform_5(%arg0: i32) -> (i32, i32, i32) {
    %c0_i32 = arith.constant 0 : i32
    %c0_i32_0 = arith.constant 0 : i32
    %c0_i32_1 = arith.constant 0 : i32
    return %arg0, %c0_i32, %c0_i32_0 : i32, i32, i32
  }
}

</mosaic_0001>

<bundles_post_ra>
// kernel: denoiser_forward.6
= control target key start
LH: loop header
LB: loop body
LE: loop exit
PB: predicated region body
PF: predicated region fallthrough
CT: control target
= control target key end

     0   :  { %s2234_s12 = smov 0   ;;  %s2602_s0 = inlined_call_operand.vmem [shape: bf16[2,1,48,342], index: 0, kind: input, shape index: {}]   ;;  %s2603_s1 = inlined_call_operand.vmem [shape: bf16[9,32,48], index: 1, kind: input, shape index: {}]   ;;  %s2604_s2 = inlined_call_operand.vmem [shape: f32[32,1], index: 2, kind: input, shape index: {}]   ;;  %s2605_s3 = inlined_call_operand.vmem [shape: f32[2,32,288], index: 3, kind: output, shape index: {}]  }
   0x1 LB: > { %s1811_s13 = sadd.s32 4294967295, %s2203_s12   ;;  %p1815_p0 = scmp.ge.s32.totalorder %s2203_s12, 1  ;;  %s2203_s12 = sphi %s2234_s12, %s13_s12  }
   0x2   : > { %p137_p1 = scmp.lt.s32.totalorder %s2203_s12, 3 }
   0x4   : > { %p138_p2 = pnand %p1815_p0, %p137_p1 }
   0x5   : > { %p161_p3 = scmp.lt.s32.totalorder (!%p138_p2), %s1811_s13, 1  ;;  %s2205_s18 = smov (!%p138_p2), 127   ;;  %v2206_v7 = vmov (!%p138_p2), 0   ;;  %vm276_vm0 = vcmask (!%p138_p2), 392192   ;;  %v2291_v9 = vld [vmem:[%s2603_s1] sm:$0xff] (!%p138_p2)   ;;  %v2315_v11 = vld [vmem:[%s2603_s1 + $0x8] sm:$0xff] (!%p138_p2)  }
   0x6   : > { %141 = sbr.rel (%p138_p2) target bundleno = 508 (0x1fc), region = 32  ;;  %442 = vmatprep.mubr.bf16.mxu0 (!%p138_p2), %v2206_v7  ;;  %315 = vmatprep.mubr.bf16.mxu1 (!%p138_p2), %v2206_v7  ;;  %s2207_s21 = smov (!%p138_p2), 126   ;;  %vm260_vm1 = vcmask (!%p138_p2), 1039360   ;;  %vm545_vm2 = vcmask (!%p138_p2), 1031168   ;;  %v2180_v32 = vld [vmem:[%s2603_s1 + $0x10] sm:$0xff] (!%p138_p2)   ;;  %v1695_v36 = vld [vmem:[%s2604_s2] sm:$0xff] (!%p138_p2) }
   0x7   : > { %2166 = vset.pattern.permute.xlu1 (!%p138_p2), %v2206_v7  ;;  %2165 = vset.pattern.permute.xlu0 (!%p138_p2), %v2206_v7  ;;  %s2208_s24 = smov (!%p138_p2), 110   ;;  %s2209_s25 = smov (!%p138_p2), 109   ;;  %v1696_v38 = vld [vmem:[%s2604_s2 + $0x8] sm:$0xff] (!%p138_p2)  ;;  %v2181_v41 = vld [vmem:[%s2603_s1 + $0x18] sm:$0xff] (!%p138_p2)   ;;  %v1697_v45 = vld [vmem:[%s2604_s2 + $0x10] sm:$0xff] (!%p138_p2)  ;;  %vm714_vm3 = vcmask (!%p138_p2), 900096  }
   0x8   : > { %s2210_s26 = smov (!%p138_p2), 108   ;;  %s2211_s27 = smov (!%p138_p2), 92   ;;  %v2183_v47 = vld [vmem:[%s2603_s1 + $0x20] sm:$0xff] (!%p138_p2)   ;;  %v1698_v48 = vld [vmem:[%s2604_s2 + $0x18] sm:$0xff] (!%p138_p2)  ;;  %v2184_v55 = vld [vmem:[%s2603_s1 + $0x28] sm:$0xff] (!%p138_p2)   ;;  %vm883_vm4 = vcmask (!%p138_p2), 891904  }
   0x9   : > { %s2212_s28 = smov (!%p138_p2), 91   ;;  %s2213_s29 = smov (!%p138_p2), 90   ;;  %vm1052_vm5 = vcmask (!%p138_p2), 883712   ;;  %vm1221_vm6 = vcmask (!%p138_p2), 752640   ;;  %vm1390_vm7 = vcmask (!%p138_p2), 744448   ;;  %vm1559_vm8 = vcmask (!%p138_p2), 736256  }
   0xa   : > { %vm1745_vm9 = vcmask (!%p138_p2), 261120  }
   0xd   : > { %s2607_s13 = smov (!%p161_p3, %s1811_s13), 1 }
   0xe   : > { %s2146_s14 = smul.u32 72, %s2607_s13 }
   0xf   : > { %s2147_s20 = smul.u32 96, %s2607_s13 }
  0x10   : > { %s2248_s17 = scalar_lea.vmem %s2602_s0, %s2146_s14 }
  0x11   : > { %v2251_v0 = vld [vmem:[%s2248_s17 + $0x4] ss:$12 sps:$4 sm:$0xff]   ;;  %v2254_v1 = vld [vmem:[%s2248_s17] ss:$12 sps:$4 sm:$0xff]   ;;  %v2259_v2 = vld [vmem:[%s2248_s17 + $0x8] ss:$12 sps:$4 sm:$0xff]   ;;  %s2581_s23 = scalar_lea.vmem %s2605_s3, %s2147_s20 }
  0x12   : > { %244 = vrot.lane.b32.xlu0 %v2251_v0, %s2205_s18  ;;  %410 = vmatprep.subr.bf16.mxu0 %v2251_v0  ;;  %v2265_v3 = vld [vmem:[%s2248_s17 + $0x1c] ss:$12 sps:$4 sm:$0xff]   ;;  %v2269_v4 = vld [vmem:[%s2248_s17 + $0x18] ss:$12 sps:$4 sm:$0xff]   ;;  %v2275_v5 = vld [vmem:[%s2248_s17 + $0x20] ss:$12 sps:$4 sm:$0xff]  }
  0x13   : > { %242 = vrot.lane.b32.xlu1 %v2254_v1, %s2205_s18  ;;  %411 = vmatpush1.bf16.msra.mxu0 %v2254_v1  ;;  %v2278_v6 = vld [vmem:[%s2248_s17 + $0x34] ss:$12 sps:$4 sm:$0xff]   ;;  %v2284_v8 = vld [vmem:[%s2248_s17 + $0x30] ss:$12 sps:$4 sm:$0xff]   ;;  %v2308_v10 = vld [vmem:[%s2248_s17 + $0x38] ss:$12 sps:$4 sm:$0xff]  }
  0x14   : > { %412 = vmatprep.subr.bf16.mxu0 %v2265_v3 }
  0x16   : > { %246 = vrot.lane.b32.xlu0 %v2259_v2, %s2205_s18 }
  0x17   : > { %250 = vrot.lane.b32.xlu1 %v2265_v3, %s2205_s18  ;;  %413 = vmatpush1.bf16.msra.mxu0 %v2269_v4 }
  0x18   : > { %414 = vmatprep.subr.bf16.mxu0 %v2278_v6 }
  0x1a   : > { %252 = vrot.lane.b32.xlu0 %v2275_v5, %s2205_s18 }
  0x1b   : > { %248 = vrot.lane.b32.xlu1 %v2269_v4, %s2205_s18  ;;  %415 = vmatpush1.bf16.msra.mxu0 %v2284_v8 }
  0x1e   : > { %529 = vrot.lane.b32.xlu0 %v2251_v0, %s2207_s21  ;;  %1839 = vmatmul.mubr.msk.bf16.vlgmr.msra.gmra.mrb[0].mxu0 %vm276_vm0, %v2291_v9 }
  0x1f   : > { %531 = vrot.lane.b32.xlu1 %v2259_v2, %s2207_s21  ;;  %452 = vmatprep.mubr.bf16.mxu0 %v2206_v7 }
  0x22   : > { %527 = vrot.lane.b32.xlu0 %v2254_v1, %s2207_s21 }
  0x23   : > { %256 = vrot.lane.b32.xlu1 %v2278_v6, %s2205_s18 }
  0x26   : > { %258 = vrot.lane.b32.xlu0 %v2308_v10, %s2205_s18  ;;  %1840 = vmatmul.mubr.msk.bf16.gmra.mrb[4].mxu0 %vm276_vm0, %v2315_v11 }
  0x27   : > { %254 = vrot.lane.b32.xlu1 %v2284_v8, %s2205_s18  ;;  %599 = vmatprep.mubr.bf16.mxu0 %v2206_v7 }
  0x2a   : > { %535 = vrot.lane.b32.xlu0 %v2265_v3, %s2207_s21 }
  0x2b   : > { %537 = vrot.lane.b32.xlu1 %v2275_v5, %s2207_s21 }
  0x2e   : > { %533 = vrot.lane.b32.xlu0 %v2269_v4, %s2207_s21 }
  0x2f   : > { %541 = vrot.lane.b32.xlu1 %v2278_v6, %s2207_s21 }
  0x32   : > { %543 = vrot.lane.b32.xlu0 %v2308_v10, %s2207_s21 }
  0x33   : > { %539 = vrot.lane.b32.xlu1 %v2284_v8, %s2207_s21 }
  0x36   : > { %698 = vrot.lane.b32.xlu0 %v2251_v0, %s2208_s24 }
  0x37   : > { %700 = vrot.lane.b32.xlu1 %v2259_v2, %s2208_s24 }
  0x3a   : > { %696 = vrot.lane.b32.xlu0 %v2254_v1, %s2208_s24 }
  0x3b   : > { %704 = vrot.lane.b32.xlu1 %v2265_v3, %s2208_s24 }
  0x3e   : > { %706 = vrot.lane.b32.xlu0 %v2275_v5, %s2208_s24 }
  0x3f   : > { %702 = vrot.lane.b32.xlu1 %v2269_v4, %s2208_s24 }
  0x42   : > { %710 = vrot.lane.b32.xlu0 %v2278_v6, %s2208_s24 }
  0x43   : > { %712 = vrot.lane.b32.xlu1 %v2308_v10, %s2208_s24 }
  0x46   : > { %708 = vrot.lane.b32.xlu0 %v2284_v8, %s2208_s24 }
  0x47   : > { %867 = vrot.lane.b32.xlu1 %v2251_v0, %s2209_s25 }
  0x4a   : > { %869 = vrot.lane.b32.xlu0 %v2259_v2, %s2209_s25 }
  0x4b   : > { %865 = vrot.lane.b32.xlu1 %v2254_v1, %s2209_s25 }
  0x4e   : > { %873 = vrot.lane.b32.xlu0 %v2265_v3, %s2209_s25 }
  0x4f   : > { %875 = vrot.lane.b32.xlu1 %v2275_v5, %s2209_s25 }
  0x52   : > { %871 = vrot.lane.b32.xlu0 %v2269_v4, %s2209_s25 }
  0x53   : > { %879 = vrot.lane.b32.xlu1 %v2278_v6, %s2209_s25 }
  0x56   : > { %881 = vrot.lane.b32.xlu0 %v2308_v10, %s2209_s25 }
  0x57   : > { %877 = vrot.lane.b32.xlu1 %v2284_v8, %s2209_s25 }
  0x5a   : > { %1036 = vrot.lane.b32.xlu0 %v2251_v0, %s2210_s26 }
  0x5b   : > { %1038 = vrot.lane.b32.xlu1 %v2259_v2, %s2210_s26 }
  0x5e   : > { %1034 = vrot.lane.b32.xlu0 %v2254_v1, %s2210_s26 }
  0x5f   : > { %1042 = vrot.lane.b32.xlu1 %v2265_v3, %s2210_s26 }
  0x62   : > { %1044 = vrot.lane.b32.xlu0 %v2275_v5, %s2210_s26 }
  0x63   : > { %1040 = vrot.lane.b32.xlu1 %v2269_v4, %s2210_s26 }
  0x66   : > { %1048 = vrot.lane.b32.xlu0 %v2278_v6, %s2210_s26 }
  0x67   : > { %1050 = vrot.lane.b32.xlu1 %v2308_v10, %s2210_s26 }
  0x6a   : > { %1046 = vrot.lane.b32.xlu0 %v2284_v8, %s2210_s26 }
  0x6b   : > { %1205 = vrot.lane.b32.xlu1 %v2251_v0, %s2211_s27 }
  0x6e   : > { %1207 = vrot.lane.b32.xlu0 %v2259_v2, %s2211_s27 }
  0x6f   : > { %1203 = vrot.lane.b32.xlu1 %v2254_v1, %s2211_s27 }
  0x72   : > { %1211 = vrot.lane.b32.xlu0 %v2265_v3, %s2211_s27 }
  0x73   : > { %1213 = vrot.lane.b32.xlu1 %v2275_v5, %s2211_s27 }
  0x76   : > { %1209 = vrot.lane.b32.xlu0 %v2269_v4, %s2211_s27 }
  0x77   : > { %1217 = vrot.lane.b32.xlu1 %v2278_v6, %s2211_s27 }
  0x7a   : > { %1219 = vrot.lane.b32.xlu0 %v2308_v10, %s2211_s27 }
  0x7b   : > { %1215 = vrot.lane.b32.xlu1 %v2284_v8, %s2211_s27 }
  0x7e   : > { %1374 = vrot.lane.b32.xlu0 %v2251_v0, %s2212_s28 }
  0x7f   : > { %1376 = vrot.lane.b32.xlu1 %v2259_v2, %s2212_s28 }
  0x82   : > { %1372 = vrot.lane.b32.xlu0 %v2254_v1, %s2212_s28 }
  0x83   : > { %1380 = vrot.lane.b32.xlu1 %v2265_v3, %s2212_s28 }
  0x84   : > { %v245_v12 = vpop.permute.xlu0 %244 }
  0x85   : > { %v243_v13 = vpop.permute.xlu1 %242 }
  0x86   : > { %1382 = vrot.lane.b32.xlu0 %v2275_v5, %s2212_s28  ;;  %v261_v17 = vsel %vm260_vm1, %v243_v13, %v245_v12 }
  0x87   : > { %1378 = vrot.lane.b32.xlu1 %v2269_v4, %s2212_s28 }
  0x88   : > { %v247_v14 = vpop.permute.xlu0 %246 }
  0x89   : > { %v251_v15 = vpop.permute.xlu1 %250  ;;  %v262_v16 = vsel %vm260_vm1, %v245_v12, %v247_v14 }
  0x8a   : > { %283 = vmatprep.subr.bf16.mxu1 %v262_v16  ;;  %1386 = vrot.lane.b32.xlu0 %v2278_v6, %s2212_s28 }
  0x8b   : > { %1388 = vrot.lane.b32.xlu1 %v2308_v10, %s2212_s28  ;;  %284 = vmatpush1.bf16.msra.mxu1 %v261_v17 }
  0x8c   : > { %v253_v18 = vpop.permute.xlu0 %252 }
  0x8d   : > { %v249_v19 = vpop.permute.xlu1 %248  ;;  %v264_v20 = vsel %vm260_vm1, %v251_v15, %v253_v18 }
  0x8e   : > { %1384 = vrot.lane.b32.xlu0 %v2284_v8, %s2212_s28  ;;  %285 = vmatprep.subr.bf16.mxu1 %v264_v20  ;;  %v263_v21 = vsel %vm260_vm1, %v249_v19, %v251_v15  ;;  %v2187_v19 = vld [vmem:[%s2603_s1 + $0x40] sm:$0xff]  }
  0x8f   : > { %1543 = vrot.lane.b32.xlu1 %v2251_v0, %s2213_s29  ;;  %286 = vmatpush1.bf16.msra.mxu1 %v263_v21 }
  0x90   : > { %v530_v22 = vpop.permute.xlu0 %529 }
  0x91   : > { %v2381_v23 = vpop.permute.xlu1 %531 }
  0x92   : > { %1545 = vrot.lane.b32.xlu0 %v2259_v2, %s2213_s29  ;;  %v547_v24 = vsel %vm545_vm2, %v530_v22, %v2381_v23 }
  0x93   : > { %1541 = vrot.lane.b32.xlu1 %v2254_v1, %s2213_s29  ;;  %567 = vmatprep.subr.bf16.mxu0 %v547_v24 }
  0x94   : > { %v528_v25 = vpop.permute.xlu0 %527 }
  0x95   : > { %v546_v26 = vsel %vm545_vm2, %v528_v25, %v530_v22  ;;  %v257_v27 = vpop.permute.xlu1 %256 }
  0x96   : > { %1549 = vrot.lane.b32.xlu0 %v2265_v3, %s2213_s29  ;;  %568 = vmatpush1.bf16.msra.mxu0 %v546_v26  ;;  %v2188_v26 = vld [vmem:[%s2603_s1 + $0x48] sm:$0xff]  }
  0x97   : > { %1551 = vrot.lane.b32.xlu1 %v2275_v5, %s2213_s29 }
  0x98   : > { %v259_v28 = vpop.permute.xlu0 %258 }
  0x99   : > { %v255_v29 = vpop.permute.xlu1 %254  ;;  %v266_v30 = vsel %vm260_vm1, %v257_v27, %v259_v28 }
  0x9a   : > { %1547 = vrot.lane.b32.xlu0 %v2269_v4, %s2213_s29  ;;  %287 = vmatprep.subr.bf16.mxu1 %v266_v30  ;;  %v265_v31 = vsel %vm260_vm1, %v255_v29, %v257_v27 }
  0x9b   : > { %1555 = vrot.lane.b32.xlu1 %v2278_v6, %s2213_s29  ;;  %288 = vmatpush1.bf16.msra.mxu1 %v265_v31 }
  0x9c   : > { %v536_v33 = vpop.permute.xlu0 %535  ;;  %1960 = vmatprep.subr.bf16.mxu1 %v247_v14 }
  0x9d   : > { %v2403_v34 = vpop.permute.xlu1 %537 }
  0x9e   : > { %1557 = vrot.lane.b32.xlu0 %v2308_v10, %s2213_s29  ;;  %1833 = vmatmul.mubr.msk.bf16.vlgmr.msra.gmra.mrb[0].mxu1 %vm276_vm0, %v2180_v32  ;;  %v549_v35 = vsel %vm545_vm2, %v536_v33, %v2403_v34 }
  0x9f   : > { %1553 = vrot.lane.b32.xlu1 %v2284_v8, %s2213_s29  ;;  %569 = vmatprep.subr.bf16.mxu0 %v549_v35 }
  0xa0   : > { %1961 = vmatpush3.bf16.msra.mxu1 %v247_v14  ;;  %v534_v37 = vpop.permute.xlu0 %533  ;;  %325 = vmatprep.mubr.bf16.mxu1 %v2206_v7 }
  0xa1   : > { %v548_v39 = vsel %vm545_vm2, %v534_v37, %v536_v33  ;;  %1962 = vmatprep.subr.bf16.mxu1 %v253_v18  ;;  %v542_v40 = vpop.permute.xlu1 %541  ;;  %v2189_v37 = vld [vmem:[%s2603_s1 + $0x50] sm:$0xff]  }
  0xa2   : > { %570 = vmatpush1.bf16.msra.mxu0 %v548_v39  ;;  %1701 = vperm.xlu0 %2165, %v1695_v36  }
  0xa3   : > { %1706 = vperm.xlu1 %2166, %v1696_v38  }
  0xa4   : > { %1963 = vmatpush3.bf16.msra.mxu1 %v253_v18  ;;  %v2423_v42 = vpop.permute.xlu0 %543 }
  0xa5   : > { %1964 = vmatprep.subr.bf16.mxu1 %v259_v28  ;;  %v540_v43 = vpop.permute.xlu1 %539  ;;  %v551_v44 = vsel %vm545_vm2, %v542_v40, %v2423_v42 }
  0xa6   : > { %v550_v46 = vsel %vm545_vm2, %v540_v43, %v542_v40  ;;  %1834 = vmatmul.mubr.msk.bf16.gmra.mrb[4].mxu1 %vm276_vm0, %v2181_v41  ;;  %571 = vmatprep.subr.bf16.mxu0 %v551_v44 }
  0xa7   : > { %572 = vmatpush1.bf16.msra.mxu0 %v550_v46  ;;  %1966 = vmatprep.mubr.msk.bf16.mxu1 %vm276_vm0, %v2180_v32 }
  0xa8   : > { %1965 = vmatpush3.bf16.msra.mxu1 %v259_v28  ;;  %v699_v49 = vpop.permute.xlu0 %698  ;;  %1711 = vperm.xlu1 %2166, %v1697_v45   ;;  %v2190_v45 = vld [vmem:[%s2603_s1 + $0x58] sm:$0xff]  }
  0xa9   : > { %v2439_v50 = vpop.permute.xlu1 %700  ;;  %1970 = vmatprep.subr.bf16.mxu1 %v2259_v2  ;;  %1716 = vperm.xlu0 %2165, %v1698_v48  }
  0xaa   : > { %v716_v51 = vsel %vm714_vm3, %v699_v49, %v2439_v50  ;;  %1849 = vmatmul.mubr.msk.bf16.vlgmr.msra.gmra.mrb[0].mxu0 %vm276_vm0, %v2183_v47 }
  0xab   : > { %736 = vmatprep.subr.bf16.mxu0 %v716_v51  ;;  %609 = vmatprep.mubr.bf16.mxu0 %v2206_v7 }
  0xac   : > { %v697_v52 = vpop.permute.xlu0 %696 }
  0xad   : > { %v715_v53 = vsel %vm714_vm3, %v697_v52, %v699_v49  ;;  %v705_v54 = vpop.permute.xlu1 %704 }
  0xae   : > { %1967 = vmatmul.mubr.msk.bf16.vlgmr.msra.gmra.mrb[8].mxu1 %vm276_vm0, %v2181_v41  ;;  %737 = vmatpush1.bf16.msra.mxu0 %v715_v53 }
  0xaf   : > { %1971 = vmatpush3.bf16.msra.mxu1 %v2259_v2  ;;  %1976 = vmatprep.mubr.msk.bf16.mxu1 %vm276_vm0, %v2291_v9  ;;  %v2185_v2 = vld [vmem:[%s2603_s1 + $0x30] sm:$0xff]  }
  0xb0   : > { %v707_v56 = vpop.permute.xlu0 %706  ;;  %1972 = vmatprep.subr.bf16.mxu1 %v2275_v5 }
  0xb1   : > { %v703_v57 = vpop.permute.xlu1 %702  ;;  %v718_v58 = vsel %vm714_vm3, %v705_v54, %v707_v56 }
  0xb2   : > { %v717_v59 = vsel %vm714_vm3, %v703_v57, %v705_v54  ;;  %738 = vmatprep.subr.bf16.mxu0 %v718_v58  ;;  %1850 = vmatmul.mubr.msk.bf16.gmra.mrb[4].mxu0 %vm276_vm0, %v2184_v55  ;;  %v2192_v57 = vld [vmem:[%s2603_s1 + $0x68] sm:$0xff]   ;;  %v2193_v58 = vld [vmem:[%s2603_s1 + $0x70] sm:$0xff]  }
  0xb3   : > { %1973 = vmatpush3.bf16.msra.mxu1 %v2275_v5  ;;  %739 = vmatpush1.bf16.msra.mxu0 %v717_v59 }
  0xb4   : > { %v711_v60 = vpop.permute.xlu0 %710  ;;  %1974 = vmatprep.subr.bf16.mxu1 %v2308_v10  ;;  %768 = vmatprep.mubr.bf16.mxu0 %v2206_v7 }
  0xb5   : > { %v713_v61 = vpop.permute.xlu1 %712 }
  0xb6   : > { %v720_v62 = vsel %vm714_vm3, %v711_v60, %v713_v61 }
  0xb7   : > { %1975 = vmatpush3.bf16.msra.mxu1 %v2308_v10  ;;  %740 = vmatprep.subr.bf16.mxu0 %v720_v62  ;;  %v2186_v10 = vld [vmem:[%s2603_s1 + $0x38] sm:$0xff]  }
  0xb8   : > { %1980 = vmatprep.subr.bf16.mxu1 %v2381_v23  ;;  %v709_v63 = vpop.permute.xlu0 %708 }
  0xb9   : > { %v719_v0 = vsel %vm714_vm3, %v709_v63, %v711_v60  ;;  %v868_v1 = vpop.permute.xlu1 %867 }
  0xba   : > { %1977 = vmatmul.mubr.msk.bf16.vlgmr.msra.gmra.mrb[8].mxu1 %vm276_vm0, %v2315_v11  ;;  %741 = vmatpush1.bf16.msra.mxu0 %v719_v0 }
  0xbb   : > { %1981 = vmatpush3.bf16.msra.mxu1 %v2381_v23  ;;  %1986 = vmatprep.mubr.msk.bf16.mxu1 %vm276_vm0, %v2183_v47  ;;  %v2191_v47 = vld [vmem:[%s2603_s1 + $0x60] sm:$0xff]  }
  0xbc   : > { %1982 = vmatprep.subr.bf16.mxu1 %v2403_v34  ;;  %v870_v3 = vpop.permute.xlu0 %869 }
  0xbd   : > { %v866_v4 = vpop.permute.xlu1 %865  ;;  %v885_v5 = vsel %vm883_vm4, %v868_v1, %v870_v3  ;;  %1859 = vmatmul.mubr.msk.bf16.vlgmr.msra.gmra.mrb[0].mxu0 %vm276_vm0, %v2185_v2 }
  0xbe   : > { %v884_v6 = vsel %vm883_vm4, %v866_v4, %v868_v1  ;;  %905 = vmatprep.subr.bf16.mxu0 %v885_v5  ;;  %778 = vmatprep.mubr.bf16.mxu0 %v2206_v7  ;;  %v2194_v5 = vld [vmem:[%s2603_s1 + $0x78] sm:$0xff]  }
  0xbf   : > { %1983 = vmatpush3.bf16.msra.mxu1 %v2403_v34  ;;  %906 = vmatpush1.bf16.msra.mxu0 %v884_v6  ;;  %v2195_v6 = vld [vmem:[%s2603_s1 + $0x80] sm:$0xff]  }
  0xc0   : > { %1984 = vmatprep.subr.bf16.mxu1 %v2423_v42  ;;  %v874_v8 = vpop.permute.xlu0 %873 }
  0xc1   : > { %v876_v9 = vpop.permute.xlu1 %875 }
  0xc2   : > { %v887_v11 = vsel %vm883_vm4, %v874_v8, %v876_v9 }
  0xc3   : > { %1985 = vmatpush3.bf16.msra.mxu1 %v2423_v42  ;;  %907 = vmatprep.subr.bf16.mxu0 %v887_v11 }
  0xc4   : > { %1990 = vmatprep.subr.bf16.mxu1 %v2439_v50  ;;  %v872_v12 = vpop.permute.xlu0 %871 }
  0xc5   : > { %v886_v13 = vsel %vm883_vm4, %v872_v12, %v874_v8  ;;  %v880_v14 = vpop.permute.xlu1 %879  ;;  %1860 = vmatmul.mubr.msk.bf16.gmra.mrb[4].mxu0 %vm276_vm0, %v2186_v10 }
  0xc6   : > { %1987 = vmatmul.mubr.msk.bf16.vlgmr.msra.gmra.mrb[8].mxu1 %vm276_vm0, %v2184_v55  ;;  %908 = vmatpush1.bf16.msra.mxu0 %v886_v13 }
  0xc7   : > { %1991 = vmatpush3.bf16.msra.mxu1 %v2439_v50  ;;  %1996 = vmatprep.mubr.msk.bf16.mxu1 %vm276_vm0, %v2185_v2 }
  0xc8   : > { %1992 = vmatprep.subr.bf16.mxu1 %v707_v56  ;;  %v882_v15 = vpop.permute.xlu0 %881  ;;  %937 = vmatprep.mubr.bf16.mxu0 %v2206_v7 }
  0xc9   : > { %v878_v16 = vpop.permute.xlu1 %877  ;;  %v889_v17 = vsel %vm883_vm4, %v880_v14, %v882_v15 }
  0xca   : > { %v888_v18 = vsel %vm883_vm4, %v878_v16, %v880_v14  ;;  %909 = vmatprep.subr.bf16.mxu0 %v889_v17 }
  0xcb   : > { %1993 = vmatpush3.bf16.msra.mxu1 %v707_v56  ;;  %910 = vmatpush1.bf16.msra.mxu0 %v888_v18 }
  0xcc   : > { %1994 = vmatprep.subr.bf16.mxu1 %v713_v61  ;;  %v1037_v20 = vpop.permute.xlu0 %1036 }
  0xcd   : > { %v1039_v21 = vpop.permute.xlu1 %1038 }
  0xce   : > { %v1054_v22 = vsel %vm1052_vm5, %v1037_v20, %v1039_v21  ;;  %1869 = vmatmul.mubr.msk.bf16.vlgmr.msra.gmra.mrb[0].mxu0 %vm276_vm0, %v2187_v19 }
  0xcf   : > { %1995 = vmatpush3.bf16.msra.mxu1 %v713_v61  ;;  %1074 = vmatprep.subr.bf16.mxu0 %v1054_v22 }
  0xd0   : > { %2000 = vmatprep.subr.bf16.mxu1 %v870_v3  ;;  %v1035_v23 = vpop.permute.xlu0 %1034  ;;  %947 = vmatprep.mubr.bf16.mxu0 %v2206_v7 }
  0xd1   : > { %v1053_v24 = vsel %vm1052_vm5, %v1035_v23, %v1037_v20  ;;  %v1043_v25 = vpop.permute.xlu1 %1042 }
  0xd2   : > { %1997 = vmatmul.mubr.msk.bf16.vlgmr.msra.gmra.mrb[8].mxu1 %vm276_vm0, %v2186_v10  ;;  %1075 = vmatpush1.bf16.msra.mxu0 %v1053_v24  ;;  %v2196_v24 = vld [vmem:[%s2603_s1 + $0x88] sm:$0xff]  }
  0xd3   : > { %2001 = vmatpush3.bf16.msra.mxu1 %v870_v3  ;;  %2006 = vmatprep.mubr.msk.bf16.mxu1 %vm276_vm0, %v2187_v19 }
  0xd4   : > { %2002 = vmatprep.subr.bf16.mxu1 %v876_v9  ;;  %v1045_v27 = vpop.permute.xlu0 %1044 }
  0xd5   : > { %v1041_v28 = vpop.permute.xlu1 %1040  ;;  %v1056_v29 = vsel %vm1052_vm5, %v1043_v25, %v1045_v27 }
  0xd6   : > { %v1055_v30 = vsel %vm1052_vm5, %v1041_v28, %v1043_v25  ;;  %1076 = vmatprep.subr.bf16.mxu0 %v1056_v29  ;;  %1870 = vmatmul.mubr.msk.bf16.gmra.mrb[4].mxu0 %vm276_vm0, %v2188_v26 }
  0xd7   : > { %2003 = vmatpush3.bf16.msra.mxu1 %v876_v9  ;;  %1077 = vmatpush1.bf16.msra.mxu0 %v1055_v30 }
  0xd8   : > { %2004 = vmatprep.subr.bf16.mxu1 %v882_v15  ;;  %v1049_v31 = vpop.permute.xlu0 %1048  ;;  %1106 = vmatprep.mubr.bf16.mxu0 %v2206_v7 }
  0xd9   : > { %v1051_v32 = vpop.permute.xlu1 %1050 }
  0xda   : > { %v1058_v33 = vsel %vm1052_vm5, %v1049_v31, %v1051_v32 }
  0xdb   : > { %2005 = vmatpush3.bf16.msra.mxu1 %v882_v15  ;;  %1078 = vmatprep.subr.bf16.mxu0 %v1058_v33 }
  0xdc   : > { %2010 = vmatprep.subr.bf16.mxu1 %v1039_v21  ;;  %v1047_v34 = vpop.permute.xlu0 %1046 }
  0xdd   : > { %v1057_v35 = vsel %vm1052_vm5, %v1047_v34, %v1049_v31  ;;  %v1206_v36 = vpop.permute.xlu1 %1205 }
  0xde   : > { %2007 = vmatmul.mubr.msk.bf16.vlgmr.msra.gmra.mrb[8].mxu1 %vm276_vm0, %v2188_v26  ;;  %1079 = vmatpush1.bf16.msra.mxu0 %v1057_v35 }
  0xdf   : > { %2011 = vmatpush3.bf16.msra.mxu1 %v1039_v21  ;;  %2016 = vmatprep.mubr.msk.bf16.mxu1 %vm276_vm0, %v2189_v37 }
  0xe0   : > { %2012 = vmatprep.subr.bf16.mxu1 %v1045_v27  ;;  %v1208_v38 = vpop.permute.xlu0 %1207 }
  0xe1   : > { %v1204_v39 = vpop.permute.xlu1 %1203  ;;  %v1223_v40 = vsel %vm1221_vm6, %v1206_v36, %v1208_v38  ;;  %1879 = vmatmul.mubr.msk.bf16.vlgmr.msra.gmra.mrb[0].mxu0 %vm276_vm0, %v2189_v37 }
  0xe2   : > { %v1222_v41 = vsel %vm1221_vm6, %v1204_v39, %v1206_v36  ;;  %1243 = vmatprep.subr.bf16.mxu0 %v1223_v40  ;;  %1116 = vmatprep.mubr.bf16.mxu0 %v2206_v7 }
  0xe3   : > { %2013 = vmatpush3.bf16.msra.mxu1 %v1045_v27  ;;  %1244 = vmatpush1.bf16.msra.mxu0 %v1222_v41 }
  0xe4   : > { %2014 = vmatprep.subr.bf16.mxu1 %v1051_v32  ;;  %v1212_v42 = vpop.permute.xlu0 %1211 }
  0xe5   : > { %v1214_v43 = vpop.permute.xlu1 %1213 }
  0xe6   : > { %v1225_v44 = vsel %vm1221_vm6, %v1212_v42, %v1214_v43 }
  0xe7   : > { %2015 = vmatpush3.bf16.msra.mxu1 %v1051_v32  ;;  %1245 = vmatprep.subr.bf16.mxu0 %v1225_v44 }
  0xe8   : > { %2020 = vmatprep.subr.bf16.mxu1 %v1208_v38  ;;  %v1210_v46 = vpop.permute.xlu0 %1209 }
  0xe9   : > { %v1224_v48 = vsel %vm1221_vm6, %v1210_v46, %v1212_v42  ;;  %v1218_v49 = vpop.permute.xlu1 %1217  ;;  %1880 = vmatmul.mubr.msk.bf16.gmra.mrb[4].mxu0 %vm276_vm0, %v2190_v45 }
  0xea   : > { %2017 = vmatmul.mubr.msk.bf16.vlgmr.msra.gmra.mrb[8].mxu1 %vm276_vm0, %v2190_v45  ;;  %1246 = vmatpush1.bf16.msra.mxu0 %v1224_v48 }
  0xeb   : > { %2021 = vmatpush3.bf16.msra.mxu1 %v1208_v38  ;;  %1275 = vmatprep.mubr.bf16.mxu0 %v2206_v7 }
  0xec   : > { %2022 = vmatprep.subr.bf16.mxu1 %v1214_v43  ;;  %v1220_v50 = vpop.permute.xlu0 %1219  ;;  %2026 = vmatprep.mubr.msk.bf16.mxu1 %vm276_vm0, %v2191_v47 }
  0xed   : > { %v1216_v51 = vpop.permute.xlu1 %1215  ;;  %v1227_v52 = vsel %vm1221_vm6, %v1218_v49, %v1220_v50 }
  0xee   : > { %v1226_v53 = vsel %vm1221_vm6, %v1216_v51, %v1218_v49  ;;  %1247 = vmatprep.subr.bf16.mxu0 %v1227_v52 }
  0xef   : > { %2023 = vmatpush3.bf16.msra.mxu1 %v1214_v43  ;;  %1248 = vmatpush1.bf16.msra.mxu0 %v1226_v53 }
  0xf0   : > { %2024 = vmatprep.subr.bf16.mxu1 %v1220_v50  ;;  %v1375_v54 = vpop.permute.xlu0 %1374 }
  0xf1   : > { %v1377_v55 = vpop.permute.xlu1 %1376 }
  0xf2   : > { %v1392_v56 = vsel %vm1390_vm7, %v1375_v54, %v1377_v55  ;;  %1889 = vmatmul.mubr.msk.bf16.vlgmr.msra.gmra.mrb[0].mxu0 %vm276_vm0, %v2191_v47 }
  0xf3   : > { %2025 = vmatpush3.bf16.msra.mxu1 %v1220_v50  ;;  %1412 = vmatprep.subr.bf16.mxu0 %v1392_v56 }
  0xf4   : > { %2030 = vmatprep.subr.bf16.mxu1 %v1377_v55  ;;  %v1373_v59 = vpop.permute.xlu0 %1372  ;;  %1285 = vmatprep.mubr.bf16.mxu0 %v2206_v7 }
  0xf5   : > { %v1391_v60 = vsel %vm1390_vm7, %v1373_v59, %v1375_v54  ;;  %v1381_v61 = vpop.permute.xlu1 %1380 }
  0xf6   : > { %2027 = vmatmul.mubr.msk.bf16.vlgmr.msra.gmra.mrb[8].mxu1 %vm276_vm0, %v2192_v57  ;;  %1413 = vmatpush1.bf16.msra.mxu0 %v1391_v60 }
  0xf7   : > { %2031 = vmatpush3.bf16.msra.mxu1 %v1377_v55  ;;  %2036 = vmatprep.mubr.msk.bf16.mxu1 %vm276_vm0, %v2193_v58 }
  0xf8   : > { %v1383_v62 = vpop.permute.xlu0 %1382 }
  0xf9   : > { %v1379_v63 = vpop.permute.xlu1 %1378  ;;  %2032 = vmatprep.subr.bf16.mxu1 %v1383_v62  ;;  %v1394_v0 = vsel %vm1390_vm7, %v1381_v61, %v1383_v62 }
  0xfa   : > { %v1393_v1 = vsel %vm1390_vm7, %v1379_v63, %v1381_v61  ;;  %1414 = vmatprep.subr.bf16.mxu0 %v1394_v0  ;;  %1890 = vmatmul.mubr.msk.bf16.gmra.mrb[4].mxu0 %vm276_vm0, %v2192_v57 }
  0xfb   : > { %2033 = vmatpush3.bf16.msra.mxu1 %v1383_v62  ;;  %1415 = vmatpush1.bf16.msra.mxu0 %v1393_v1 }
  0xfc   : > { %v1387_v2 = vpop.permute.xlu0 %1386  ;;  %1444 = vmatprep.mubr.bf16.mxu0 %v2206_v7 }
  0xfd   : > { %v1389_v3 = vpop.permute.xlu1 %1388 }
  0xfe   : > { %2034 = vmatprep.subr.bf16.mxu1 %v1389_v3  ;;  %v1396_v4 = vsel %vm1390_vm7, %v1387_v2, %v1389_v3 }
  0xff   : > { %1416 = vmatprep.subr.bf16.mxu0 %v1396_v4  ;;  %2035 = vmatpush3.bf16.msra.mxu1 %v1389_v3 }
 0x100   : > { %v1385_v8 = vpop.permute.xlu0 %1384 }
 0x101   : > { %v1395_v9 = vsel %vm1390_vm7, %v1385_v8, %v1387_v2  ;;  %v1544_v10 = vpop.permute.xlu1 %1543 }
 0x102   : > { %1417 = vmatpush1.bf16.msra.mxu0 %v1395_v9  ;;  %2037 = vmatmul.mubr.msk.bf16.vlgmr.msra.gmra.mrb[8].mxu1 %vm276_vm0, %v2194_v5 }
 0x103   : > { %2046 = vmatprep.mubr.msk.bf16.mxu1 %vm276_vm0, %v2195_v6 }
 0x104   : > { %v1546_v11 = vpop.permute.xlu0 %1545 }
 0x105   : > { %v1542_v12 = vpop.permute.xlu1 %1541  ;;  %2040 = vmatprep.subr.bf16.mxu1 %v1546_v11  ;;  %1899 = vmatmul.mubr.msk.bf16.vlgmr.msra.gmra.mrb[0].mxu0 %vm276_vm0, %v2193_v58  ;;  %v1561_v13 = vsel %vm1559_vm8, %v1544_v10, %v1546_v11 }
 0x106   : > { %v1560_v14 = vsel %vm1559_vm8, %v1542_v12, %v1544_v10  ;;  %1581 = vmatprep.subr.bf16.mxu0 %v1561_v13  ;;  %2041 = vmatpush3.bf16.msra.mxu1 %v1546_v11 }
 0x107   : > { %1582 = vmatpush1.bf16.msra.mxu0 %v1560_v14  ;;  %1454 = vmatprep.mubr.bf16.mxu0 %v2206_v7 }
 0x108   : > { %v1550_v15 = vpop.permute.xlu0 %1549 }
 0x109   : > { %v1552_v16 = vpop.permute.xlu1 %1551 }
 0x10a   : > { %2042 = vmatprep.subr.bf16.mxu1 %v1552_v16  ;;  %v1563_v17 = vsel %vm1559_vm8, %v1550_v15, %v1552_v16 }
 0x10b   : > { %1583 = vmatprep.subr.bf16.mxu0 %v1563_v17  ;;  %2043 = vmatpush3.bf16.msra.mxu1 %v1552_v16 }
 0x10c   : > { %v1548_v18 = vpop.permute.xlu0 %1547 }
 0x10d   : > { %v1562_v19 = vsel %vm1559_vm8, %v1548_v18, %v1550_v15  ;;  %v1556_v20 = vpop.permute.xlu1 %1555  ;;  %1900 = vmatmul.mubr.msk.bf16.gmra.mrb[4].mxu0 %vm276_vm0, %v2194_v5 }
 0x10e   : > { %1584 = vmatpush1.bf16.msra.mxu0 %v1562_v19  ;;  %1613 = vmatprep.mubr.bf16.mxu0 %v2206_v7 }
 0x110   : > { %v1558_v21 = vpop.permute.xlu0 %1557 }
 0x111   : > { %v1554_v22 = vpop.permute.xlu1 %1553  ;;  %2044 = vmatprep.subr.bf16.mxu1 %v1558_v21  ;;  %v1565_v23 = vsel %vm1559_vm8, %v1556_v20, %v1558_v21 }
 0x112   : > { %v1564_v25 = vsel %vm1559_vm8, %v1554_v22, %v1556_v20  ;;  %1585 = vmatprep.subr.bf16.mxu0 %v1565_v23  ;;  %2045 = vmatpush3.bf16.msra.mxu1 %v1558_v21 }
 0x113   : > { %1586 = vmatpush1.bf16.msra.mxu0 %v1564_v25 }
 0x115   : > { %2047 = vmatmul.mubr.msk.bf16.vlgmr.msra.gmra.mrb[8].mxu1 %vm276_vm0, %v2196_v24 }
 0x116   : > { %1909 = vmatmul.mubr.msk.bf16.vlgmr.msra.gmra.mrb[0].mxu0 %vm276_vm0, %v2195_v6 }
 0x117   : > { %1623 = vmatprep.mubr.bf16.mxu0 %v2206_v7 }
 0x11e   : > { %1910 = vmatmul.mubr.msk.bf16.gmra.mrb[4].mxu0 %vm276_vm0, %v2196_v24 }
 0x121   : > { %v1702_v35 = vpop.permute.xlu0 %1701 }
 0x122   : > { %v1707_v34 = vpop.permute.xlu1 %1706 }
 0x127   : > { %v1712_v36 = vpop.permute.xlu1 %1711 }
 0x128   : > { %v1717_v38 = vpop.permute.xlu0 %1716 }
 0x171   : > { %v317_v26 = vpop.f32.mrb[0].mxu1 }
 0x172   : > { %v319_v27 = vpop.f32.mrb[1].mxu1 }
 0x173   : > { %v321_v28 = vpop.f32.mrb[2].mxu1 }
 0x174   : > { %v323_v29 = vpop.f32.mrb[3].mxu1 }
 0x179   : > { %v327_v30 = vpop.f32.mrb[4].mxu1 }
 0x17a   : > { %v329_v31 = vpop.f32.mrb[5].mxu1 }
 0x17b   : > { %v331_v32 = vpop.f32.mrb[6].mxu1 }
 0x17c   : > { %v333_v33 = vpop.f32.mrb[7].mxu1 }
 0x1e8   : > { %v2048_v37 = vpop.f32.mrb[8].mxu1 }
 0x1e9   : > { %v1727_v39 = vadd.f32 %v2048_v37, %v1712_v36  ;;  %v1615_v40 = vpop.f32.mrb[0].mxu0  ;;  %v1668_v41 = vpop.f32.mrb[9].mxu1 }
 0x1ea   : > { %v2050_v7 = vadd.f32 %v1615_v40, %v317_v26  ;;  %v1721_v42 = vadd.f32 %v1702_v35, %v1668_v41  ;;  %v1617_v43 = vpop.f32.mrb[1].mxu0  ;;  %v2049_v44 = vpop.f32.mrb[10].mxu1 }
 0x1eb   : > { %v1739_v45 = vmax.f32 %v1727_v39, 0.0  ;;  %v2051_v46 = vadd.f32 %v1617_v43, %v319_v27  ;;  %v1730_v47 = vadd.f32 %v2049_v44, %v1717_v38  ;;  %v1619_v48 = vpop.f32.mrb[2].mxu0  ;;  %v1671_v49 = vpop.f32.mrb[11].mxu1 }
 0x1ec   : > { %v1719_v50 = vadd.f32 %v2050_v7, %v1702_v35  ;;  %v1733_v51 = vmax.f32 %v1721_v42, 0.0  ;;  %v2052_v52 = vadd.f32 %v1619_v48, %v321_v28  ;;  %v1724_v53 = vadd.f32 %v1707_v34, %v1671_v49  ;;  %v1621_v54 = vpop.f32.mrb[3].mxu0 }
 0x1ed   : > { %1752 = vst.msk [vmem:[%s2581_s23 + $0x40] sm:$0xff] %vm1745_vm9, %v1739_v45  ;;  %v1720_v55 = vadd.f32 %v2051_v46, %v1702_v35  ;;  %v1742_v56 = vmax.f32 %v1730_v47, 0.0  ;;  %v2053_v57 = vadd.f32 %v1621_v54, %v323_v29 }
 0x1ee   : > { %v1731_v58 = vmax.f32 %v1719_v50, 0.0  ;;  %1746 = vst.msk [vmem:[%s2581_s23 + $0x10] sm:$0xff] %vm1745_vm9, %v1733_v51  ;;  %v1722_v59 = vadd.f32 %v2052_v52, %v1707_v34  ;;  %v1736_v60 = vmax.f32 %v1724_v53, 0.0 }
 0x1ef   : > { %v1732_v61 = vmax.f32 %v1720_v55, 0.0  ;;  %1755 = vst.msk [vmem:[%s2581_s23 + $0x58] sm:$0xff] %vm1745_vm9, %v1742_v56  ;;  %v1723_v62 = vadd.f32 %v2053_v57, %v1707_v34 }
 0x1f0   : > { %1743 = vst [vmem:[%s2581_s23] sm:$0xff] %v1731_v58  ;;  %v1734_v63 = vmax.f32 %v1722_v59, 0.0  ;;  %1749 = vst.msk [vmem:[%s2581_s23 + $0x28] sm:$0xff] %vm1745_vm9, %v1736_v60 }
 0x1f1   : > { %1744 = vst [vmem:[%s2581_s23 + $0x8] sm:$0xff] %v1732_v61  ;;  %v1735_v0 = vmax.f32 %v1723_v62, 0.0  ;;  %v1625_v1 = vpop.f32.mrb[4].mxu0 }
 0x1f2   : > { %1747 = vst [vmem:[%s2581_s23 + $0x18] sm:$0xff] %v1734_v63  ;;  %v2054_v2 = vadd.f32 %v1625_v1, %v327_v30  ;;  %v1627_v3 = vpop.f32.mrb[5].mxu0 }
 0x1f3   : > { %1748 = vst [vmem:[%s2581_s23 + $0x20] sm:$0xff] %v1735_v0  ;;  %v2055_v4 = vadd.f32 %v1627_v3, %v329_v31  ;;  %v1629_v5 = vpop.f32.mrb[6].mxu0 }
 0x1f4   : > { %v1725_v6 = vadd.f32 %v2054_v2, %v1712_v36  ;;  %v2056_v8 = vadd.f32 %v1629_v5, %v331_v32  ;;  %v1631_v9 = vpop.f32.mrb[7].mxu0 }
 0x1f5   : > { %v1726_v10 = vadd.f32 %v2055_v4, %v1712_v36  ;;  %v2057_v11 = vadd.f32 %v1631_v9, %v333_v33 }
 0x1f6   : > { %v1737_v12 = vmax.f32 %v1725_v6, 0.0  ;;  %v1728_v13 = vadd.f32 %v2056_v8, %v1717_v38 }
 0x1f7   : > { %v1738_v14 = vmax.f32 %v1726_v10, 0.0  ;;  %v1729_v15 = vadd.f32 %v2057_v11, %v1717_v38 }
 0x1f8   : > { %1750 = vst [vmem:[%s2581_s23 + $0x30] sm:$0xff] %v1737_v12  ;;  %v1740_v16 = vmax.f32 %v1728_v13, 0.0 }
 0x1f9   : > { %1751 = vst [vmem:[%s2581_s23 + $0x38] sm:$0xff] %v1738_v14  ;;  %v1741_v17 = vmax.f32 %v1729_v15, 0.0 }
 0x1fa   : > { %1753 = vst [vmem:[%s2581_s23 + $0x48] sm:$0xff] %v1740_v16 }
 0x1fb   : > { %1754 = vst [vmem:[%s2581_s23 + $0x50] sm:$0xff] %v1741_v17 }
 0x1fc PF: > { %s13_s12 = sadd.s32 1, %s2203_s12  }
 0x1fd   : > { %p10_p4 = scmp.ge.s32.totalorder %s13_s12, 4  }
 0x1ff   :  { %12 = sbr.rel (!%p10_p4) target bundleno = 1 (0x1), region = 70 }

// kernel: denoiser_forward.7
= control target key start
LH: loop header
LB: loop body
LE: loop exit
PB: predicated region body
PF: predicated region fallthrough
CT: control target
= control target key end

     0   :  { %s1332_s12 = smov 0   ;;  %s1447_s0 = inlined_call_operand.vmem [shape: bf16[2,4,32,90], index: 0, kind: input, shape index: {}]   ;;  %s1448_s1 = inlined_call_operand.vmem [shape: bf16[9,32,32], index: 1, kind: input, shape index: {}]   ;;  %s1449_s2 = inlined_call_operand.vmem [shape: f32[32,1], index: 2, kind: input, shape index: {}]   ;;  %s1450_s3 = inlined_call_operand.vmem [shape: f32[2,32,72], index: 3, kind: output, shape index: {}]  }
   0x1 LB: > { %s1019_s13 = sadd.s32 4294967295, %s1306_s12   ;;  %p1023_p0 = scmp.ge.s32.totalorder %s1306_s12, 1  ;;  %s1306_s12 = sphi %s1332_s12, %s13_s12  }
   0x2   : > { %p137_p1 = scmp.lt.s32.totalorder %s1306_s12, 3 }
   0x4   : > { %p138_p2 = pnand %p1023_p0, %p137_p1 }
   0x5   : > { %p161_p3 = scmp.lt.s32.totalorder (!%p138_p2), %s1019_s13, 1  ;;  %v1281_v0 = vld [vmem:[%s1448_s1 + $0x10] sm:$0xff] (!%p138_p2)   ;;  %vm212_vm0 = vcmask (!%p138_p2), 261120   ;;  %v1284_v1 = vld [vmem:[%s1448_s1 + $0x40] sm:$0xff] (!%p138_p2)   ;;  %s1308_s22 = smov (!%p138_p2), 127   ;;  %v1282_v10 = vld [vmem:[%s1448_s1 + $0x18] sm:$0xff] (!%p138_p2)  }
   0x6   : > { %141 = sbr.rel (%p138_p2) target bundleno = 398 (0x18e), region = 32  ;;  %1160 = vmatprep.mubr.msk.bf16.mxu1 (!%p138_p2), %vm212_vm0, %v1281_v0  ;;  %1192 = vmatprep.mubr.msk.bf16.mxu0 (!%p138_p2), %vm212_vm0, %v1284_v1  ;;  %s1309_s23 = smov (!%p138_p2), 119   ;;  %v1286_v11 = vld [vmem:[%s1448_s1] sm:$0xff] (!%p138_p2)   ;;  %v1285_v12 = vld [vmem:[%s1448_s1 + $0x48] sm:$0xff] (!%p138_p2)   ;;  %v1288_v13 = vld [vmem:[%s1448_s1 + $0x50] sm:$0xff] (!%p138_p2)   ;;  %v1311_v18 = vmov (!%p138_p2), 0  }
   0x7   : > { %s1310_s5 = smov (!%p138_p2), 118   ;;  %v1287_v14 = vld [vmem:[%s1448_s1 + $0x8] sm:$0xff] (!%p138_p2)   ;;  %v1290_v15 = vld [vmem:[%s1448_s1 + $0x20] sm:$0xff] (!%p138_p2)   ;;  %1273 = vset.pattern.permute.xlu1 (!%p138_p2), %v1311_v18  ;;  %1272 = vset.pattern.permute.xlu0 (!%p138_p2), %v1311_v18  ;;  %v929_v19 = vld [vmem:[%s1449_s2 + $0x10] sm:$0xff] (!%p138_p2)  ;;  %vm959_vm1 = vcmask (!%p138_p2), 588800  }
   0x8   : > { %v928_v16 = vld [vmem:[%s1449_s2 + $0x8] sm:$0xff] (!%p138_p2)  ;;  %v927_v17 = vld [vmem:[%s1449_s2] sm:$0xff] (!%p138_p2)  ;;  %v930_v20 = vld [vmem:[%s1449_s2 + $0x18] sm:$0xff] (!%p138_p2) }
   0x9   : > { %v1289_v24 = vld [vmem:[%s1448_s1 + $0x58] sm:$0xff] (!%p138_p2)   ;;  %v1292_v25 = vld [vmem:[%s1448_s1 + $0x60] sm:$0xff] (!%p138_p2)   ;;  %v1291_v30 = vld [vmem:[%s1448_s1 + $0x28] sm:$0xff] (!%p138_p2)  }
   0xa   : > { %v1294_v31 = vld [vmem:[%s1448_s1 + $0x30] sm:$0xff] (!%p138_p2)   ;;  %v1293_v32 = vld [vmem:[%s1448_s1 + $0x68] sm:$0xff] (!%p138_p2)   ;;  %v1295_v36 = vld [vmem:[%s1448_s1 + $0x38] sm:$0xff] (!%p138_p2)  }
   0xb   : > { %v1296_v33 = vld [vmem:[%s1448_s1 + $0x70] sm:$0xff] (!%p138_p2)   ;;  %v1297_v37 = vld [vmem:[%s1448_s1 + $0x78] sm:$0xff] (!%p138_p2)   ;;  %v1298_v38 = vld [vmem:[%s1448_s1 + $0x80] sm:$0xff] (!%p138_p2)  }
   0xc   : > { %v1299_v40 = vld [vmem:[%s1448_s1 + $0x88] sm:$0xff] (!%p138_p2)  }
   0xd   : > { %s1452_s13 = smov (!%p161_p3, %s1019_s13), 1 }
   0xe   : > { %s1118_s18 = sshll.u32 %s1452_s13, 6  ;;  %s1119_s15 = sshll.u32 %s1452_s13, 5 }
   0xf   : > { %s165_s21 = scalar_lea.vmem %s1447_s0, %s1118_s18  ;;  %s170_s18 = scalar_lea.vmem %s1450_s3, %s1119_s15 }
  0x10   : > { %v1354_v2 = vld [vmem:[%s165_s21 + $0x20] sm:$0xff]   ;;  %v1356_v3 = vld [vmem:[%s165_s21 + $0x28] sm:$0xff]   ;;  %v1278_v6 = vld [vmem:[%s165_s21 + $0x10] sm:$0xff]  }
  0x11   : > { %622 = vrot.lane.b32.xlu0 %v1354_v2, %s1308_s22  ;;  %v1276_v4 = vld [vmem:[%s165_s21] sm:$0xff]   ;;  %v1277_v5 = vld [vmem:[%s165_s21 + $0x8] sm:$0xff]   ;;  %v1279_v7 = vld [vmem:[%s165_s21 + $0x18] sm:$0xff]   ;;  %1156 = vmatprep.subr.bf16.mxu1 %v1278_v6 }
  0x12   : > { %702 = vrot.lane.b32.xlu1 %v1276_v4, %s1309_s23  ;;  %v1280_v8 = vld [vmem:[%s165_s21 + $0x30] sm:$0xff]   ;;  %1157 = vmatpush3.bf16.msra.mxu1 %v1278_v6  ;;  %v1283_v9 = vld [vmem:[%s165_s21 + $0x38] sm:$0xff]  }
  0x13   : > { %1158 = vmatprep.subr.bf16.mxu1 %v1279_v7  ;;  %1188 = vmatprep.subr.bf16.mxu0 %v1280_v8 }
  0x14   : > { %1189 = vmatpush3.bf16.msra.mxu0 %v1280_v8 }
  0x15   : > { %624 = vrot.lane.b32.xlu0 %v1356_v3, %s1308_s22  ;;  %1190 = vmatprep.subr.bf16.mxu0 %v1283_v9 }
  0x16   : > { %704 = vrot.lane.b32.xlu1 %v1277_v5, %s1309_s23  ;;  %1159 = vmatpush3.bf16.msra.mxu1 %v1279_v7 }
  0x17   : > { %1164 = vmatprep.subr.bf16.mxu1 %v1276_v4 }
  0x18   : > { %1191 = vmatpush3.bf16.msra.mxu0 %v1283_v9 }
  0x19   : > { %360 = vrot.lane.b32.xlu0 %v1276_v4, %s1308_s22  ;;  %1161 = vmatmul.mubr.msk.bf16.vlgmr.msra.gmra.mrb[0].mxu1 %vm212_vm0, %v1282_v10 }
  0x1a   : > { %782 = vrot.lane.b32.xlu1 %v1278_v6, %s1309_s23  ;;  %1165 = vmatpush3.bf16.msra.mxu1 %v1276_v4 }
  0x1b   : > { %1166 = vmatprep.subr.bf16.mxu1 %v1277_v5  ;;  %1168 = vmatprep.mubr.msk.bf16.mxu1 %vm212_vm0, %v1286_v11 }
  0x1c   : > { %1193 = vmatmul.mubr.msk.bf16.vlgmr.msra.gmra.mrb[0].mxu0 %vm212_vm0, %v1285_v12 }
  0x1d   : > { %362 = vrot.lane.b32.xlu0 %v1277_v5, %s1308_s22  ;;  %1200 = vmatprep.mubr.msk.bf16.mxu0 %vm212_vm0, %v1288_v13 }
  0x1e   : > { %784 = vrot.lane.b32.xlu1 %v1279_v7, %s1309_s23  ;;  %1167 = vmatpush3.bf16.msra.mxu1 %v1277_v5 }
  0x21   : > { %862 = vrot.lane.b32.xlu0 %v1276_v4, %s1310_s5 }
  0x22   : > { %864 = vrot.lane.b32.xlu1 %v1277_v5, %s1310_s5 }
  0x25   : > { %1169 = vmatmul.mubr.msk.bf16.vlgmr.msra.gmra.mrb[0].mxu1 %vm212_vm0, %v1287_v14  ;;  %933 = vperm.xlu0 %1272, %v927_v17  }
  0x26   : > { %1176 = vmatprep.mubr.msk.bf16.mxu1 %vm212_vm0, %v1290_v15  ;;  %938 = vperm.xlu1 %1273, %v928_v16  }
  0x29   : > { %948 = vperm.xlu0 %1272, %v930_v20  }
  0x2a   : > { %943 = vperm.xlu1 %1273, %v929_v19  }
  0x83   : > { %v623_v21 = vpop.permute.xlu0 %622 }
  0x84   : > { %1196 = vmatprep.subr.bf16.mxu0 %v623_v21  ;;  %v703_v22 = vpop.permute.xlu1 %702 }
  0x85   : > { %1197 = vmatpush3.bf16.msra.mxu0 %v623_v21 }
  0x87   : > { %v625_v23 = vpop.permute.xlu0 %624 }
  0x88   : > { %1198 = vmatprep.subr.bf16.mxu0 %v625_v23  ;;  %v705_v27 = vpop.permute.xlu1 %704 }
  0x89   : > { %1199 = vmatpush3.bf16.msra.mxu0 %v625_v23 }
  0x8a   : > { %1204 = vmatprep.subr.bf16.mxu0 %v703_v22 }
  0x8b   : > { %v361_v26 = vpop.permute.xlu0 %360 }
  0x8c   : > { %1172 = vmatprep.subr.bf16.mxu1 %v361_v26  ;;  %1201 = vmatmul.mubr.msk.bf16.vlgmr.msra.gmra.mrb[0].mxu0 %vm212_vm0, %v1289_v24  ;;  %v783_v29 = vpop.permute.xlu1 %782 }
  0x8d   : > { %1173 = vmatpush3.bf16.msra.mxu1 %v361_v26  ;;  %1205 = vmatpush3.bf16.msra.mxu0 %v703_v22 }
  0x8e   : > { %1206 = vmatprep.subr.bf16.mxu0 %v705_v27  ;;  %1208 = vmatprep.mubr.msk.bf16.mxu0 %vm212_vm0, %v1292_v25 }
  0x8f   : > { %v363_v28 = vpop.permute.xlu0 %362 }
  0x90   : > { %1174 = vmatprep.subr.bf16.mxu1 %v363_v28  ;;  %v785_v34 = vpop.permute.xlu1 %784 }
  0x91   : > { %1175 = vmatpush3.bf16.msra.mxu1 %v363_v28  ;;  %1207 = vmatpush3.bf16.msra.mxu0 %v705_v27 }
  0x92   : > { %1180 = vmatprep.subr.bf16.mxu1 %v1354_v2  ;;  %1212 = vmatprep.subr.bf16.mxu0 %v783_v29 }
  0x93   : > { %v863_v35 = vpop.permute.xlu0 %862 }
  0x94   : > { %1177 = vmatmul.mubr.msk.bf16.vlgmr.msra.gmra.mrb[0].mxu1 %vm212_vm0, %v1291_v30  ;;  %v865_v39 = vpop.permute.xlu1 %864 }
  0x95   : > { %1181 = vmatpush3.bf16.msra.mxu1 %v1354_v2  ;;  %1184 = vmatprep.mubr.msk.bf16.mxu1 %vm212_vm0, %v1294_v31 }
  0x96   : > { %1182 = vmatprep.subr.bf16.mxu1 %v1356_v3 }
  0x98   : > { %1209 = vmatmul.mubr.msk.bf16.vlgmr.msra.gmra.mrb[0].mxu0 %vm212_vm0, %v1293_v32 }
  0x99   : > { %1213 = vmatpush3.bf16.msra.mxu0 %v783_v29  ;;  %1183 = vmatpush3.bf16.msra.mxu1 %v1356_v3 }
  0x9a   : > { %1214 = vmatprep.subr.bf16.mxu0 %v785_v34  ;;  %1216 = vmatprep.mubr.msk.bf16.mxu0 %vm212_vm0, %v1296_v33 }
  0x9d   : > { %1215 = vmatpush3.bf16.msra.mxu0 %v785_v34 }
  0x9e   : > { %1220 = vmatprep.subr.bf16.mxu0 %v863_v35 }
  0xa0   : > { %1185 = vmatmul.mubr.msk.bf16.vlgmr.msra.gmra.mrb[0].mxu1 %vm212_vm0, %v1295_v36 }
  0xa4   : > { %1217 = vmatmul.mubr.msk.bf16.vlgmr.msra.gmra.mrb[0].mxu0 %vm212_vm0, %v1297_v37  ;;  %v934_v46 = vpop.permute.xlu0 %933 }
  0xa5   : > { %1221 = vmatpush3.bf16.msra.mxu0 %v863_v35  ;;  %1224 = vmatprep.mubr.msk.bf16.mxu0 %vm212_vm0, %v1298_v38  ;;  %v939_v45 = vpop.permute.xlu1 %938 }
  0xa6   : > { %1222 = vmatprep.subr.bf16.mxu0 %v865_v39 }
  0xa8   : > { %v949_v58 = vpop.permute.xlu0 %948 }
  0xa9   : > { %1223 = vmatpush3.bf16.msra.mxu0 %v865_v39  ;;  %v944_v48 = vpop.permute.xlu1 %943 }
  0xb0   : > { %1225 = vmatmul.mubr.msk.bf16.vlgmr.msra.gmra.mrb[0].mxu0 %vm212_vm0, %v1299_v40 }
 0x173   : > { %v1186_v41 = vpop.f32.mrb[0].mxu1 }
 0x174   : > { %v497_v42 = vpop.f32.mrb[1].mxu1 }
 0x175   : > { %v1187_v43 = vpop.f32.mrb[2].mxu1 }
 0x176   : > { %v500_v44 = vpop.f32.mrb[3].mxu1 }
 0x183   : > { %v1226_v47 = vpop.f32.mrb[0].mxu0 }
 0x184   : > { %v1228_v49 = vadd.f32 %v1226_v47, %v1186_v41  ;;  %v908_v50 = vpop.f32.mrb[1].mxu0 }
 0x185   : > { %v1229_v51 = vadd.f32 %v908_v50, %v497_v42  ;;  %v1227_v52 = vpop.f32.mrb[2].mxu0 }
 0x186   : > { %v1230_v53 = vadd.f32 %v1227_v52, %v1187_v43  ;;  %v953_v54 = vadd.f32 %v1228_v49, %v944_v48  ;;  %v911_v55 = vpop.f32.mrb[3].mxu0 }
 0x187   : > { %v951_v56 = vadd.f32 %v1229_v51, %v934_v46  ;;  %v1231_v57 = vadd.f32 %v911_v55, %v500_v44 }
 0x188   : > { %v957_v59 = vmax.f32 %v953_v54, 0.0  ;;  %v954_v60 = vadd.f32 %v1230_v53, %v949_v58 }
 0x189   : > { %v955_v61 = vmax.f32 %v951_v56, 0.0  ;;  %v952_v62 = vadd.f32 %v1231_v57, %v939_v45 }
 0x18a   : > { %962 = vst.msk [vmem:[%s170_s18 + $0x10] sm:$0xff] %vm959_vm1, %v957_v59  ;;  %v958_v63 = vmax.f32 %v954_v60, 0.0 }
 0x18b   : > { %960 = vst.msk [vmem:[%s170_s18] sm:$0xff] %vm959_vm1, %v955_v61  ;;  %v956_v0 = vmax.f32 %v952_v62, 0.0 }
 0x18c   : > { %963 = vst.msk [vmem:[%s170_s18 + $0x18] sm:$0xff] %vm959_vm1, %v958_v63 }
 0x18d   : > { %961 = vst.msk [vmem:[%s170_s18 + $0x8] sm:$0xff] %vm959_vm1, %v956_v0 }
 0x18e PF: > { %s13_s12 = sadd.s32 1, %s1306_s12  }
 0x18f   : > { %p10_p4 = scmp.ge.s32.totalorder %s13_s12, 4  }
 0x191   :  { %12 = sbr.rel (!%p10_p4) target bundleno = 1 (0x1), region = 73 }

// kernel: denoiser_forward.8
= control target key start
LH: loop header
LB: loop body
LE: loop exit
PB: predicated region body
PF: predicated region fallthrough
CT: control target
= control target key end

     0   :  { %s1332_s12 = smov 0   ;;  %s1447_s0 = inlined_call_operand.vmem [shape: bf16[2,4,32,30], index: 0, kind: input, shape index: {}]   ;;  %s1448_s1 = inlined_call_operand.vmem [shape: bf16[9,32,32], index: 1, kind: input, shape index: {}]   ;;  %s1449_s2 = inlined_call_operand.vmem [shape: f32[32,1], index: 2, kind: input, shape index: {}]   ;;  %s1450_s3 = inlined_call_operand.vmem [shape: f32[2,32,20], index: 3, kind: output, shape index: {}]  }
   0x1 LB: > { %s1019_s13 = sadd.s32 4294967295, %s1306_s12   ;;  %p1023_p0 = scmp.ge.s32.totalorder %s1306_s12, 1  ;;  %s1306_s12 = sphi %s1332_s12, %s13_s12  }
   0x2   : > { %p137_p1 = scmp.lt.s32.totalorder %s1306_s12, 3 }
   0x4   : > { %p138_p2 = pnand %p1023_p0, %p137_p1 }
   0x5   : > { %p161_p3 = scmp.lt.s32.totalorder (!%p138_p2), %s1019_s13, 1  ;;  %v1281_v0 = vld [vmem:[%s1448_s1 + $0x10] sm:$0xff] (!%p138_p2)   ;;  %vm212_vm0 = vcmask (!%p138_p2), 261120   ;;  %v1284_v1 = vld [vmem:[%s1448_s1 + $0x40] sm:$0xff] (!%p138_p2)   ;;  %s1308_s22 = smov (!%p138_p2), 127   ;;  %v1282_v10 = vld [vmem:[%s1448_s1 + $0x18] sm:$0xff] (!%p138_p2)  }
   0x6   : > { %141 = sbr.rel (%p138_p2) target bundleno = 398 (0x18e), region = 32  ;;  %1160 = vmatprep.mubr.msk.bf16.mxu1 (!%p138_p2), %vm212_vm0, %v1281_v0  ;;  %1192 = vmatprep.mubr.msk.bf16.mxu0 (!%p138_p2), %vm212_vm0, %v1284_v1  ;;  %s1309_s23 = smov (!%p138_p2), 123   ;;  %v1286_v11 = vld [vmem:[%s1448_s1] sm:$0xff] (!%p138_p2)   ;;  %v1285_v12 = vld [vmem:[%s1448_s1 + $0x48] sm:$0xff] (!%p138_p2)   ;;  %v1288_v13 = vld [vmem:[%s1448_s1 + $0x50] sm:$0xff] (!%p138_p2)   ;;  %v1311_v18 = vmov (!%p138_p2), 0  }
   0x7   : > { %s1310_s5 = smov (!%p138_p2), 122   ;;  %v1287_v14 = vld [vmem:[%s1448_s1 + $0x8] sm:$0xff] (!%p138_p2)   ;;  %v1290_v15 = vld [vmem:[%s1448_s1 + $0x20] sm:$0xff] (!%p138_p2)   ;;  %1273 = vset.pattern.permute.xlu1 (!%p138_p2), %v1311_v18  ;;  %1272 = vset.pattern.permute.xlu0 (!%p138_p2), %v1311_v18  ;;  %v929_v19 = vld [vmem:[%s1449_s2 + $0x10] sm:$0xff] (!%p138_p2)  ;;  %vm959_vm1 = vcmask (!%p138_p2), 162816  }
   0x8   : > { %v928_v16 = vld [vmem:[%s1449_s2 + $0x8] sm:$0xff] (!%p138_p2)  ;;  %v927_v17 = vld [vmem:[%s1449_s2] sm:$0xff] (!%p138_p2)  ;;  %v930_v20 = vld [vmem:[%s1449_s2 + $0x18] sm:$0xff] (!%p138_p2) }
   0x9   : > { %v1289_v24 = vld [vmem:[%s1448_s1 + $0x58] sm:$0xff] (!%p138_p2)   ;;  %v1292_v25 = vld [vmem:[%s1448_s1 + $0x60] sm:$0xff] (!%p138_p2)   ;;  %v1291_v30 = vld [vmem:[%s1448_s1 + $0x28] sm:$0xff] (!%p138_p2)  }
   0xa   : > { %v1294_v31 = vld [vmem:[%s1448_s1 + $0x30] sm:$0xff] (!%p138_p2)   ;;  %v1293_v32 = vld [vmem:[%s1448_s1 + $0x68] sm:$0xff] (!%p138_p2)   ;;  %v1295_v36 = vld [vmem:[%s1448_s1 + $0x38] sm:$0xff] (!%p138_p2)  }
   0xb   : > { %v1296_v33 = vld [vmem:[%s1448_s1 + $0x70] sm:$0xff] (!%p138_p2)   ;;  %v1297_v37 = vld [vmem:[%s1448_s1 + $0x78] sm:$0xff] (!%p138_p2)   ;;  %v1298_v38 = vld [vmem:[%s1448_s1 + $0x80] sm:$0xff] (!%p138_p2)  }
   0xc   : > { %v1299_v40 = vld [vmem:[%s1448_s1 + $0x88] sm:$0xff] (!%p138_p2)  }
   0xd   : > { %s1452_s13 = smov (!%p161_p3, %s1019_s13), 1 }
   0xe   : > { %s1118_s18 = sshll.u32 %s1452_s13, 6  ;;  %s1119_s15 = sshll.u32 %s1452_s13, 5 }
   0xf   : > { %s165_s21 = scalar_lea.vmem %s1447_s0, %s1118_s18  ;;  %s170_s18 = scalar_lea.vmem %s1450_s3, %s1119_s15 }
  0x10   : > { %v1354_v2 = vld [vmem:[%s165_s21 + $0x20] sm:$0xff]   ;;  %v1356_v3 = vld [vmem:[%s165_s21 + $0x28] sm:$0xff]   ;;  %v1278_v6 = vld [vmem:[%s165_s21 + $0x10] sm:$0xff]  }
  0x11   : > { %622 = vrot.lane.b32.xlu0 %v1354_v2, %s1308_s22  ;;  %v1276_v4 = vld [vmem:[%s165_s21] sm:$0xff]   ;;  %v1277_v5 = vld [vmem:[%s165_s21 + $0x8] sm:$0xff]   ;;  %v1279_v7 = vld [vmem:[%s165_s21 + $0x18] sm:$0xff]   ;;  %1156 = vmatprep.subr.bf16.mxu1 %v1278_v6 }
  0x12   : > { %702 = vrot.lane.b32.xlu1 %v1276_v4, %s1309_s23  ;;  %v1280_v8 = vld [vmem:[%s165_s21 + $0x30] sm:$0xff]   ;;  %1157 = vmatpush3.bf16.msra.mxu1 %v1278_v6  ;;  %v1283_v9 = vld [vmem:[%s165_s21 + $0x38] sm:$0xff]  }
  0x13   : > { %1158 = vmatprep.subr.bf16.mxu1 %v1279_v7  ;;  %1188 = vmatprep.subr.bf16.mxu0 %v1280_v8 }
  0x14   : > { %1189 = vmatpush3.bf16.msra.mxu0 %v1280_v8 }
  0x15   : > { %624 = vrot.lane.b32.xlu0 %v1356_v3, %s1308_s22  ;;  %1190 = vmatprep.subr.bf16.mxu0 %v1283_v9 }
  0x16   : > { %704 = vrot.lane.b32.xlu1 %v1277_v5, %s1309_s23  ;;  %1159 = vmatpush3.bf16.msra.mxu1 %v1279_v7 }
  0x17   : > { %1164 = vmatprep.subr.bf16.mxu1 %v1276_v4 }
  0x18   : > { %1191 = vmatpush3.bf16.msra.mxu0 %v1283_v9 }
  0x19   : > { %360 = vrot.lane.b32.xlu0 %v1276_v4, %s1308_s22  ;;  %1161 = vmatmul.mubr.msk.bf16.vlgmr.msra.gmra.mrb[0].mxu1 %vm212_vm0, %v1282_v10 }
  0x1a   : > { %782 = vrot.lane.b32.xlu1 %v1278_v6, %s1309_s23  ;;  %1165 = vmatpush3.bf16.msra.mxu1 %v1276_v4 }
  0x1b   : > { %1166 = vmatprep.subr.bf16.mxu1 %v1277_v5  ;;  %1168 = vmatprep.mubr.msk.bf16.mxu1 %vm212_vm0, %v1286_v11 }
  0x1c   : > { %1193 = vmatmul.mubr.msk.bf16.vlgmr.msra.gmra.mrb[0].mxu0 %vm212_vm0, %v1285_v12 }
  0x1d   : > { %362 = vrot.lane.b32.xlu0 %v1277_v5, %s1308_s22  ;;  %1200 = vmatprep.mubr.msk.bf16.mxu0 %vm212_vm0, %v1288_v13 }
  0x1e   : > { %784 = vrot.lane.b32.xlu1 %v1279_v7, %s1309_s23  ;;  %1167 = vmatpush3.bf16.msra.mxu1 %v1277_v5 }
  0x21   : > { %862 = vrot.lane.b32.xlu0 %v1276_v4, %s1310_s5 }
  0x22   : > { %864 = vrot.lane.b32.xlu1 %v1277_v5, %s1310_s5 }
  0x25   : > { %1169 = vmatmul.mubr.msk.bf16.vlgmr.msra.gmra.mrb[0].mxu1 %vm212_vm0, %v1287_v14  ;;  %933 = vperm.xlu0 %1272, %v927_v17  }
  0x26   : > { %1176 = vmatprep.mubr.msk.bf16.mxu1 %vm212_vm0, %v1290_v15  ;;  %938 = vperm.xlu1 %1273, %v928_v16  }
  0x29   : > { %948 = vperm.xlu0 %1272, %v930_v20  }
  0x2a   : > { %943 = vperm.xlu1 %1273, %v929_v19  }
  0x83   : > { %v623_v21 = vpop.permute.xlu0 %622 }
  0x84   : > { %1196 = vmatprep.subr.bf16.mxu0 %v623_v21  ;;  %v703_v22 = vpop.permute.xlu1 %702 }
  0x85   : > { %1197 = vmatpush3.bf16.msra.mxu0 %v623_v21 }
  0x87   : > { %v625_v23 = vpop.permute.xlu0 %624 }
  0x88   : > { %1198 = vmatprep.subr.bf16.mxu0 %v625_v23  ;;  %v705_v27 = vpop.permute.xlu1 %704 }
  0x89   : > { %1199 = vmatpush3.bf16.msra.mxu0 %v625_v23 }
  0x8a   : > { %1204 = vmatprep.subr.bf16.mxu0 %v703_v22 }
  0x8b   : > { %v361_v26 = vpop.permute.xlu0 %360 }
  0x8c   : > { %1172 = vmatprep.subr.bf16.mxu1 %v361_v26  ;;  %1201 = vmatmul.mubr.msk.bf16.vlgmr.msra.gmra.mrb[0].mxu0 %vm212_vm0, %v1289_v24  ;;  %v783_v29 = vpop.permute.xlu1 %782 }
  0x8d   : > { %1173 = vmatpush3.bf16.msra.mxu1 %v361_v26  ;;  %1205 = vmatpush3.bf16.msra.mxu0 %v703_v22 }
  0x8e   : > { %1206 = vmatprep.subr.bf16.mxu0 %v705_v27  ;;  %1208 = vmatprep.mubr.msk.bf16.mxu0 %vm212_vm0, %v1292_v25 }
  0x8f   : > { %v363_v28 = vpop.permute.xlu0 %362 }
  0x90   : > { %1174 = vmatprep.subr.bf16.mxu1 %v363_v28  ;;  %v785_v34 = vpop.permute.xlu1 %784 }
  0x91   : > { %1175 = vmatpush3.bf16.msra.mxu1 %v363_v28  ;;  %1207 = vmatpush3.bf16.msra.mxu0 %v705_v27 }
  0x92   : > { %1180 = vmatprep.subr.bf16.mxu1 %v1354_v2  ;;  %1212 = vmatprep.subr.bf16.mxu0 %v783_v29 }
  0x93   : > { %v863_v35 = vpop.permute.xlu0 %862 }
  0x94   : > { %1177 = vmatmul.mubr.msk.bf16.vlgmr.msra.gmra.mrb[0].mxu1 %vm212_vm0, %v1291_v30  ;;  %v865_v39 = vpop.permute.xlu1 %864 }
  0x95   : > { %1181 = vmatpush3.bf16.msra.mxu1 %v1354_v2  ;;  %1184 = vmatprep.mubr.msk.bf16.mxu1 %vm212_vm0, %v1294_v31 }
  0x96   : > { %1182 = vmatprep.subr.bf16.mxu1 %v1356_v3 }
  0x98   : > { %1209 = vmatmul.mubr.msk.bf16.vlgmr.msra.gmra.mrb[0].mxu0 %vm212_vm0, %v1293_v32 }
  0x99   : > { %1213 = vmatpush3.bf16.msra.mxu0 %v783_v29  ;;  %1183 = vmatpush3.bf16.msra.mxu1 %v1356_v3 }
  0x9a   : > { %1214 = vmatprep.subr.bf16.mxu0 %v785_v34  ;;  %1216 = vmatprep.mubr.msk.bf16.mxu0 %vm212_vm0, %v1296_v33 }
  0x9d   : > { %1215 = vmatpush3.bf16.msra.mxu0 %v785_v34 }
  0x9e   : > { %1220 = vmatprep.subr.bf16.mxu0 %v863_v35 }
  0xa0   : > { %1185 = vmatmul.mubr.msk.bf16.vlgmr.msra.gmra.mrb[0].mxu1 %vm212_vm0, %v1295_v36 }
  0xa4   : > { %1217 = vmatmul.mubr.msk.bf16.vlgmr.msra.gmra.mrb[0].mxu0 %vm212_vm0, %v1297_v37  ;;  %v934_v46 = vpop.permute.xlu0 %933 }
  0xa5   : > { %1221 = vmatpush3.bf16.msra.mxu0 %v863_v35  ;;  %1224 = vmatprep.mubr.msk.bf16.mxu0 %vm212_vm0, %v1298_v38  ;;  %v939_v45 = vpop.permute.xlu1 %938 }
  0xa6   : > { %1222 = vmatprep.subr.bf16.mxu0 %v865_v39 }
  0xa8   : > { %v949_v58 = vpop.permute.xlu0 %948 }
  0xa9   : > { %1223 = vmatpush3.bf16.msra.mxu0 %v865_v39  ;;  %v944_v48 = vpop.permute.xlu1 %943 }
  0xb0   : > { %1225 = vmatmul.mubr.msk.bf16.vlgmr.msra.gmra.mrb[0].mxu0 %vm212_vm0, %v1299_v40 }
 0x173   : > { %v1186_v41 = vpop.f32.mrb[0].mxu1 }
 0x174   : > { %v497_v42 = vpop.f32.mrb[1].mxu1 }
 0x175   : > { %v1187_v43 = vpop.f32.mrb[2].mxu1 }
 0x176   : > { %v500_v44 = vpop.f32.mrb[3].mxu1 }
 0x183   : > { %v1226_v47 = vpop.f32.mrb[0].mxu0 }
 0x184   : > { %v1228_v49 = vadd.f32 %v1226_v47, %v1186_v41  ;;  %v908_v50 = vpop.f32.mrb[1].mxu0 }
 0x185   : > { %v1229_v51 = vadd.f32 %v908_v50, %v497_v42  ;;  %v1227_v52 = vpop.f32.mrb[2].mxu0 }
 0x186   : > { %v1230_v53 = vadd.f32 %v1227_v52, %v1187_v43  ;;  %v953_v54 = vadd.f32 %v1228_v49, %v944_v48  ;;  %v911_v55 = vpop.f32.mrb[3].mxu0 }
 0x187   : > { %v951_v56 = vadd.f32 %v1229_v51, %v934_v46  ;;  %v1231_v57 = vadd.f32 %v911_v55, %v500_v44 }
 0x188   : > { %v957_v59 = vmax.f32 %v953_v54, 0.0  ;;  %v954_v60 = vadd.f32 %v1230_v53, %v949_v58 }
 0x189   : > { %v955_v61 = vmax.f32 %v951_v56, 0.0  ;;  %v952_v62 = vadd.f32 %v1231_v57, %v939_v45 }
 0x18a   : > { %962 = vst.msk [vmem:[%s170_s18 + $0x10] sm:$0xff] %vm959_vm1, %v957_v59  ;;  %v958_v63 = vmax.f32 %v954_v60, 0.0 }
 0x18b   : > { %960 = vst.msk [vmem:[%s170_s18] sm:$0xff] %vm959_vm1, %v955_v61  ;;  %v956_v0 = vmax.f32 %v952_v62, 0.0 }
 0x18c   : > { %963 = vst.msk [vmem:[%s170_s18 + $0x18] sm:$0xff] %vm959_vm1, %v958_v63 }
 0x18d   : > { %961 = vst.msk [vmem:[%s170_s18 + $0x8] sm:$0xff] %vm959_vm1, %v956_v0 }
 0x18e PF: > { %s13_s12 = sadd.s32 1, %s1306_s12  }
 0x18f   : > { %p10_p4 = scmp.ge.s32.totalorder %s13_s12, 4  }
 0x191   :  { %12 = sbr.rel (!%p10_p4) target bundleno = 1 (0x1), region = 73 }

// kernel: denoiser_forward.9
= control target key start
LH: loop header
LB: loop body
LE: loop exit
PB: predicated region body
PF: predicated region fallthrough
CT: control target
= control target key end

     0   :  { %s1332_s12 = smov 0   ;;  %s1447_s0 = inlined_call_operand.vmem [shape: bf16[2,4,32,12], index: 0, kind: input, shape index: {}]   ;;  %s1448_s1 = inlined_call_operand.vmem [shape: bf16[9,32,32], index: 1, kind: input, shape index: {}]   ;;  %s1449_s2 = inlined_call_operand.vmem [shape: f32[32,1], index: 2, kind: input, shape index: {}]   ;;  %s1450_s3 = inlined_call_operand.vmem [shape: f32[2,32,6], index: 3, kind: output, shape index: {}]  }
   0x1 LB: > { %s1019_s13 = sadd.s32 4294967295, %s1306_s12   ;;  %p1023_p0 = scmp.ge.s32.totalorder %s1306_s12, 1  ;;  %s1306_s12 = sphi %s1332_s12, %s13_s12  }
   0x2   : > { %p137_p1 = scmp.lt.s32.totalorder %s1306_s12, 3 }
   0x4   : > { %p138_p2 = pnand %p1023_p0, %p137_p1 }
   0x5   : > { %p161_p3 = scmp.lt.s32.totalorder (!%p138_p2), %s1019_s13, 1  ;;  %v1281_v0 = vld [vmem:[%s1448_s1 + $0x10] sm:$0xff] (!%p138_p2)   ;;  %vm212_vm0 = vcmask (!%p138_p2), 261120   ;;  %v1284_v1 = vld [vmem:[%s1448_s1 + $0x40] sm:$0xff] (!%p138_p2)   ;;  %s1308_s22 = smov (!%p138_p2), 127   ;;  %v1282_v10 = vld [vmem:[%s1448_s1 + $0x18] sm:$0xff] (!%p138_p2)  }
   0x6   : > { %141 = sbr.rel (%p138_p2) target bundleno = 398 (0x18e), region = 32  ;;  %1160 = vmatprep.mubr.msk.bf16.mxu1 (!%p138_p2), %vm212_vm0, %v1281_v0  ;;  %1192 = vmatprep.mubr.msk.bf16.mxu0 (!%p138_p2), %vm212_vm0, %v1284_v1  ;;  %s1309_s23 = smov (!%p138_p2), 125   ;;  %v1286_v11 = vld [vmem:[%s1448_s1] sm:$0xff] (!%p138_p2)   ;;  %v1285_v12 = vld [vmem:[%s1448_s1 + $0x48] sm:$0xff] (!%p138_p2)   ;;  %v1288_v13 = vld [vmem:[%s1448_s1 + $0x50] sm:$0xff] (!%p138_p2)   ;;  %v1311_v18 = vmov (!%p138_p2), 0  }
   0x7   : > { %s1310_s5 = smov (!%p138_p2), 124   ;;  %v1287_v14 = vld [vmem:[%s1448_s1 + $0x8] sm:$0xff] (!%p138_p2)   ;;  %v1290_v15 = vld [vmem:[%s1448_s1 + $0x20] sm:$0xff] (!%p138_p2)   ;;  %1273 = vset.pattern.permute.xlu1 (!%p138_p2), %v1311_v18  ;;  %1272 = vset.pattern.permute.xlu0 (!%p138_p2), %v1311_v18  ;;  %v929_v19 = vld [vmem:[%s1449_s2 + $0x10] sm:$0xff] (!%p138_p2)  ;;  %vm959_vm1 = vcmask (!%p138_p2), 48128  }
   0x8   : > { %v928_v16 = vld [vmem:[%s1449_s2 + $0x8] sm:$0xff] (!%p138_p2)  ;;  %v927_v17 = vld [vmem:[%s1449_s2] sm:$0xff] (!%p138_p2)  ;;  %v930_v20 = vld [vmem:[%s1449_s2 + $0x18] sm:$0xff] (!%p138_p2) }
   0x9   : > { %v1289_v24 = vld [vmem:[%s1448_s1 + $0x58] sm:$0xff] (!%p138_p2)   ;;  %v1292_v25 = vld [vmem:[%s1448_s1 + $0x60] sm:$0xff] (!%p138_p2)   ;;  %v1291_v30 = vld [vmem:[%s1448_s1 + $0x28] sm:$0xff] (!%p138_p2)  }
   0xa   : > { %v1294_v31 = vld [vmem:[%s1448_s1 + $0x30] sm:$0xff] (!%p138_p2)   ;;  %v1293_v32 = vld [vmem:[%s1448_s1 + $0x68] sm:$0xff] (!%p138_p2)   ;;  %v1295_v36 = vld [vmem:[%s1448_s1 + $0x38] sm:$0xff] (!%p138_p2)  }
   0xb   : > { %v1296_v33 = vld [vmem:[%s1448_s1 + $0x70] sm:$0xff] (!%p138_p2)   ;;  %v1297_v37 = vld [vmem:[%s1448_s1 + $0x78] sm:$0xff] (!%p138_p2)   ;;  %v1298_v38 = vld [vmem:[%s1448_s1 + $0x80] sm:$0xff] (!%p138_p2)  }
   0xc   : > { %v1299_v40 = vld [vmem:[%s1448_s1 + $0x88] sm:$0xff] (!%p138_p2)  }
   0xd   : > { %s1452_s13 = smov (!%p161_p3, %s1019_s13), 1 }
   0xe   : > { %s1118_s18 = sshll.u32 %s1452_s13, 6  ;;  %s1119_s15 = sshll.u32 %s1452_s13, 5 }
   0xf   : > { %s165_s21 = scalar_lea.vmem %s1447_s0, %s1118_s18  ;;  %s170_s18 = scalar_lea.vmem %s1450_s3, %s1119_s15 }
  0x10   : > { %v1354_v2 = vld [vmem:[%s165_s21 + $0x20] sm:$0xff]   ;;  %v1356_v3 = vld [vmem:[%s165_s21 + $0x28] sm:$0xff]   ;;  %v1278_v6 = vld [vmem:[%s165_s21 + $0x10] sm:$0xff]  }
  0x11   : > { %622 = vrot.lane.b32.xlu0 %v1354_v2, %s1308_s22  ;;  %v1276_v4 = vld [vmem:[%s165_s21] sm:$0xff]   ;;  %v1277_v5 = vld [vmem:[%s165_s21 + $0x8] sm:$0xff]   ;;  %v1279_v7 = vld [vmem:[%s165_s21 + $0x18] sm:$0xff]   ;;  %1156 = vmatprep.subr.bf16.mxu1 %v1278_v6 }
  0x12   : > { %702 = vrot.lane.b32.xlu1 %v1276_v4, %s1309_s23  ;;  %v1280_v8 = vld [vmem:[%s165_s21 + $0x30] sm:$0xff]   ;;  %1157 = vmatpush3.bf16.msra.mxu1 %v1278_v6  ;;  %v1283_v9 = vld [vmem:[%s165_s21 + $0x38] sm:$0xff]  }
  0x13   : > { %1158 = vmatprep.subr.bf16.mxu1 %v1279_v7  ;;  %1188 = vmatprep.subr.bf16.mxu0 %v1280_v8 }
  0x14   : > { %1189 = vmatpush3.bf16.msra.mxu0 %v1280_v8 }
  0x15   : > { %624 = vrot.lane.b32.xlu0 %v1356_v3, %s1308_s22  ;;  %1190 = vmatprep.subr.bf16.mxu0 %v1283_v9 }
  0x16   : > { %704 = vrot.lane.b32.xlu1 %v1277_v5, %s1309_s23  ;;  %1159 = vmatpush3.bf16.msra.mxu1 %v1279_v7 }
  0x17   : > { %1164 = vmatprep.subr.bf16.mxu1 %v1276_v4 }
  0x18   : > { %1191 = vmatpush3.bf16.msra.mxu0 %v1283_v9 }
  0x19   : > { %360 = vrot.lane.b32.xlu0 %v1276_v4, %s1308_s22  ;;  %1161 = vmatmul.mubr.msk.bf16.vlgmr.msra.gmra.mrb[0].mxu1 %vm212_vm0, %v1282_v10 }
  0x1a   : > { %782 = vrot.lane.b32.xlu1 %v1278_v6, %s1309_s23  ;;  %1165 = vmatpush3.bf16.msra.mxu1 %v1276_v4 }
  0x1b   : > { %1166 = vmatprep.subr.bf16.mxu1 %v1277_v5  ;;  %1168 = vmatprep.mubr.msk.bf16.mxu1 %vm212_vm0, %v1286_v11 }
  0x1c   : > { %1193 = vmatmul.mubr.msk.bf16.vlgmr.msra.gmra.mrb[0].mxu0 %vm212_vm0, %v1285_v12 }
  0x1d   : > { %362 = vrot.lane.b32.xlu0 %v1277_v5, %s1308_s22  ;;  %1200 = vmatprep.mubr.msk.bf16.mxu0 %vm212_vm0, %v1288_v13 }
  0x1e   : > { %784 = vrot.lane.b32.xlu1 %v1279_v7, %s1309_s23  ;;  %1167 = vmatpush3.bf16.msra.mxu1 %v1277_v5 }
  0x21   : > { %862 = vrot.lane.b32.xlu0 %v1276_v4, %s1310_s5 }
  0x22   : > { %864 = vrot.lane.b32.xlu1 %v1277_v5, %s1310_s5 }
  0x25   : > { %1169 = vmatmul.mubr.msk.bf16.vlgmr.msra.gmra.mrb[0].mxu1 %vm212_vm0, %v1287_v14  ;;  %933 = vperm.xlu0 %1272, %v927_v17  }
  0x26   : > { %1176 = vmatprep.mubr.msk.bf16.mxu1 %vm212_vm0, %v1290_v15  ;;  %938 = vperm.xlu1 %1273, %v928_v16  }
  0x29   : > { %948 = vperm.xlu0 %1272, %v930_v20  }
  0x2a   : > { %943 = vperm.xlu1 %1273, %v929_v19  }
  0x83   : > { %v623_v21 = vpop.permute.xlu0 %622 }
  0x84   : > { %1196 = vmatprep.subr.bf16.mxu0 %v623_v21  ;;  %v703_v22 = vpop.permute.xlu1 %702 }
  0x85   : > { %1197 = vmatpush3.bf16.msra.mxu0 %v623_v21 }
  0x87   : > { %v625_v23 = vpop.permute.xlu0 %624 }
  0x88   : > { %1198 = vmatprep.subr.bf16.mxu0 %v625_v23  ;;  %v705_v27 = vpop.permute.xlu1 %704 }
  0x89   : > { %1199 = vmatpush3.bf16.msra.mxu0 %v625_v23 }
  0x8a   : > { %1204 = vmatprep.subr.bf16.mxu0 %v703_v22 }
  0x8b   : > { %v361_v26 = vpop.permute.xlu0 %360 }
  0x8c   : > { %1172 = vmatprep.subr.bf16.mxu1 %v361_v26  ;;  %1201 = vmatmul.mubr.msk.bf16.vlgmr.msra.gmra.mrb[0].mxu0 %vm212_vm0, %v1289_v24  ;;  %v783_v29 = vpop.permute.xlu1 %782 }
  0x8d   : > { %1173 = vmatpush3.bf16.msra.mxu1 %v361_v26  ;;  %1205 = vmatpush3.bf16.msra.mxu0 %v703_v22 }
  0x8e   : > { %1206 = vmatprep.subr.bf16.mxu0 %v705_v27  ;;  %1208 = vmatprep.mubr.msk.bf16.mxu0 %vm212_vm0, %v1292_v25 }
  0x8f   : > { %v363_v28 = vpop.permute.xlu0 %362 }
  0x90   : > { %1174 = vmatprep.subr.bf16.mxu1 %v363_v28  ;;  %v785_v34 = vpop.permute.xlu1 %784 }
  0x91   : > { %1175 = vmatpush3.bf16.msra.mxu1 %v363_v28  ;;  %1207 = vmatpush3.bf16.msra.mxu0 %v705_v27 }
  0x92   : > { %1180 = vmatprep.subr.bf16.mxu1 %v1354_v2  ;;  %1212 = vmatprep.subr.bf16.mxu0 %v783_v29 }
  0x93   : > { %v863_v35 = vpop.permute.xlu0 %862 }
  0x94   : > { %1177 = vmatmul.mubr.msk.bf16.vlgmr.msra.gmra.mrb[0].mxu1 %vm212_vm0, %v1291_v30  ;;  %v865_v39 = vpop.permute.xlu1 %864 }
  0x95   : > { %1181 = vmatpush3.bf16.msra.mxu1 %v1354_v2  ;;  %1184 = vmatprep.mubr.msk.bf16.mxu1 %vm212_vm0, %v1294_v31 }
  0x96   : > { %1182 = vmatprep.subr.bf16.mxu1 %v1356_v3 }
  0x98   : > { %1209 = vmatmul.mubr.msk.bf16.vlgmr.msra.gmra.mrb[0].mxu0 %vm212_vm0, %v1293_v32 }
  0x99   : > { %1213 = vmatpush3.bf16.msra.mxu0 %v783_v29  ;;  %1183 = vmatpush3.bf16.msra.mxu1 %v1356_v3 }
  0x9a   : > { %1214 = vmatprep.subr.bf16.mxu0 %v785_v34  ;;  %1216 = vmatprep.mubr.msk.bf16.mxu0 %vm212_vm0, %v1296_v33 }
  0x9d   : > { %1215 = vmatpush3.bf16.msra.mxu0 %v785_v34 }
  0x9e   : > { %1220 = vmatprep.subr.bf16.mxu0 %v863_v35 }
  0xa0   : > { %1185 = vmatmul.mubr.msk.bf16.vlgmr.msra.gmra.mrb[0].mxu1 %vm212_vm0, %v1295_v36 }
  0xa4   : > { %1217 = vmatmul.mubr.msk.bf16.vlgmr.msra.gmra.mrb[0].mxu0 %vm212_vm0, %v1297_v37  ;;  %v934_v46 = vpop.permute.xlu0 %933 }
  0xa5   : > { %1221 = vmatpush3.bf16.msra.mxu0 %v863_v35  ;;  %1224 = vmatprep.mubr.msk.bf16.mxu0 %vm212_vm0, %v1298_v38  ;;  %v939_v45 = vpop.permute.xlu1 %938 }
  0xa6   : > { %1222 = vmatprep.subr.bf16.mxu0 %v865_v39 }
  0xa8   : > { %v949_v58 = vpop.permute.xlu0 %948 }
  0xa9   : > { %1223 = vmatpush3.bf16.msra.mxu0 %v865_v39  ;;  %v944_v48 = vpop.permute.xlu1 %943 }
  0xb0   : > { %1225 = vmatmul.mubr.msk.bf16.vlgmr.msra.gmra.mrb[0].mxu0 %vm212_vm0, %v1299_v40 }
 0x173   : > { %v1186_v41 = vpop.f32.mrb[0].mxu1 }
 0x174   : > { %v497_v42 = vpop.f32.mrb[1].mxu1 }
 0x175   : > { %v1187_v43 = vpop.f32.mrb[2].mxu1 }
 0x176   : > { %v500_v44 = vpop.f32.mrb[3].mxu1 }
 0x183   : > { %v1226_v47 = vpop.f32.mrb[0].mxu0 }
 0x184   : > { %v1228_v49 = vadd.f32 %v1226_v47, %v1186_v41  ;;  %v908_v50 = vpop.f32.mrb[1].mxu0 }
 0x185   : > { %v1229_v51 = vadd.f32 %v908_v50, %v497_v42  ;;  %v1227_v52 = vpop.f32.mrb[2].mxu0 }
 0x186   : > { %v1230_v53 = vadd.f32 %v1227_v52, %v1187_v43  ;;  %v953_v54 = vadd.f32 %v1228_v49, %v944_v48  ;;  %v911_v55 = vpop.f32.mrb[3].mxu0 }
 0x187   : > { %v951_v56 = vadd.f32 %v1229_v51, %v934_v46  ;;  %v1231_v57 = vadd.f32 %v911_v55, %v500_v44 }
 0x188   : > { %v957_v59 = vmax.f32 %v953_v54, 0.0  ;;  %v954_v60 = vadd.f32 %v1230_v53, %v949_v58 }
 0x189   : > { %v955_v61 = vmax.f32 %v951_v56, 0.0  ;;  %v952_v62 = vadd.f32 %v1231_v57, %v939_v45 }
 0x18a   : > { %962 = vst.msk [vmem:[%s170_s18 + $0x10] sm:$0xff] %vm959_vm1, %v957_v59  ;;  %v958_v63 = vmax.f32 %v954_v60, 0.0 }
 0x18b   : > { %960 = vst.msk [vmem:[%s170_s18] sm:$0xff] %vm959_vm1, %v955_v61  ;;  %v956_v0 = vmax.f32 %v952_v62, 0.0 }
 0x18c   : > { %963 = vst.msk [vmem:[%s170_s18 + $0x18] sm:$0xff] %vm959_vm1, %v958_v63 }
 0x18d   : > { %961 = vst.msk [vmem:[%s170_s18 + $0x8] sm:$0xff] %vm959_vm1, %v956_v0 }
 0x18e PF: > { %s13_s12 = sadd.s32 1, %s1306_s12  }
 0x18f   : > { %p10_p4 = scmp.ge.s32.totalorder %s13_s12, 4  }
 0x191   :  { %12 = sbr.rel (!%p10_p4) target bundleno = 1 (0x1), region = 73 }

// kernel: denoiser_forward.10
= control target key start
LH: loop header
LB: loop body
LE: loop exit
PB: predicated region body
PF: predicated region fallthrough
CT: control target
= control target key end

     0   :  { %s1542_s18 = smov 0   ;;  %s1669_s0 = inlined_call_operand.vmem [shape: bf16[2,4,32], index: 0, kind: input, shape index: {}]   ;;  %s1670_s1 = inlined_call_operand.vmem [shape: bf16[32,96], index: 1, kind: input, shape index: {}]   ;;  %s1671_s2 = inlined_call_operand.vmem [shape: f32[1,96], index: 2, kind: input, shape index: {}]   ;;  %s1672_s3 = inlined_call_operand.vmem [shape: f32[4,8,32], index: 3, kind: input, shape index: {}]   ;;  %s1673_s4 = inlined_call_operand.vmem [shape: f32[1,32], index: 4, kind: input, shape index: {}]   ;;  %s1674_s5 = inlined_call_operand.vmem [shape: f32[2,4,32], index: 5, kind: output, shape index: {}]  }
   0x1 LB: > { %s1320_s19 = sadd.s32 4294967295, %s1497_s18   ;;  %p1324_p0 = scmp.ge.s32.totalorder %s1497_s18, 1  ;;  %s1497_s18 = sphi %s1542_s18, %s15_s18  }
   0x2   : > { %p186_p1 = scmp.lt.s32.totalorder %s1497_s18, 3 }
   0x4   : > { %p187_p2 = pnand %p1324_p0, %p186_p1 }
   0x5   : > { %v1473_v0 = vld [vmem:[%s1670_s1] sm:$0xff] (!%p187_p2)   ;;  %v1499_v1 = vmov (!%p187_p2), 0.0   ;;  %v1474_v2 = vld [vmem:[%s1670_s1 + $0x8] sm:$0xff] (!%p187_p2)   ;;  %vm1500_vm0 = vmmov (!%p187_p2), 0   ;;  %p212_p3 = scmp.lt.s32.totalorder (!%p187_p2), %s1320_s19, 1  ;;  %vm245_vm1 = vcmask (!%p187_p2), 261120  }
   0x6   : > { %190 = sbr.rel (%p187_p2) target bundleno = 3106 (0xc22), region = 40  ;;  %1384 = vmatprep.subr.bf16.mxu0 (!%p187_p2), %v1499_v1  ;;  %1392 = vmatprep.subr.mxu1 (!%p187_p2), %v1499_v1  ;;  %v1327_v4 = vld [vmem:[%s1671_s2] ss:$0 sm:$0xff] (!%p187_p2)  ;;  %s1501_s30 = smov (!%p187_p2), 64   ;;  %vm292_vm2 = vcmask (!%p187_p2), 64512   ;;  %vm385_vm3 = vcmask (!%p187_p2), 1043456  }
   0x7   : > { %1385 = vmatpush3.bf16.msra.mxu0 (!%p187_p2), %v1473_v0  ;;  %1388 = vmatprep.mubr.msk.bf16.mxu0 (!%p187_p2), %vm1500_vm0, %v1499_v1  ;;  %s1502_s6 = smov (!%p187_p2), 96   ;;  %s1503_s7 = smov (!%p187_p2), 88   ;;  %vm367_vm4 = vcmask (!%p187_p2), 27648   ;;  %vm381_vm5 = vcmask (!%p187_p2), 31744   ;;  %v1339_v35 = vld [vmem:[%s1672_s3 + $0x8] sm:$0xff] (!%p187_p2)  ;;  %v458_v40 = vld [vmem:[%s1672_s3] sm:$0xff] (!%p187_p2) }
   0x8   : > { %1386 = vmatprep.subr.bf16.mxu0 (!%p187_p2), %v1499_v1  ;;  %1394 = vmatprep.mubr.msk.f32.mxu1 (!%p187_p2), %vm1500_vm0, %v1499_v1  ;;  %s1504_s8 = smov (!%p187_p2), 120   ;;  %s1505_s9 = smov (!%p187_p2), 56   ;;  %v1346_v0 = vld [vmem:[%s1672_s3 + $0x10] sm:$0xff] (!%p187_p2)  ;;  %vm1265_vm6 = vcmask (!%p187_p2), 257024  }
   0x9   : > { %s1506_s10 = smov (!%p187_p2), 80   ;;  %s1507_s11 = smov (!%p187_p2), 112  }
   0xa   : > { %s1508_s16 = smov (!%p187_p2), 48   ;;  %s1509_s17 = smov (!%p187_p2), 72  }
   0xb   : > { %1387 = vmatpush3.bf16.msra.mxu0 (!%p187_p2), %v1474_v2  ;;  %s1510_s20 = smov (!%p187_p2), 104   ;;  %s1511_s23 = smov (!%p187_p2), 40  }
   0xc   : > { %1407 = vmatprep.subr.mxu0 (!%p187_p2), %v1499_v1 }
   0xd   : > { %s1676_s19 = smov (!%p212_p3, %s1320_s19), 1 }
   0xe   : > { %s1325_s24 = sshll.u32 %s1676_s19, 1  ;;  %s1326_s26 = sshll.u32 %s1676_s19, 2 }
   0xf   : > { %s215_s27 = scalar_lea.vmem %s1669_s0, %s1325_s24 }
  0x10   : > { %v221_v3 = vld [vmem:[%s215_s27] sm:$0x3] }
  0x11   : > { %1389 = vmatmul.mubr.msk.bf16.vlgmr.msra.gmra.mrb[0].mxu0 %vm245_vm1, %v221_v3 }
  0x12   : > { %1409 = vmatprep.mubr.msk.f32.mxu0 %vm1500_vm0, %v1499_v1 }
  0xe4   : > { %v283_v5 = vpop.f32.mrb[0].mxu0 }
  0xe5   : > { %v1575_v6 = vadd.f32 %v1327_v4, %v283_v5  ;;  %v1390_v7 = vpop.f32.mrb[1].mxu0 }
  0xe6   : > { %v286_v8 = vpop.f32.mrb[2].mxu0 }
  0xe7   : > { %379 = vrot.lane.b32.xlu1 %v1575_v6, %s1501_s30  ;;  %290 = vrot.lane.b32.xlu0 %v1575_v6, %s1502_s6  ;;  %v1391_v9 = vpop.f32.mrb[3].mxu0  ;;  %s219_s6 = scalar_lea.vmem %s1674_s5, %s1326_s26 }
  0xeb   : > { %461 = vrot.lane.b32.xlu1 %v1575_v6, %s1503_s7 }
 0x159   : > { %v291_v10 = vpop.permute.xlu0 %290  ;;  %v380_v11 = vpop.permute.xlu1 %379 }
 0x15a   : > { %1393 = vmatpush3.xpose.msk.msra.mxu1 %vm292_vm2, %v291_v10 }
 0x15b   : > { %1397 = vmatprep.subr.mxu1 %v1499_v1 }
 0x15d   : > { %1395 = vmatmul.mubr.msk.f32.vlgmr.msra.gmra.mrb[0].mxu1 %vm292_vm2, %v1575_v6  ;;  %v462_v20 = vpop.permute.xlu1 %461 }
 0x15e   : > { %1398 = vmatpush3.msk.msra.mxu1 %vm385_vm3, %v380_v11  ;;  %1399 = vmatprep.mubr.msk.f32.mxu1 %vm1500_vm0, %v1499_v1 }
 0x15f   : > { %1402 = vmatprep.subr.mxu1 %v1499_v1 }
 0x230   : > { %v363_v12 = vpop.f32.mrb[0].mxu1 }
 0x231   : > { %v1396_v13 = vpop.f32.mrb[1].mxu1  ;;  %v368_v14 = vsel %vm367_vm4, %v363_v12, -inf }
 0x232   : > { %369 = vmax.xlane.f32.xlu0 %v368_v14 }
 0x2bf   : > { %v370_v15 = vpop.xlane.xlu0 %369 }
 0x2c0   : > { %v371_v16 = vsub.f32 %v363_v12, %v370_v15 }
 0x2c2   : > { %v372_v17 = vmul.f32 1.442695, %v371_v16 }
 0x2c4   : > { %1475 = vpow2.f32 %v372_v17 }
 0x2ce   : > { %v1476_v18 = vpop.eup %1475 }
 0x2cf   : > { %v374_v19 = vsel %vm367_vm4, %v1476_v18, 0.0 }
 0x2d0   : > { %375 = vadd.xlane.f32.xlu1 %v374_v19 }
 0x2e1   : > { %459 = vrot.lane.b32.xlu1 %v1575_v6, %s1504_s8 }
 0x35d   : > { %v376_v21 = vpop.xlane.xlu1 %375 }
 0x35e   : > { %1477 = vrcp.f32 %v376_v21 }
 0x361   : > { %v460_v24 = vpop.permute.xlu1 %459 }
 0x368   : > { %v1478_v22 = vpop.eup %1477 }
 0x369   : > { %v378_v23 = vmul.f32 %v1478_v22, %v1476_v18  ;;  %v1354_v22 = vld [vmem:[%s1673_s4] ss:$0 sm:$0xff] }
 0x36b   : > { %1400 = vmatmul.mubr.msk.f32.vlgmr.msra.gmra.mrb[2].mxu1 %vm381_vm5, %v378_v23 }
 0x36c   : > { %1403 = vmatpush3.xpose.msk.msra.mxu1 %vm292_vm2, %v462_v20  ;;  %1404 = vmatprep.mubr.msk.f32.mxu1 %vm1500_vm0, %v1499_v1 }
 0x36d   : > { %1412 = vmatprep.subr.mxu1 %v1499_v1 }
 0x36f   : > { %1405 = vmatmul.mubr.msk.f32.vlgmr.msra.gmra.mrb[4].mxu1 %vm292_vm2, %v460_v24 }
 0x370   : > { %1414 = vmatprep.mubr.msk.f32.mxu1 %vm1500_vm0, %v1499_v1  ;;  %1413 = vmatpush3.msra.mxu1 %v1339_v35 }
 0x371   : > { %1422 = vmatprep.subr.mxu1 %v1499_v1 }
 0x43e   : > { %v454_v25 = vpop.f32.mrb[2].mxu1 }
 0x43f   : > { %v1401_v26 = vpop.f32.mrb[3].mxu1 }
 0x442   : > { %v533_v27 = vpop.f32.mrb[4].mxu1 }
 0x443   : > { %v1406_v28 = vpop.f32.mrb[5].mxu1  ;;  %v537_v29 = vsel %vm367_vm4, %v533_v27, -inf }
 0x444   : > { %538 = vmax.xlane.f32.xlu1 %v537_v29 }
 0x4d1   : > { %v539_v30 = vpop.xlane.xlu1 %538 }
 0x4d2   : > { %v540_v31 = vsub.f32 %v533_v27, %v539_v30 }
 0x4d4   : > { %v541_v32 = vmul.f32 1.442695, %v540_v31 }
 0x4d6   : > { %1479 = vpow2.f32 %v541_v32 }
 0x4e0   : > { %v1480_v33 = vpop.eup %1479 }
 0x4e1   : > { %v543_v34 = vsel %vm367_vm4, %v1480_v33, 0.0 }
 0x4e2   : > { %544 = vadd.xlane.f32.xlu0 %v543_v34 }
 0x4f8   : > { %548 = vrot.lane.b32.xlu0 %v1575_v6, %s1505_s9 }
 0x4fc   : > { %775 = vrot.lane.b32.xlu0 %v1575_v6, %s1506_s10 }
 0x500   : > { %773 = vrot.lane.b32.xlu0 %v1575_v6, %s1507_s11 }
 0x56f   : > { %v545_v36 = vpop.xlane.xlu0 %544 }
 0x570   : > { %1481 = vrcp.f32 %v545_v36 }
 0x573   : > { %v549_v37 = vpop.permute.xlu0 %548 }
 0x574   : > { %1408 = vmatpush3.msk.msra.mxu0 %vm385_vm3, %v549_v37 }
 0x575   : > { %1417 = vmatprep.subr.mxu0 %v1499_v1 }
 0x577   : > { %v776_v41 = vpop.permute.xlu0 %775 }
 0x57a   : > { %v1482_v38 = vpop.eup %1481 }
 0x57b   : > { %v547_v39 = vmul.f32 %v1482_v38, %v1480_v33  ;;  %v774_v44 = vpop.permute.xlu0 %773 }
 0x57d   : > { %1410 = vmatmul.mubr.msk.f32.vlgmr.msra.gmra.mrb[4].mxu0 %vm381_vm5, %v547_v39 }
 0x57e   : > { %1418 = vmatpush3.msra.mxu0 %v458_v40  ;;  %1419 = vmatprep.mubr.msk.f32.mxu0 %vm1500_vm0, %v1499_v1 }
 0x57f   : > { %1427 = vmatprep.subr.mxu0 %v1499_v1 }
 0x581   : > { %1420 = vmatmul.mubr.msk.f32.vlgmr.msra.gmra.mrb[6].mxu0 %vm292_vm2, %v454_v25 }
 0x582   : > { %1429 = vmatprep.mubr.msk.f32.mxu0 %vm1500_vm0, %v1499_v1 }
 0x650   : > { %v621_v42 = vpop.f32.mrb[4].mxu0 }
 0x651   : > { %v1411_v43 = vpop.f32.mrb[5].mxu0  ;;  %1415 = vmatmul.mubr.msk.f32.vlgmr.msra.gmra.mrb[6].mxu1 %vm292_vm2, %v621_v42 }
 0x652   : > { %1423 = vmatpush3.xpose.msk.msra.mxu1 %vm292_vm2, %v776_v41  ;;  %1424 = vmatprep.mubr.msk.f32.mxu1 %vm1500_vm0, %v1499_v1 }
 0x653   : > { %1432 = vmatprep.subr.mxu1 %v1499_v1 }
 0x654   : > { %v769_v45 = vpop.f32.mrb[6].mxu0 }
 0x655   : > { %v1421_v46 = vpop.f32.mrb[7].mxu0  ;;  %1425 = vmatmul.mubr.msk.f32.vlgmr.msra.gmra.mrb[8].mxu1 %vm292_vm2, %v774_v44 }
 0x656   : > { %1434 = vmatprep.mubr.msk.f32.mxu1 %vm1500_vm0, %v1499_v1  ;;  %1433 = vmatpush3.msra.mxu1 %v1346_v0 }
 0x657   : > { %1442 = vmatprep.subr.mxu1 %v1499_v1 }
 0x724   : > { %v696_v47 = vpop.f32.mrb[6].mxu1 }
 0x725   : > { %v770_v48 = vadd.f32 %v769_v45, %v696_v47  ;;  %v1416_v49 = vpop.f32.mrb[7].mxu1 }
 0x728   : > { %v847_v50 = vpop.f32.mrb[8].mxu1 }
 0x729   : > { %v1426_v51 = vpop.f32.mrb[9].mxu1  ;;  %v851_v52 = vsel %vm367_vm4, %v847_v50, -inf }
 0x72a   : > { %852 = vmax.xlane.f32.xlu1 %v851_v52 }
 0x73b   : > { %862 = vrot.lane.b32.xlu1 %v1575_v6, %s1508_s16 }
 0x73f   : > { %1017 = vrot.lane.b32.xlu1 %v1575_v6, %s1509_s17 }
 0x743   : > { %1015 = vrot.lane.b32.xlu1 %v1575_v6, %s1510_s20 }
 0x7b7   : > { %v853_v53 = vpop.xlane.xlu1 %852 }
 0x7b8   : > { %v854_v54 = vsub.f32 %v847_v50, %v853_v53 }
 0x7ba   : > { %v855_v55 = vmul.f32 1.442695, %v854_v54 }
 0x7bb   : > { %v863_v56 = vpop.permute.xlu1 %862 }
 0x7bc   : > { %1483 = vpow2.f32 %v855_v55  ;;  %1428 = vmatpush3.msk.msra.mxu0 %vm385_vm3, %v863_v56 }
 0x7bd   : > { %1437 = vmatprep.subr.mxu0 %v1499_v1 }
 0x7bf   : > { %v1018_v61 = vpop.permute.xlu1 %1017 }
 0x7c3   : > { %v1016_v63 = vpop.permute.xlu1 %1015 }
 0x7c6   : > { %v1484_v57 = vpop.eup %1483 }
 0x7c7   : > { %v857_v58 = vsel %vm367_vm4, %v1484_v57, 0.0 }
 0x7c8   : > { %858 = vadd.xlane.f32.xlu0 %v857_v58 }
 0x855   : > { %v859_v59 = vpop.xlane.xlu0 %858 }
 0x856   : > { %1485 = vrcp.f32 %v859_v59 }
 0x860   : > { %v1486_v60 = vpop.eup %1485 }
 0x861   : > { %v861_v62 = vmul.f32 %v1486_v60, %v1484_v57 }
 0x863   : > { %1430 = vmatmul.mubr.msk.f32.vlgmr.msra.gmra.mrb[8].mxu0 %vm381_vm5, %v861_v62 }
 0x864   : > { %1438 = vmatpush3.xpose.msk.msra.mxu0 %vm292_vm2, %v1018_v61  ;;  %1439 = vmatprep.mubr.msk.f32.mxu0 %vm1500_vm0, %v1499_v1 }
 0x865   : > { %1447 = vmatprep.subr.mxu0 %v1499_v1 }
 0x867   : > { %1440 = vmatmul.mubr.msk.f32.vlgmr.msra.gmra.mrb[10].mxu0 %vm292_vm2, %v1016_v63 }
 0x868   : > { %1449 = vmatprep.mubr.msk.f32.mxu0 %vm1500_vm0, %v1499_v1 }
 0x936   : > { %v935_v2 = vpop.f32.mrb[8].mxu0 }
 0x937   : > { %v1431_v3 = vpop.f32.mrb[9].mxu0  ;;  %1435 = vmatmul.mubr.msk.f32.vlgmr.msra.gmra.mrb[10].mxu1 %vm292_vm2, %v935_v2 }
 0x938   : > { %1444 = vmatprep.mubr.msk.f32.mxu1 %vm1500_vm0, %v1499_v1  ;;  %v1352_v1 = vld [vmem:[%s1672_s3 + $0x18] sm:$0xff] }
 0x939   : > { %1448 = vmatpush3.msra.mxu0 %v1352_v1 }
 0x93a   : > { %v1089_v4 = vpop.f32.mrb[10].mxu0 }
 0x93b   : > { %v1441_v5 = vpop.f32.mrb[11].mxu0  ;;  %v1093_v7 = vsel %vm367_vm4, %v1089_v4, -inf }
 0x93c   : > { %1094 = vmax.xlane.f32.xlu1 %v1093_v7 }
 0x9c9   : > { %v1095_v8 = vpop.xlane.xlu1 %1094 }
 0x9ca   : > { %v1096_v9 = vsub.f32 %v1089_v4, %v1095_v8 }
 0x9cc   : > { %v1097_v10 = vmul.f32 1.442695, %v1096_v9 }
 0x9ce   : > { %1487 = vpow2.f32 %v1097_v10 }
 0x9d8   : > { %v1488_v11 = vpop.eup %1487 }
 0x9d9   : > { %v1099_v12 = vsel %vm367_vm4, %v1488_v11, 0.0 }
 0x9da   : > { %1100 = vadd.xlane.f32.xlu0 %v1099_v12 }
 0x9f0   : > { %1104 = vrot.lane.b32.xlu0 %v1575_v6, %s1511_s23 }
 0xa0a   : > { %v1010_v13 = vpop.f32.mrb[10].mxu1 }
 0xa0b   : > { %v1014_v14 = vadd.f32 %v1010_v13, %v770_v48  ;;  %v1436_v15 = vpop.f32.mrb[11].mxu1 }
 0xa67   : > { %v1101_v16 = vpop.xlane.xlu0 %1100 }
 0xa68   : > { %1489 = vrcp.f32 %v1101_v16 }
 0xa6b   : > { %v1105_v17 = vpop.permute.xlu0 %1104 }
 0xa6c   : > { %1443 = vmatpush3.msk.msra.mxu1 %vm385_vm3, %v1105_v17 }
 0xa72   : > { %v1490_v18 = vpop.eup %1489 }
 0xa73   : > { %v1103_v19 = vmul.f32 %v1490_v18, %v1488_v11 }
 0xa75   : > { %1445 = vmatmul.mubr.msk.f32.vlgmr.msra.gmra.mrb[12].mxu1 %vm381_vm5, %v1103_v19 }
 0xb48   : > { %v1177_v20 = vpop.f32.mrb[12].mxu1 }
 0xb49   : > { %v1446_v6 = vpop.f32.mrb[13].mxu1  ;;  %1450 = vmatmul.mubr.msk.f32.vlgmr.msra.gmra.mrb[12].mxu0 %vm292_vm2, %v1177_v20 }
 0xc1c   : > { %v1252_v21 = vpop.f32.mrb[12].mxu0 }
 0xc1d   : > { %v1256_v23 = vadd.f32 %v1252_v21, %v1014_v14  ;;  %v1451_v24 = vpop.f32.mrb[13].mxu0 }
 0xc1f   : > { %v1264_v25 = vadd.f32 %v1354_v22, %v1256_v23 }
 0xc21   : > { %1266 = vst.msk [vmem:[%s219_s6] sm:$0xf] %vm1265_vm6, %v1264_v25 }
 0xc22 PF: > { %s15_s18 = sadd.s32 1, %s1497_s18  }
 0xc23   : > { %p12_p4 = scmp.ge.s32.totalorder %s15_s18, 4  }
 0xc25   :  { %14 = sbr.rel (!%p12_p4) target bundleno = 1 (0x1), region = 73 }

// kernel: denoiser_forward.11
= control target key start
LH: loop header
LB: loop body
LE: loop exit
PB: predicated region body
PF: predicated region fallthrough
CT: control target
= control target key end

     0   :  { %s2876_s18 = smov 0   ;;  %s3359_s0 = inlined_call_operand.vmem [shape: bf16[2,1,32,342], index: 0, kind: input, shape index: {}]   ;;  %s3360_s1 = inlined_call_operand.vmem [shape: bf16[9,3,32], index: 1, kind: input, shape index: {}]   ;;  %s3361_s2 = inlined_call_operand.vmem [shape: f32[3,1], index: 2, kind: input, shape index: {}]   ;;  %s3362_s3 = inlined_call_operand.vmem [shape: bf16[9,3,3], index: 3, kind: input, shape index: {}]   ;;  %s3363_s4 = inlined_call_operand.vmem [shape: f32[3,1], index: 4, kind: input, shape index: {}]   ;;  %s3364_s5 = inlined_call_operand.vmem [shape: f32[2,3,288], index: 5, kind: output, shape index: {}]  }
   0x1 LB: > { %s2531_s19 = sadd.s32 4294967295, %s2830_s18   ;;  %p2535_p0 = scmp.ge.s32.totalorder %s2830_s18, 1  ;;  %s2830_s18 = sphi %s2876_s18, %s15_s18  }
   0x2   : > { %p187_p1 = scmp.lt.s32.totalorder %s2830_s18, 3 }
   0x4   : > { %p188_p2 = pnand %p2535_p0, %p187_p1 }
   0x5   : > { %p215_p3 = scmp.lt.s32.totalorder (!%p188_p2), %s2531_s19, 1  ;;  %v2832_v0 = vmov (!%p188_p2), 0.0   ;;  %vm3372_vm0 = vmmov (!%p188_p2), 0   ;;  %s2834_s24 = smov (!%p188_p2), 127   ;;  %v2835_v5 = vmov (!%p188_p2), 0   ;;  %vm3374_vm1 = vcmask (!%p188_p2), 1039360  }
   0x6   : > { %191 = sbr.rel (%p188_p2) target bundleno = 1005 (0x3ed), region = 40  ;;  %2644 = vmatprep.subr.bf16.mxu1 (!%p188_p2), %v2832_v0  ;;  %2648 = vmatprep.mubr.msk.bf16.mxu1 (!%p188_p2), %vm3372_vm0, %v2832_v0  ;;  %s2836_s25 = smov (!%p188_p2), 126   ;;  %v1245_v8 = vld [vmem:[%s3361_s2] sm:$0x7] (!%p188_p2)  ;;  %vm286_vm2 = vcmask (!%p188_p2), 261120   ;;  %vm3371_vm3 = vcmask (!%p188_p2), 1031168  }
   0x7   : > { %322 = vmatprep.mubr.bf16.mxu0 (!%p188_p2), %v2835_v5  ;;  %2800 = vset.pattern.permute.xlu0 (!%p188_p2), %v2835_v5  ;;  %s2837_s26 = smov (!%p188_p2), 110   ;;  %s2838_s27 = smov (!%p188_p2), 109   ;;  %v2538_v18 = vld [vmem:[%s3360_s1 + $0x2] sm:$0x3] (!%p188_p2)  ;;  %v226_v24 = vld [vmem:[%s3360_s1] sm:$0x3] (!%p188_p2) }
   0x8   : > { %2801 = vset.pattern.permute.xlu1 (!%p188_p2), %v2835_v5  ;;  %s2839_s28 = smov (!%p188_p2), 108   ;;  %s2840_s29 = smov (!%p188_p2), 92   ;;  %vm3370_vm4 = vcmask (!%p188_p2), 900096   ;;  %v2549_v32 = vld [vmem:[%s3360_s1 + $0x4] sm:$0x3] (!%p188_p2)  ;;  %vm3369_vm5 = vcmask (!%p188_p2), 891904  }
   0x9   : > { %s2841_s30 = smov (!%p188_p2), 91   ;;  %s2842_s6 = smov (!%p188_p2), 90   ;;  %v2552_v41 = vld [vmem:[%s3360_s1 + $0x6] sm:$0x3] (!%p188_p2)  ;;  %v2555_v52 = vld [vmem:[%s3360_s1 + $0x8] sm:$0x3] (!%p188_p2) }
   0xa   : > { %vm3368_vm6 = vcmask (!%p188_p2), 883712   ;;  %v2558_v63 = vld [vmem:[%s3360_s1 + $0xa] sm:$0x3] (!%p188_p2)  ;;  %vm3367_vm7 = vcmask (!%p188_p2), 752640   ;;  %vm3366_vm8 = vcmask (!%p188_p2), 744448   ;;  %vm3365_vm9 = vcmask (!%p188_p2), 736256  }
   0xb   : > { %vm3375_vm10 = vcmask (!%p188_p2), 1041408   ;;  %vm1319_vm11 = vsmask.f32 (!%p188_p2), 1280  ;;  %vm1321_vm12 = vcmask (!%p188_p2), 1043458   ;;  %vm1322_vm13 = vsmask.f32 (!%p188_p2), 3328 }
   0xc   : > { %vm1320_vm14 = vmand (!%p188_p2), %vm3375_vm10, %vm1319_vm11  ;;  %vm1325_vm15 = vcmask (!%p188_p2), 701444   ;;  %s2844_s12 = smov (!%p188_p2), 19  }
   0xd   : > { %s3401_s19 = smov (!%p215_p3, %s2531_s19), 1 }
   0xe   : > { %s2770_s20 = smul.u32 48, %s3401_s19 }
   0xf   : > { %s2771_s10 = smul.u32 12, %s3401_s19 }
  0x10   : > { %s219_s23 = scalar_lea.vmem %s3359_s0, %s2770_s20 }
  0x11   : > { %v2891_v1 = vld [vmem:[%s219_s23 + $0x4] ss:$12 sps:$4 sm:$0xff]   ;;  %v2895_v2 = vld [vmem:[%s219_s23] ss:$12 sps:$4 sm:$0xff]   ;;  %v2899_v3 = vld [vmem:[%s219_s23 + $0x8] ss:$12 sps:$4 sm:$0xff]  }
  0x12   : > { %265 = vrot.lane.b32.xlu0 %v2891_v1, %s2834_s24  ;;  %263 = vrot.lane.b32.xlu1 %v2895_v2, %s2834_s24  ;;  %v2903_v4 = vld [vmem:[%s219_s23 + $0x1c] ss:$12 sps:$4 sm:$0xff]   ;;  %v2910_v6 = vld [vmem:[%s219_s23 + $0x20] ss:$12 sps:$4 sm:$0xff]  }
  0x13   : > { %v2914_v7 = vld [vmem:[%s219_s23 + $0x18] ss:$12 sps:$4 sm:$0xff]  }
  0x16   : > { %267 = vrot.lane.b32.xlu0 %v2899_v3, %s2834_s24  ;;  %271 = vrot.lane.b32.xlu1 %v2903_v4, %s2834_s24 }
  0x1a   : > { %273 = vrot.lane.b32.xlu0 %v2910_v6, %s2834_s24  ;;  %269 = vrot.lane.b32.xlu1 %v2914_v7, %s2834_s24 }
  0x1e   : > { %465 = vrot.lane.b32.xlu0 %v2891_v1, %s2836_s25  ;;  %467 = vrot.lane.b32.xlu1 %v2899_v3, %s2836_s25 }
  0x22   : > { %463 = vrot.lane.b32.xlu0 %v2895_v2, %s2836_s25  ;;  %471 = vrot.lane.b32.xlu1 %v2903_v4, %s2836_s25 }
  0x26   : > { %473 = vrot.lane.b32.xlu0 %v2910_v6, %s2836_s25  ;;  %469 = vrot.lane.b32.xlu1 %v2914_v7, %s2836_s25 }
  0x2a   : > { %577 = vrot.lane.b32.xlu0 %v2891_v1, %s2837_s26  ;;  %579 = vrot.lane.b32.xlu1 %v2899_v3, %s2837_s26 }
  0x2e   : > { %575 = vrot.lane.b32.xlu0 %v2895_v2, %s2837_s26  ;;  %583 = vrot.lane.b32.xlu1 %v2903_v4, %s2837_s26 }
  0x32   : > { %585 = vrot.lane.b32.xlu0 %v2910_v6, %s2837_s26  ;;  %581 = vrot.lane.b32.xlu1 %v2914_v7, %s2837_s26 }
  0x36   : > { %689 = vrot.lane.b32.xlu0 %v2891_v1, %s2838_s27  ;;  %691 = vrot.lane.b32.xlu1 %v2899_v3, %s2838_s27 }
  0x3a   : > { %687 = vrot.lane.b32.xlu0 %v2895_v2, %s2838_s27  ;;  %695 = vrot.lane.b32.xlu1 %v2903_v4, %s2838_s27 }
  0x3e   : > { %697 = vrot.lane.b32.xlu0 %v2910_v6, %s2838_s27  ;;  %693 = vrot.lane.b32.xlu1 %v2914_v7, %s2838_s27 }
  0x42   : > { %801 = vrot.lane.b32.xlu0 %v2891_v1, %s2839_s28  ;;  %803 = vrot.lane.b32.xlu1 %v2899_v3, %s2839_s28 }
  0x46   : > { %799 = vrot.lane.b32.xlu0 %v2895_v2, %s2839_s28  ;;  %807 = vrot.lane.b32.xlu1 %v2903_v4, %s2839_s28 }
  0x4a   : > { %809 = vrot.lane.b32.xlu0 %v2910_v6, %s2839_s28  ;;  %805 = vrot.lane.b32.xlu1 %v2914_v7, %s2839_s28 }
  0x4e   : > { %913 = vrot.lane.b32.xlu0 %v2891_v1, %s2840_s29  ;;  %915 = vrot.lane.b32.xlu1 %v2899_v3, %s2840_s29 }
  0x52   : > { %911 = vrot.lane.b32.xlu0 %v2895_v2, %s2840_s29  ;;  %919 = vrot.lane.b32.xlu1 %v2903_v4, %s2840_s29 }
  0x56   : > { %921 = vrot.lane.b32.xlu0 %v2910_v6, %s2840_s29  ;;  %917 = vrot.lane.b32.xlu1 %v2914_v7, %s2840_s29 }
  0x5a   : > { %1025 = vrot.lane.b32.xlu0 %v2891_v1, %s2841_s30  ;;  %1027 = vrot.lane.b32.xlu1 %v2899_v3, %s2841_s30 }
  0x5e   : > { %1023 = vrot.lane.b32.xlu0 %v2895_v2, %s2841_s30  ;;  %1031 = vrot.lane.b32.xlu1 %v2903_v4, %s2841_s30 }
  0x62   : > { %1033 = vrot.lane.b32.xlu0 %v2910_v6, %s2841_s30  ;;  %1029 = vrot.lane.b32.xlu1 %v2914_v7, %s2841_s30 }
  0x66   : > { %1137 = vrot.lane.b32.xlu0 %v2891_v1, %s2842_s6  ;;  %1139 = vrot.lane.b32.xlu1 %v2899_v3, %s2842_s6 }
  0x6a   : > { %1135 = vrot.lane.b32.xlu0 %v2895_v2, %s2842_s6  ;;  %1143 = vrot.lane.b32.xlu1 %v2903_v4, %s2842_s6 }
  0x6e   : > { %1145 = vrot.lane.b32.xlu0 %v2910_v6, %s2842_s6  ;;  %1141 = vrot.lane.b32.xlu1 %v2914_v7, %s2842_s6 }
  0x72   : > { %1248 = vperm.xlu0 %2800, %v1245_v8  }
  0x84   : > { %v266_v9 = vpop.permute.xlu0 %265  ;;  %v264_v10 = vpop.permute.xlu1 %263 }
  0x85   : > { %v276_v14 = vsel %vm3374_vm1, %v264_v10, %v266_v9 }
  0x88   : > { %v268_v11 = vpop.permute.xlu0 %267  ;;  %v272_v12 = vpop.permute.xlu1 %271 }
  0x89   : > { %2645 = vmatpush3.bf16.msra.mxu1 %v268_v11  ;;  %v277_v13 = vsel %vm3374_vm1, %v266_v9, %v268_v11 }
  0x8a   : > { %290 = vmatprep.subr.bf16.mxu0 %v277_v13  ;;  %2646 = vmatprep.subr.bf16.mxu1 %v2832_v0 }
  0x8b   : > { %291 = vmatpush1.bf16.msra.mxu0 %v276_v14 }
  0x8c   : > { %v274_v15 = vpop.permute.xlu0 %273  ;;  %v270_v16 = vpop.permute.xlu1 %269 }
  0x8d   : > { %2647 = vmatpush3.bf16.msra.mxu1 %v274_v15  ;;  %v279_v17 = vsel %vm3374_vm1, %v272_v12, %v274_v15  ;;  %v278_v19 = vsel %vm3374_vm1, %v270_v16, %v272_v12  ;;  %v2561_v12 = vld [vmem:[%s3360_s1 + $0xc] sm:$0x3] }
  0x8e   : > { %292 = vmatprep.subr.bf16.mxu0 %v279_v17  ;;  %2652 = vmatprep.subr.bf16.mxu1 %v2832_v0 }
  0x8f   : > { %293 = vmatpush1.bf16.msra.mxu0 %v278_v19 }
  0x90   : > { %v466_v20 = vpop.permute.xlu0 %465  ;;  %2649 = vmatmul.mubr.msk.bf16.vlgmr.msra.gmra.mrb[0].mxu1 %vm286_vm2, %v2538_v18  ;;  %380 = vmatprep.subr.bf16.mxu0 %v2891_v1  ;;  %v468_v21 = vpop.permute.xlu1 %467 }
  0x91   : > { %2653 = vmatpush3.bf16.msra.mxu1 %v2899_v3  ;;  %2656 = vmatprep.mubr.msk.bf16.mxu1 %vm3372_vm0, %v2832_v0  ;;  %v477_v25 = vsel %vm3371_vm3, %v466_v20, %v468_v21 }
  0x92   : > { %2545 = vmatmul.mubr.msk.bf16.vlgmr.msra.gmra.mrb[0].mxu0 %vm286_vm2, %v2538_v18  ;;  %2654 = vmatprep.subr.bf16.mxu1 %v2832_v0 }
  0x93   : > { %381 = vmatpush1.bf16.msra.mxu0 %v2895_v2  ;;  %412 = vmatprep.mubr.bf16.mxu0 %v2835_v5 }
  0x94   : > { %v464_v22 = vpop.permute.xlu0 %463  ;;  %382 = vmatprep.subr.bf16.mxu0 %v2903_v4  ;;  %v472_v23 = vpop.permute.xlu1 %471 }
  0x95   : > { %2655 = vmatpush3.bf16.msra.mxu1 %v2910_v6  ;;  %v476_v28 = vsel %vm3371_vm3, %v464_v22, %v466_v20 }
  0x96   : > { %2660 = vmatprep.subr.bf16.mxu1 %v2832_v0 }
  0x97   : > { %383 = vmatpush1.bf16.msra.mxu0 %v2914_v7 }
  0x98   : > { %v474_v26 = vpop.permute.xlu0 %473  ;;  %489 = vmatprep.subr.bf16.mxu0 %v477_v25  ;;  %2657 = vmatmul.mubr.msk.bf16.vlgmr.msra.gmra.mrb[4].mxu1 %vm286_vm2, %v226_v24  ;;  %v470_v27 = vpop.permute.xlu1 %469 }
  0x99   : > { %2661 = vmatpush3.bf16.msra.mxu1 %v468_v21  ;;  %2664 = vmatprep.mubr.msk.bf16.mxu1 %vm3372_vm0, %v2832_v0  ;;  %v479_v29 = vsel %vm3371_vm3, %v472_v23, %v474_v26  ;;  %v478_v33 = vsel %vm3371_vm3, %v470_v27, %v472_v23  ;;  %v2564_v23 = vld [vmem:[%s3360_s1 + $0xe] sm:$0x3]  ;;  %vm1363_vm3 = vcmask 414724  }
  0x9a   : > { %2547 = vmatmul.mubr.msk.bf16.vlgmr.msra.gmra.mrb[4].mxu0 %vm286_vm2, %v226_v24  ;;  %2662 = vmatprep.subr.bf16.mxu1 %v2832_v0 }
  0x9b   : > { %490 = vmatpush1.bf16.msra.mxu0 %v476_v28  ;;  %521 = vmatprep.mubr.bf16.mxu0 %v2835_v5 }
  0x9c   : > { %v578_v30 = vpop.permute.xlu0 %577  ;;  %491 = vmatprep.subr.bf16.mxu0 %v479_v29  ;;  %v580_v31 = vpop.permute.xlu1 %579 }
  0x9d   : > { %2663 = vmatpush3.bf16.msra.mxu1 %v474_v26  ;;  %v589_v34 = vsel %vm3370_vm4, %v578_v30, %v580_v31 }
  0x9e   : > { %2668 = vmatprep.subr.bf16.mxu1 %v2832_v0 }
  0x9f   : > { %492 = vmatpush1.bf16.msra.mxu0 %v478_v33 }
  0xa0   : > { %v576_v35 = vpop.permute.xlu0 %575  ;;  %601 = vmatprep.subr.bf16.mxu0 %v589_v34  ;;  %2665 = vmatmul.mubr.msk.bf16.vlgmr.msra.gmra.mrb[8].mxu1 %vm286_vm2, %v2549_v32  ;;  %v584_v37 = vpop.permute.xlu1 %583  ;;  %v2567_v34 = vld [vmem:[%s3360_s1 + $0x10] sm:$0x3] }
  0xa1   : > { %v588_v36 = vsel %vm3370_vm4, %v576_v35, %v578_v30  ;;  %2669 = vmatpush3.bf16.msra.mxu1 %v580_v31  ;;  %2672 = vmatprep.mubr.msk.bf16.mxu1 %vm3372_vm0, %v2832_v0 }
  0xa2   : > { %2550 = vmatmul.mubr.msk.bf16.vlgmr.msra.gmra.mrb[8].mxu0 %vm286_vm2, %v2549_v32  ;;  %2670 = vmatprep.subr.bf16.mxu1 %v2832_v0 }
  0xa3   : > { %602 = vmatpush1.bf16.msra.mxu0 %v588_v36  ;;  %633 = vmatprep.mubr.bf16.mxu0 %v2835_v5  ;;  %v1329_v36 = vld [vmem:[#allocation2] sm:$0x3f] }
  0xa4   : > { %v586_v38 = vpop.permute.xlu0 %585  ;;  %v582_v39 = vpop.permute.xlu1 %581 }
  0xa5   : > { %2671 = vmatpush3.bf16.msra.mxu1 %v586_v38  ;;  %v591_v40 = vsel %vm3370_vm4, %v584_v37, %v586_v38  ;;  %v590_v42 = vsel %vm3370_vm4, %v582_v39, %v584_v37 }
  0xa6   : > { %603 = vmatprep.subr.bf16.mxu0 %v591_v40  ;;  %2676 = vmatprep.subr.bf16.mxu1 %v2832_v0 }
  0xa7   : > { %604 = vmatpush1.bf16.msra.mxu0 %v590_v42 }
  0xa8   : > { %v690_v43 = vpop.permute.xlu0 %689  ;;  %2673 = vmatmul.mubr.msk.bf16.vlgmr.msra.gmra.mrb[12].mxu1 %vm286_vm2, %v2552_v41  ;;  %v692_v44 = vpop.permute.xlu1 %691 }
  0xa9   : > { %2680 = vmatprep.mubr.msk.bf16.mxu1 %vm3372_vm0, %v2832_v0  ;;  %v701_v45 = vsel %vm3369_vm5, %v690_v43, %v692_v44  ;;  %2677 = vmatpush3.bf16.msra.mxu1 %v692_v44 }
  0xaa   : > { %2553 = vmatmul.mubr.msk.bf16.vlgmr.msra.gmra.mrb[12].mxu0 %vm286_vm2, %v2552_v41  ;;  %713 = vmatprep.subr.bf16.mxu0 %v701_v45 }
  0xab   : > { %2678 = vmatprep.subr.bf16.mxu1 %v2832_v0  ;;  %745 = vmatprep.mubr.bf16.mxu0 %v2835_v5 }
  0xac   : > { %v688_v46 = vpop.permute.xlu0 %687  ;;  %v696_v48 = vpop.permute.xlu1 %695 }
  0xad   : > { %v700_v47 = vsel %vm3369_vm5, %v688_v46, %v690_v43 }
  0xae   : > { %714 = vmatpush1.bf16.msra.mxu0 %v700_v47 }
  0xb0   : > { %v698_v49 = vpop.permute.xlu0 %697  ;;  %v694_v50 = vpop.permute.xlu1 %693 }
  0xb1   : > { %2679 = vmatpush3.bf16.msra.mxu1 %v698_v49  ;;  %v703_v51 = vsel %vm3369_vm5, %v696_v48, %v698_v49  ;;  %v702_v53 = vsel %vm3369_vm5, %v694_v50, %v696_v48 }
  0xb2   : > { %715 = vmatprep.subr.bf16.mxu0 %v703_v51  ;;  %2684 = vmatprep.subr.bf16.mxu1 %v2832_v0 }
  0xb3   : > { %716 = vmatpush1.bf16.msra.mxu0 %v702_v53 }
  0xb4   : > { %v802_v54 = vpop.permute.xlu0 %801  ;;  %2681 = vmatmul.mubr.msk.bf16.vlgmr.msra.gmra.mrb[16].mxu1 %vm286_vm2, %v2555_v52  ;;  %v804_v55 = vpop.permute.xlu1 %803 }
  0xb5   : > { %2688 = vmatprep.mubr.msk.bf16.mxu1 %vm3372_vm0, %v2832_v0  ;;  %v813_v56 = vsel %vm3368_vm6, %v802_v54, %v804_v55  ;;  %2685 = vmatpush3.bf16.msra.mxu1 %v804_v55 }
  0xb6   : > { %2556 = vmatmul.mubr.msk.bf16.vlgmr.msra.gmra.mrb[16].mxu0 %vm286_vm2, %v2555_v52  ;;  %825 = vmatprep.subr.bf16.mxu0 %v813_v56 }
  0xb7   : > { %2686 = vmatprep.subr.bf16.mxu1 %v2832_v0  ;;  %857 = vmatprep.mubr.bf16.mxu0 %v2835_v5 }
  0xb8   : > { %v800_v57 = vpop.permute.xlu0 %799  ;;  %v808_v59 = vpop.permute.xlu1 %807 }
  0xb9   : > { %v812_v58 = vsel %vm3368_vm6, %v800_v57, %v802_v54 }
  0xba   : > { %826 = vmatpush1.bf16.msra.mxu0 %v812_v58 }
  0xbc   : > { %v810_v60 = vpop.permute.xlu0 %809  ;;  %v806_v61 = vpop.permute.xlu1 %805 }
  0xbd   : > { %2687 = vmatpush3.bf16.msra.mxu1 %v810_v60  ;;  %v815_v62 = vsel %vm3368_vm6, %v808_v59, %v810_v60  ;;  %v814_v1 = vsel %vm3368_vm6, %v806_v61, %v808_v59  ;;  %vm1360_vm6 = vcmask 1041560  }
  0xbe   : > { %827 = vmatprep.subr.bf16.mxu0 %v815_v62  ;;  %2692 = vmatprep.subr.bf16.mxu1 %v2832_v0 }
  0xbf   : > { %828 = vmatpush1.bf16.msra.mxu0 %v814_v1 }
  0xc0   : > { %v914_v2 = vpop.permute.xlu0 %913  ;;  %2689 = vmatmul.mubr.msk.bf16.vlgmr.msra.gmra.mrb[20].mxu1 %vm286_vm2, %v2558_v63  ;;  %v916_v3 = vpop.permute.xlu1 %915 }
  0xc1   : > { %2696 = vmatprep.mubr.msk.bf16.mxu1 %vm3372_vm0, %v2832_v0  ;;  %v925_v4 = vsel %vm3367_vm7, %v914_v2, %v916_v3  ;;  %2693 = vmatpush3.bf16.msra.mxu1 %v916_v3 }
  0xc2   : > { %2559 = vmatmul.mubr.msk.bf16.vlgmr.msra.gmra.mrb[20].mxu0 %vm286_vm2, %v2558_v63  ;;  %937 = vmatprep.subr.bf16.mxu0 %v925_v4 }
  0xc3   : > { %2694 = vmatprep.subr.bf16.mxu1 %v2832_v0  ;;  %969 = vmatprep.mubr.bf16.mxu0 %v2835_v5 }
  0xc4   : > { %v912_v6 = vpop.permute.xlu0 %911  ;;  %v920_v8 = vpop.permute.xlu1 %919 }
  0xc5   : > { %v924_v7 = vsel %vm3367_vm7, %v912_v6, %v914_v2 }
  0xc6   : > { %938 = vmatpush1.bf16.msra.mxu0 %v924_v7 }
  0xc8   : > { %v922_v9 = vpop.permute.xlu0 %921  ;;  %v918_v10 = vpop.permute.xlu1 %917 }
  0xc9   : > { %2695 = vmatpush3.bf16.msra.mxu1 %v922_v9  ;;  %v927_v11 = vsel %vm3367_vm7, %v920_v8, %v922_v9  ;;  %v926_v13 = vsel %vm3367_vm7, %v918_v10, %v920_v8 }
  0xca   : > { %939 = vmatprep.subr.bf16.mxu0 %v927_v11  ;;  %2700 = vmatprep.subr.bf16.mxu1 %v2832_v0 }
  0xcb   : > { %940 = vmatpush1.bf16.msra.mxu0 %v926_v13 }
  0xcc   : > { %v1026_v14 = vpop.permute.xlu0 %1025  ;;  %2697 = vmatmul.mubr.msk.bf16.vlgmr.msra.gmra.mrb[24].mxu1 %vm286_vm2, %v2561_v12  ;;  %v1028_v15 = vpop.permute.xlu1 %1027 }
  0xcd   : > { %2704 = vmatprep.mubr.msk.bf16.mxu1 %vm3372_vm0, %v2832_v0  ;;  %v1037_v16 = vsel %vm3366_vm8, %v1026_v14, %v1028_v15  ;;  %2701 = vmatpush3.bf16.msra.mxu1 %v1028_v15 }
  0xce   : > { %2562 = vmatmul.mubr.msk.bf16.vlgmr.msra.gmra.mrb[24].mxu0 %vm286_vm2, %v2561_v12  ;;  %1049 = vmatprep.subr.bf16.mxu0 %v1037_v16 }
  0xcf   : > { %2702 = vmatprep.subr.bf16.mxu1 %v2832_v0  ;;  %1081 = vmatprep.mubr.bf16.mxu0 %v2835_v5 }
  0xd0   : > { %v1024_v17 = vpop.permute.xlu0 %1023  ;;  %v1032_v19 = vpop.permute.xlu1 %1031 }
  0xd1   : > { %v1036_v18 = vsel %vm3366_vm8, %v1024_v17, %v1026_v14 }
  0xd2   : > { %1050 = vmatpush1.bf16.msra.mxu0 %v1036_v18 }
  0xd4   : > { %v1034_v20 = vpop.permute.xlu0 %1033  ;;  %v1030_v21 = vpop.permute.xlu1 %1029 }
  0xd5   : > { %2703 = vmatpush3.bf16.msra.mxu1 %v1034_v20  ;;  %v1039_v22 = vsel %vm3366_vm8, %v1032_v19, %v1034_v20  ;;  %v1038_v24 = vsel %vm3366_vm8, %v1030_v21, %v1032_v19  ;;  %vm1323_vm8 = vmand %vm1321_vm12, %vm1322_vm13 }
  0xd6   : > { %1051 = vmatprep.subr.bf16.mxu0 %v1039_v22  ;;  %2708 = vmatprep.subr.bf16.mxu1 %v2832_v0  ;;  %vm1324_vm7 = vmor %vm1323_vm8, %vm1320_vm14  ;;  %vm1357_vm14 = vcmask 154624  }
  0xd7   : > { %1052 = vmatpush1.bf16.msra.mxu0 %v1038_v24 }
  0xd8   : > { %v1138_v25 = vpop.permute.xlu0 %1137  ;;  %2705 = vmatmul.mubr.msk.bf16.vlgmr.msra.gmra.mrb[28].mxu1 %vm286_vm2, %v2564_v23  ;;  %v1140_v26 = vpop.permute.xlu1 %1139 }
  0xd9   : > { %2712 = vmatprep.mubr.msk.bf16.mxu1 %vm3372_vm0, %v2832_v0  ;;  %v1149_v27 = vsel %vm3365_vm9, %v1138_v25, %v1140_v26  ;;  %2709 = vmatpush3.bf16.msra.mxu1 %v1140_v26 }
  0xda   : > { %2565 = vmatmul.mubr.msk.bf16.vlgmr.msra.gmra.mrb[28].mxu0 %vm286_vm2, %v2564_v23  ;;  %1161 = vmatprep.subr.bf16.mxu0 %v1149_v27 }
  0xdb   : > { %2710 = vmatprep.subr.bf16.mxu1 %v2832_v0  ;;  %1193 = vmatprep.mubr.bf16.mxu0 %v2835_v5 }
  0xdc   : > { %v1136_v28 = vpop.permute.xlu0 %1135  ;;  %v1144_v30 = vpop.permute.xlu1 %1143 }
  0xdd   : > { %v1148_v29 = vsel %vm3365_vm9, %v1136_v28, %v1138_v25 }
  0xde   : > { %1162 = vmatpush1.bf16.msra.mxu0 %v1148_v29  ;;  %v1254_v29 = vlaneseq }
  0xe0   : > { %v1146_v31 = vpop.permute.xlu0 %1145  ;;  %v1142_v32 = vpop.permute.xlu1 %1141 }
  0xe1   : > { %2711 = vmatpush3.bf16.msra.mxu1 %v1146_v31  ;;  %v1151_v33 = vsel %vm3365_vm9, %v1144_v30, %v1146_v31  ;;  %v1150_v35 = vsel %vm3365_vm9, %v1142_v32, %v1144_v30  ;;  %vm1326_vm9 = vsmask.f32 5376 }
  0xe2   : > { %1163 = vmatprep.subr.bf16.mxu0 %v1151_v33  ;;  %2716 = vmatprep.subr.bf16.mxu1 %v2832_v0  ;;  %vm1327_vm5 = vmand %vm1325_vm15, %vm1326_vm9  ;;  %v1255_v33 = vand.u32 127, %v1254_v29  ;;  %vm3382_vm15 = vcmask 1041408  }
  0xe3   : > { %1164 = vmatpush1.bf16.msra.mxu0 %v1150_v35  ;;  %vm1328_vm4 = vmor %vm1327_vm5, %vm1324_vm7 }
  0xe4   : > { %2713 = vmatmul.mubr.msk.bf16.vlgmr.msra.gmra.mrb[32].mxu1 %vm286_vm2, %v2567_v34  ;;  %v1330_v37 = vsel %vm1328_vm4, 0, %v1329_v36  ;;  %vm1364_vm1 = vmand %vm1363_vm3, %vm1326_vm9 }
  0xe5   : > { %2718 = vmatprep.mubr.msk.bf16.mxu1 %vm3372_vm0, %v2832_v0  ;;  %vm1361_vm0 = vmand %vm1360_vm6, %vm1319_vm11  ;;  %1331 = vst [vmem:[#allocation2] sm:$0x3f] %v1330_v37 }
  0xe6   : > { %2568 = vmatmul.mubr.msk.bf16.vlgmr.msra.gmra.mrb[32].mxu0 %vm286_vm2, %v2567_v34  ;;  %vm1362_vm2 = vmor %vm1323_vm8, %vm1361_vm0 }
  0xe7   : > { %1447 = vmatprep.mubr.bf16.mxu0 %v2835_v5  ;;  %vm3136_vm10 = vmor %vm1364_vm1, %vm1362_vm2  ;;  %vm3383_vm2 = vcmask 1039360  }
 0x163   : > { %v365_v39 = vpop.f32.mrb[0].mxu1 }
 0x164   : > { %v2650_v40 = vpop.f32.mrb[1].mxu1 }
 0x165   : > { %v324_v41 = vpop.f32.mrb[0].mxu0  ;;  %v368_v42 = vpop.f32.mrb[2].mxu1 }
 0x166   : > { %v326_v43 = vpop.f32.mrb[1].mxu0  ;;  %v2651_v44 = vpop.f32.mrb[3].mxu1 }
 0x167   : > { %v328_v45 = vpop.f32.mrb[2].mxu0  ;;  %v1256_v44 = vadd.s32 128, %v1255_v33 }
 0x168   : > { %v329_v46 = vpop.f32.mrb[3].mxu0 }
 0x16b   : > { %v455_v47 = vpop.f32.mrb[4].mxu1 }
 0x16c   : > { %v456_v48 = vadd.f32 %v455_v47, %v365_v39  ;;  %v2658_v49 = vpop.f32.mrb[5].mxu1 }
 0x16d   : > { %v414_v50 = vpop.f32.mrb[4].mxu0  ;;  %v458_v51 = vpop.f32.mrb[6].mxu1 }
 0x16e   : > { %v415_v52 = vadd.f32 %v414_v50, %v324_v41  ;;  %v416_v53 = vpop.f32.mrb[5].mxu0  ;;  %v2659_v54 = vpop.f32.mrb[7].mxu1  ;;  %v3147_v50 = vmul.u32.u64.low 3817748708, %v1256_v44  ;;  %v3148_v51 = vmul.u32.u64.high 3817748708, %v1256_v44, %v3147_v50 }
 0x16f   : > { %v417_v55 = vadd.f32 %v416_v53, %v326_v43  ;;  %v418_v56 = vpop.f32.mrb[6].mxu0  ;;  %v1257_v43 = vadd.s32 256, %v1255_v33 }
 0x170   : > { %v419_v57 = vpop.f32.mrb[7].mxu0 }
 0x171   : > { %v3141_v45 = vmul.u32.u64.low 3817748708, %v1257_v43  ;;  %v3142_v46 = vmul.u32.u64.high 3817748708, %v1257_v43, %v3141_v45 }
 0x173   : > { %v564_v58 = vpop.f32.mrb[8].mxu1 }
 0x174   : > { %v572_v59 = vadd.f32 %v564_v58, %v456_v48  ;;  %v2666_v60 = vpop.f32.mrb[9].mxu1  ;;  %v3144_v47 = vmul.u32.u64.low 3817748708, %v1255_v33  ;;  %v3145_v48 = vmul.u32.u64.high 3817748708, %v1255_v33, %v3144_v47 }
 0x175   : > { %v523_v61 = vpop.f32.mrb[8].mxu0  ;;  %v567_v62 = vpop.f32.mrb[10].mxu1 }
 0x176   : > { %v570_v63 = vadd.f32 %v523_v61, %v415_v52  ;;  %v525_v1 = vpop.f32.mrb[9].mxu0  ;;  %v2667_v2 = vpop.f32.mrb[11].mxu1  ;;  %v1286_v62 = vshrl.u32 %v3142_v46, 4 }
 0x177   : > { %v571_v3 = vadd.f32 %v525_v1, %v417_v55  ;;  %v527_v4 = vpop.f32.mrb[10].mxu0  ;;  %v1275_v1 = vshrl.u32 %v3148_v51, 4 }
 0x178   : > { %v528_v6 = vpop.f32.mrb[11].mxu0  ;;  %v1287_v2 = vmul.u32 18, %v1286_v62 }
 0x179   : > { %v1276_v6 = vmul.u32 18, %v1275_v1 }
 0x17b   : > { %v676_v7 = vpop.f32.mrb[12].mxu1 }
 0x17c   : > { %v684_v8 = vadd.f32 %v676_v7, %v572_v59  ;;  %v2674_v9 = vpop.f32.mrb[13].mxu1 }
 0x17d   : > { %v635_v10 = vpop.f32.mrb[12].mxu0  ;;  %v679_v11 = vpop.f32.mrb[14].mxu1  ;;  %v1288_v9 = vsub.s32 %v1257_v43, %v1287_v2 }
 0x17e   : > { %v682_v12 = vadd.f32 %v635_v10, %v570_v63  ;;  %v637_v13 = vpop.f32.mrb[13].mxu0  ;;  %v2675_v14 = vpop.f32.mrb[15].mxu1  ;;  %v1264_v63 = vshrl.u32 %v3145_v48, 4 }
 0x17f   : > { %v683_v15 = vadd.f32 %v637_v13, %v571_v3  ;;  %v639_v16 = vpop.f32.mrb[14].mxu0  ;;  %vm1293_vm0 = vcmp.ne.s32.totalorder %v1288_v9, 0  ;;  %vm1296_vm1 = vcmp.lt.s32.totalorder %v1288_v9, 0 }
 0x180   : > { %v640_v17 = vpop.f32.mrb[15].mxu0  ;;  %v1265_v3 = vmul.u32 18, %v1264_v63  ;;  %vm1299_vm5 = vmand %vm1296_vm1, %vm1293_vm0  ;;  %vm1398_vm0 = vcmask 23552  }
 0x181   : > { %vm3384_vm1 = vmmov %vm3383_vm2 }
 0x187   : > { %v788_v18 = vpop.f32.mrb[16].mxu1 }
 0x188   : > { %v796_v19 = vadd.f32 %v788_v18, %v684_v8  ;;  %v2682_v20 = vpop.f32.mrb[17].mxu1  ;;  %v1277_v18 = vsub.s32 %v1256_v44, %v1276_v6 }
 0x189   : > { %v747_v21 = vpop.f32.mrb[16].mxu0  ;;  %v791_v22 = vpop.f32.mrb[18].mxu1  ;;  %v1302_v20 = vadd.s32 18, %v1288_v9 }
 0x18a   : > { %v794_v23 = vadd.f32 %v747_v21, %v682_v12  ;;  %v749_v24 = vpop.f32.mrb[17].mxu0  ;;  %v2683_v25 = vpop.f32.mrb[19].mxu1  ;;  %vm1292_vm6 = vcmp.ne.s32.totalorder %v1277_v18, 0  ;;  %vm1295_vm7 = vcmp.lt.s32.totalorder %v1277_v18, 0 }
 0x18b   : > { %v795_v26 = vadd.f32 %v749_v24, %v683_v15  ;;  %v751_v27 = vpop.f32.mrb[18].mxu0  ;;  %v1266_v15 = vsub.s32 %v1255_v33, %v1265_v3  ;;  %v1305_v24 = vsel %vm1299_vm5, %v1302_v20, %v1288_v9  ;;  %v2843_v25 = vmov 1983009808   ;;  %vm3157_vm9 = vmand %vm1295_vm7, %vm1292_vm6 }
 0x18c   : > { %v752_v28 = vpop.f32.mrb[19].mxu0  ;;  %vm1308_vm11 = vcmp.lt.s32.totalorder %v1305_v24, 16  ;;  %vm3388_vm6 = vcmask 900096  }
 0x18d   : > { %vm1291_vm3 = vcmp.ne.s32.totalorder %v1266_v15, 0  ;;  %vm1294_vm4 = vcmp.lt.s32.totalorder %v1266_v15, 0  ;;  %v1300_v21 = vadd.s32 18, %v1266_v15  ;;  %vm3389_vm7 = vmmov %vm3388_vm6 }
 0x18e   : > { %vm3153_vm8 = vmand %vm1294_vm4, %vm1291_vm3  ;;  %vm3385_vm3 = vmmov 0   ;;  %vm3386_vm4 = vcmask 1031168  }
 0x18f   : > { %v1303_v33 = vsel %vm3153_vm8, %v1300_v21, %v1266_v15  ;;  %vm3387_vm5 = vmmov %vm3386_vm4  ;;  %vm3390_vm8 = vcmask 891904  }
 0x190   : > { %vm1306_vm12 = vcmp.lt.s32.totalorder %v1303_v33, 16 }
 0x193   : > { %v900_v30 = vpop.f32.mrb[20].mxu1 }
 0x194   : > { %v908_v31 = vadd.f32 %v900_v30, %v796_v19  ;;  %v2690_v32 = vpop.f32.mrb[21].mxu1  ;;  %v1249_v30 = vpop.permute.xlu0 %1248 }
 0x195   : > { %v859_v34 = vpop.f32.mrb[20].mxu0  ;;  %v903_v35 = vpop.f32.mrb[22].mxu1 }
 0x196   : > { %v906_v36 = vadd.f32 %v859_v34, %v794_v23  ;;  %v861_v37 = vpop.f32.mrb[21].mxu0  ;;  %v2691_v39 = vpop.f32.mrb[23].mxu1  ;;  %v1301_v23 = vadd.s32 18, %v1277_v18 }
 0x197   : > { %v907_v40 = vadd.f32 %v861_v37, %v795_v26  ;;  %v863_v41 = vpop.f32.mrb[22].mxu0  ;;  %v1340_v26 = vunpack.c.l.s4 %v2843_v25  ;;  %v1343_v39 = vshrl.u32 %v1254_v29, 7 }
 0x198   : > { %v864_v42 = vpop.f32.mrb[23].mxu0 }
 0x199   : > { %v1341_v37 = vunpack.c.0.s8 %v1340_v26 }
 0x19b   : > { %v3166_v50 = vsub.s32 %v1341_v37, %v1343_v39 }
 0x19f   : > { %v1012_v49 = vpop.f32.mrb[24].mxu1 }
 0x1a0   : > { %v1020_v52 = vadd.f32 %v1012_v49, %v908_v31  ;;  %v2698_v53 = vpop.f32.mrb[25].mxu1 }
 0x1a1   : > { %v971_v54 = vpop.f32.mrb[24].mxu0  ;;  %v1015_v55 = vpop.f32.mrb[26].mxu1 }
 0x1a2   : > { %v1018_v56 = vadd.f32 %v971_v54, %v906_v36  ;;  %v973_v57 = vpop.f32.mrb[25].mxu0  ;;  %v2699_v58 = vpop.f32.mrb[27].mxu1  ;;  %v1304_v36 = vsel %vm3157_vm9, %v1301_v23, %v1277_v18  ;;  %vm3391_vm9 = vmmov %vm3390_vm8 }
 0x1a3   : > { %v1019_v59 = vadd.f32 %v973_v57, %v907_v40  ;;  %v975_v60 = vpop.f32.mrb[26].mxu0  ;;  %vm1307_vm13 = vcmp.lt.s32.totalorder %v1304_v36, 16  ;;  %v1366_v58 = vld [vmem:[#allocation2] sm:$0x3f] }
 0x1a4   : > { %v976_v61 = vpop.f32.mrb[27].mxu0 }
 0x1ab   : > { %v1124_v4 = vpop.f32.mrb[28].mxu1 }
 0x1ac   : > { %v1132_v7 = vadd.f32 %v1124_v4, %v1020_v52  ;;  %v2706_v8 = vpop.f32.mrb[29].mxu1 }
 0x1ad   : > { %v1083_v10 = vpop.f32.mrb[28].mxu0  ;;  %v1127_v11 = vpop.f32.mrb[30].mxu1 }
 0x1ae   : > { %v1130_v12 = vadd.f32 %v1083_v10, %v1018_v56  ;;  %v1085_v13 = vpop.f32.mrb[29].mxu0  ;;  %v2707_v14 = vpop.f32.mrb[31].mxu1 }
 0x1af   : > { %v1131_v16 = vadd.f32 %v1085_v13, %v1019_v59  ;;  %v1087_v17 = vpop.f32.mrb[30].mxu0 }
 0x1b0   : > { %v1088_v19 = vpop.f32.mrb[31].mxu0 }
 0x1b7   : > { %v1236_v28 = vpop.f32.mrb[32].mxu1 }
 0x1b8   : > { %v1244_v31 = vadd.f32 %v1236_v28, %v1132_v7  ;;  %v2714_v32 = vpop.f32.mrb[33].mxu1 }
 0x1b9   : > { %v1195_v34 = vpop.f32.mrb[32].mxu0  ;;  %v1239_v35 = vpop.f32.mrb[34].mxu1 }
 0x1ba   : > { %v1253_v40 = vadd.f32 %v1249_v30, %v1244_v31  ;;  %v1242_v41 = vadd.f32 %v1195_v34, %v1130_v12  ;;  %v1197_v42 = vpop.f32.mrb[33].mxu0  ;;  %v2715_v43 = vpop.f32.mrb[35].mxu1 }
 0x1bb   : > { %v1243_v44 = vadd.f32 %v1197_v42, %v1131_v16  ;;  %v1199_v45 = vpop.f32.mrb[34].mxu0  ;;  %v2845_v42 = vmov 65535  }
 0x1bc   : > { %v1317_v46 = vsel %vm1308_vm11, %v1253_v40, 0.0  ;;  %v1251_v47 = vadd.f32 %v1249_v30, %v1242_v41  ;;  %v1200_v48 = vpop.f32.mrb[35].mxu0  ;;  %v2457_v41 = vld [vmem:[%s3363_s4] sm:$0x7]  ;;  %vm3392_vm11 = vcmask 883712  }
 0x1bd   : > { %v1252_v49 = vadd.f32 %v1249_v30, %v1243_v44  ;;  %v1334_v51 = vpack.c.bf16 %v1317_v46, %v1317_v46 }
 0x1be   : > { %v1315_v52 = vsel %vm1306_vm12, %v1251_v47, 0.0  ;;  %vm3393_vm12 = vmmov %vm3392_vm11 }
 0x1bf   : > { %v1316_v53 = vsel %vm1307_vm13, %v1252_v49, 0.0  ;;  %v1352_v55 = vrot.slane %v1334_v51, %v3166_v50  ;;  %vm3394_vm13 = vcmask 752640  }
 0x1c0   : > { %v2570_v54 = vpack.c.bf16 %v1316_v53, %v1315_v52 }
 0x1c2   : > { %v1345_v29 = vrot.slane %v2570_v54, %v3166_v50 }
 0x1c4   : > { %v1353_v56 = vcombine.low %v1345_v29, %v1352_v55 }
 0x1c6   : > { %1354 = vrot.lane.b32.xlu1 %v1353_v56, %s2844_s12 }
 0x238   : > { %v1355_v57 = vpop.permute.xlu1 %1354 }
 0x239   : > { %v1356_v59 = vrot.slane %v1355_v57, 6 }
 0x23b   : > { %v1358_v60 = vsel %vm1357_vm14, %v1356_v59, %v1355_v57  ;;  %vm3395_vm14 = vmmov %vm3394_vm13 }
 0x23c   : > { %v1367_v61 = vsel %vm3136_vm10, %v1358_v60, %v1366_v58  ;;  %vm1402_vm10 = vcmask 1040384  }
 0x23d   : > { %1368 = vst [vmem:[#allocation2] sm:$0x3f] %v1367_v61  ;;  %v1404_v43 = vsel %vm1402_vm10, 4294967295, %v2845_v42  ;;  %v1369_v61 = vld [vmem:[%s3362_s3] sm:$0x3]  ;;  %vm3396_vm10 = vcmask 744448  }
 0x23e   : > { %v3227_v44 = vsel %vm3382_vm15, %v1404_v43, 0  ;;  %vm3397_vm15 = vmmov %vm3396_vm10 }
 0x244   : > { %v1370_v62 = vld [vmem:[#allocation2] sm:$0x3f] }
 0x245   : > { %v1591_v63 = vld [vmem:[#allocation2] sm:$0x3f]  ;;  %v3173_v1 = vrot.slane %v1370_v62, %v3166_v50  ;;  %v1374_v2 = vcombine.high %v1370_v62, %v1370_v62 }
 0x246   : > { %v1600_v6 = vrot.slane %v1591_v63, %v3166_v50  ;;  %v1593_v7 = vcombine.high %v1591_v63, %v1591_v63  ;;  %v1715_v8 = vld [vmem:[#allocation2] sm:$0x3f] }
 0x247   : > { %v3177_v3 = vcombine.high %v3173_v1, %v3173_v1  ;;  %v3180_v4 = vrot.slane %v1374_v2, %v3166_v50  ;;  %v1724_v10 = vrot.slane %v1715_v8, %v3166_v50  ;;  %v1717_v11 = vcombine.high %v1715_v8, %v1715_v8  ;;  %v1839_v12 = vld [vmem:[#allocation2] sm:$0x3f] }
 0x248   : > { %v1608_v38 = vcombine.high %v1600_v6, %v1600_v6  ;;  %v1607_v9 = vrot.slane %v1593_v7, %v3166_v50  ;;  %v1848_v15 = vrot.slane %v1839_v12, %v3166_v50  ;;  %v1841_v17 = vcombine.high %v1839_v12, %v1839_v12  ;;  %v1963_v18 = vld [vmem:[#allocation2] sm:$0x3f] }
 0x249   : > { %1392 = vrot.lane.b32.xlu1 %v3177_v3, %s2834_s24  ;;  %1394 = vrot.lane.b32.xlu0 %v3180_v4, %s2834_s24  ;;  %v1732_v13 = vcombine.high %v1724_v10, %v1724_v10  ;;  %v1731_v14 = vrot.slane %v1717_v11, %v3166_v50  ;;  %v1972_v20 = vrot.slane %v1963_v18, %v3166_v50  ;;  %v2087_v22 = vld [vmem:[#allocation2] sm:$0x3f] }
 0x24a   : > { %v1856_v16 = vcombine.high %v1848_v15, %v1848_v15  ;;  %v1855_v19 = vrot.slane %v1841_v17, %v3166_v50  ;;  %v1965_v21 = vcombine.high %v1963_v18, %v1963_v18  ;;  %v2096_v25 = vrot.slane %v2087_v22, %v3166_v50  ;;  %v2211_v28 = vld [vmem:[#allocation2] sm:$0x3f]  ;;  %v2579_v18 = vld [vmem:[%s3362_s3 + $0x6] sm:$0x3] }
 0x24b   : > { %v1980_v23 = vcombine.high %v1972_v20, %v1972_v20  ;;  %v2089_v27 = vcombine.high %v2087_v22, %v2087_v22  ;;  %v2220_v31 = vrot.slane %v2211_v28, %v3166_v50  ;;  %v2213_v32 = vcombine.high %v2211_v28, %v2211_v28  ;;  %v2335_v33 = vld [vmem:[#allocation2] sm:$0x3f] }
 0x24c   : > { %v1979_v24 = vrot.slane %v1965_v21, %v3166_v50  ;;  %v2104_v26 = vcombine.high %v2096_v25, %v2096_v25  ;;  %v2344_v36 = vrot.slane %v2335_v33, %v3166_v50  ;;  %v2337_v39 = vcombine.high %v2335_v33, %v2335_v33  ;;  %v2576_v8 = vld [vmem:[%s3362_s3 + $0x4] sm:$0x3] }
 0x24d   : > { %1390 = vrot.lane.b32.xlu1 %v3173_v1, %s2834_s24  ;;  %1611 = vrot.lane.b32.xlu0 %v1608_v38, %s2836_s25  ;;  %v2103_v30 = vrot.slane %v2089_v27, %v3166_v50  ;;  %v2228_v34 = vcombine.high %v2220_v31, %v2220_v31  ;;  %v2227_v35 = vrot.slane %v2213_v32, %v3166_v50  ;;  %v2582_v27 = vld [vmem:[%s3362_s3 + $0x8] sm:$0x3]  ;;  %s224_s24 = scalar_lea.vmem %s3364_s5, %s2771_s10 }
 0x24e   : > { %v2352_v37 = vcombine.high %v2344_v36, %v2344_v36  ;;  %v2351_v40 = vrot.slane %v2337_v39, %v3166_v50  ;;  %v2571_v50 = vld [vmem:[%s3362_s3 + $0x2] sm:$0x3]  ;;  %v1506_v53 = vand.u32 %v3227_v44, %v3180_v4  ;;  %v1503_v55 = vand.u32 %v3227_v44, %v3177_v3 }
 0x24f   : > { %v1500_v60 = vand.u32 %v3227_v44, %v3173_v1 }
 0x251   : > { %1613 = vrot.lane.b32.xlu1 %v1607_v9, %s2836_s25  ;;  %1609 = vrot.lane.b32.xlu0 %v1600_v6, %s2836_s25 }
 0x255   : > { %1735 = vrot.lane.b32.xlu1 %v1732_v13, %s2837_s26  ;;  %1737 = vrot.lane.b32.xlu0 %v1731_v14, %s2837_s26 }
 0x259   : > { %1733 = vrot.lane.b32.xlu1 %v1724_v10, %s2837_s26  ;;  %1859 = vrot.lane.b32.xlu0 %v1856_v16, %s2838_s27 }
 0x25d   : > { %1861 = vrot.lane.b32.xlu1 %v1855_v19, %s2838_s27  ;;  %1857 = vrot.lane.b32.xlu0 %v1848_v15, %s2838_s27 }
 0x261   : > { %1983 = vrot.lane.b32.xlu1 %v1980_v23, %s2839_s28  ;;  %1985 = vrot.lane.b32.xlu0 %v1979_v24, %s2839_s28 }
 0x265   : > { %1981 = vrot.lane.b32.xlu1 %v1972_v20, %s2839_s28  ;;  %2107 = vrot.lane.b32.xlu0 %v2104_v26, %s2840_s29 }
 0x269   : > { %2109 = vrot.lane.b32.xlu1 %v2103_v30, %s2840_s29  ;;  %2105 = vrot.lane.b32.xlu0 %v2096_v25, %s2840_s29 }
 0x26d   : > { %2231 = vrot.lane.b32.xlu1 %v2228_v34, %s2841_s30  ;;  %2233 = vrot.lane.b32.xlu0 %v2227_v35, %s2841_s30 }
 0x271   : > { %2229 = vrot.lane.b32.xlu1 %v2220_v31, %s2841_s30  ;;  %2355 = vrot.lane.b32.xlu0 %v2352_v37, %s2842_s6 }
 0x275   : > { %2357 = vrot.lane.b32.xlu1 %v2351_v40, %s2842_s6  ;;  %2353 = vrot.lane.b32.xlu0 %v2344_v36, %s2842_s6  ;;  %v2585_v36 = vld [vmem:[%s3362_s3 + $0xa] sm:$0x3] }
 0x279   : > { %2460 = vperm.xlu1 %2801, %v2457_v41  }
 0x2bb   : > { %v1393_v45 = vpop.permute.xlu1 %1392  ;;  %v1395_v46 = vpop.permute.xlu0 %1394 }
 0x2bc   : > { %v1397_v47 = vsel %vm3383_vm2, %v1393_v45, %v1395_v46  ;;  %v1413_v48 = vand.u32 %v3227_v44, %v1395_v46  ;;  %v2588_v46 = vld [vmem:[%s3362_s3 + $0xc] sm:$0x3]  ;;  %vm3398_vm2 = vcmask 736256  }
 0x2bd   : > { %v1410_v49 = vand.u32 %v3227_v44, %v1397_v47 }
 0x2be   : > { %2717 = vmatpush3.bf16.msra.mxu1 %v1413_v48 }
 0x2bf   : > { %v1391_v51 = vpop.permute.xlu1 %1390  ;;  %1415 = vmatprep.subr.bf16.mxu0 %v1410_v49  ;;  %v1612_v52 = vpop.permute.xlu0 %1611  ;;  %2722 = vmatprep.subr.bf16.mxu1 %v2832_v0 }
 0x2c0   : > { %v1396_v54 = vsel %vm3384_vm1, %v1391_v51, %v1393_v45  ;;  %vm3399_vm1 = vmmov %vm3398_vm2 }
 0x2c1   : > { %v1407_v29 = vand.u32 %v3227_v44, %v1396_v54  ;;  %2719 = vmatmul.mubr.msk.bf16.vlgmr.msra.gmra.mrb[36].mxu1 %vm1398_vm0, %v2571_v50  ;;  %v2591_v54 = vld [vmem:[%s3362_s3 + $0xe] sm:$0x3] }
 0x2c2   : > { %2723 = vmatpush3.bf16.msra.mxu1 %v1506_v53  ;;  %2724 = vmatprep.mubr.msk.bf16.mxu1 %vm3385_vm3, %v2832_v0 }
 0x2c3   : > { %v1614_v56 = vpop.permute.xlu1 %1613  ;;  %1416 = vmatpush1.bf16.msra.mxu0 %v1407_v29  ;;  %v1610_v57 = vpop.permute.xlu0 %1609  ;;  %2728 = vmatprep.subr.bf16.mxu1 %v2832_v0 }
 0x2c4   : > { %v1616_v58 = vsel %vm3386_vm4, %v1612_v52, %v1614_v56  ;;  %1508 = vmatprep.subr.bf16.mxu0 %v1503_v55  ;;  %v1627_v2 = vand.u32 %v1614_v56, %v3227_v44  ;;  %v1615_v3 = vsel %vm3387_vm5, %v1610_v57, %v1612_v52 }
 0x2c5   : > { %v1624_v59 = vand.u32 %v1616_v58, %v3227_v44  ;;  %v1621_v38 = vand.u32 %v1615_v3, %v3227_v44  ;;  %v2594_v58 = vld [vmem:[%s3362_s3 + $0x10] sm:$0x3] }
 0x2c6   : > { %2572 = vmatmul.mubr.msk.bf16.vlgmr.msra.gmra.mrb[36].mxu0 %vm1398_vm0, %v2571_v50 }
 0x2c7   : > { %v1736_v62 = vpop.permute.xlu1 %1735  ;;  %1509 = vmatpush1.bf16.msra.mxu0 %v1500_v60  ;;  %v1738_v63 = vpop.permute.xlu0 %1737  ;;  %1540 = vmatprep.mubr.bf16.mxu0 %v2835_v5 }
 0x2c8   : > { %1629 = vmatprep.subr.bf16.mxu0 %v1624_v59  ;;  %v1740_v1 = vsel %vm3388_vm6, %v1736_v62, %v1738_v63  ;;  %v1751_v10 = vand.u32 %v1738_v63, %v3227_v44 }
 0x2c9   : > { %2725 = vmatmul.mubr.msk.bf16.vlgmr.msra.gmra.mrb[40].mxu1 %vm1398_vm0, %v1369_v61  ;;  %v1748_v7 = vand.u32 %v1740_v1, %v3227_v44 }
 0x2ca   : > { %2729 = vmatpush3.bf16.msra.mxu1 %v1627_v2  ;;  %2730 = vmatprep.mubr.msk.bf16.mxu1 %vm3385_vm3, %v2832_v0 }
 0x2cb   : > { %v1734_v4 = vpop.permute.xlu1 %1733  ;;  %v1860_v6 = vpop.permute.xlu0 %1859  ;;  %2734 = vmatprep.subr.bf16.mxu1 %v2832_v0 }
 0x2cc   : > { %v1739_v12 = vsel %vm3389_vm7, %v1734_v4, %v1736_v62 }
 0x2cd   : > { %v1745_v15 = vand.u32 %v1739_v12, %v3227_v44 }
 0x2ce   : > { %2574 = vmatmul.mubr.msk.bf16.vlgmr.msra.gmra.mrb[40].mxu0 %vm1398_vm0, %v1369_v61 }
 0x2cf   : > { %1630 = vmatpush1.bf16.msra.mxu0 %v1621_v38  ;;  %v1862_v9 = vpop.permute.xlu1 %1861  ;;  %1661 = vmatprep.mubr.bf16.mxu0 %v2835_v5  ;;  %v1858_v11 = vpop.permute.xlu0 %1857 }
 0x2d0   : > { %1753 = vmatprep.subr.bf16.mxu0 %v1748_v7  ;;  %v1864_v13 = vsel %vm3390_vm8, %v1860_v6, %v1862_v9  ;;  %v1875_v19 = vand.u32 %v1862_v9, %v3227_v44  ;;  %v1863_v21 = vsel %vm3391_vm9, %v1858_v11, %v1860_v6 }
 0x2d1   : > { %2731 = vmatmul.mubr.msk.bf16.vlgmr.msra.gmra.mrb[44].mxu1 %vm1398_vm0, %v2576_v8  ;;  %v1872_v16 = vand.u32 %v1864_v13, %v3227_v44  ;;  %v1869_v24 = vand.u32 %v1863_v21, %v3227_v44 }
 0x2d2   : > { %2735 = vmatpush3.bf16.msra.mxu1 %v1751_v10  ;;  %2736 = vmatprep.mubr.msk.bf16.mxu1 %vm3385_vm3, %v2832_v0 }
 0x2d3   : > { %v1984_v14 = vpop.permute.xlu1 %1983  ;;  %2740 = vmatprep.subr.bf16.mxu1 %v2832_v0  ;;  %v1986_v17 = vpop.permute.xlu0 %1985 }
 0x2d4   : > { %v1988_v22 = vsel %vm3392_vm11, %v1984_v14, %v1986_v17  ;;  %v1999_v28 = vand.u32 %v1986_v17, %v3227_v44 }
 0x2d5   : > { %v1996_v25 = vand.u32 %v1988_v22, %v3227_v44 }
 0x2d6   : > { %2577 = vmatmul.mubr.msk.bf16.vlgmr.msra.gmra.mrb[44].mxu0 %vm1398_vm0, %v2576_v8 }
 0x2d7   : > { %1754 = vmatpush1.bf16.msra.mxu0 %v1745_v15  ;;  %1785 = vmatprep.mubr.bf16.mxu0 %v2835_v5  ;;  %v1982_v20 = vpop.permute.xlu1 %1981  ;;  %v2108_v23 = vpop.permute.xlu0 %2107 }
 0x2d8   : > { %1877 = vmatprep.subr.bf16.mxu0 %v1872_v16  ;;  %v1987_v30 = vsel %vm3393_vm12, %v1982_v20, %v1984_v14 }
 0x2d9   : > { %2737 = vmatmul.mubr.msk.bf16.vlgmr.msra.gmra.mrb[48].mxu1 %vm1398_vm0, %v2579_v18  ;;  %v1993_v34 = vand.u32 %v1987_v30, %v3227_v44 }
 0x2da   : > { %2741 = vmatpush3.bf16.msra.mxu1 %v1875_v19  ;;  %2742 = vmatprep.mubr.msk.bf16.mxu1 %vm3385_vm3, %v2832_v0 }
 0x2db   : > { %2746 = vmatprep.subr.bf16.mxu1 %v2832_v0  ;;  %v2110_v26 = vpop.permute.xlu1 %2109  ;;  %v2106_v31 = vpop.permute.xlu0 %2105 }
 0x2dc   : > { %v2112_v32 = vsel %vm3394_vm13, %v2108_v23, %v2110_v26  ;;  %v2123_v37 = vand.u32 %v2110_v26, %v3227_v44  ;;  %v2111_v40 = vsel %vm3395_vm14, %v2106_v31, %v2108_v23 }
 0x2dd   : > { %v2120_v35 = vand.u32 %v2112_v32, %v3227_v44  ;;  %v2117_v43 = vand.u32 %v2111_v40, %v3227_v44 }
 0x2de   : > { %2580 = vmatmul.mubr.msk.bf16.vlgmr.msra.gmra.mrb[48].mxu0 %vm1398_vm0, %v2579_v18 }
 0x2df   : > { %1878 = vmatpush1.bf16.msra.mxu0 %v1869_v24  ;;  %1909 = vmatprep.mubr.bf16.mxu0 %v2835_v5  ;;  %v2232_v33 = vpop.permute.xlu1 %2231  ;;  %v2234_v39 = vpop.permute.xlu0 %2233 }
 0x2e0   : > { %2001 = vmatprep.subr.bf16.mxu0 %v1996_v25  ;;  %v2236_v42 = vsel %vm3396_vm10, %v2232_v33, %v2234_v39  ;;  %v2247_v47 = vand.u32 %v2234_v39, %v3227_v44 }
 0x2e1   : > { %2743 = vmatmul.mubr.msk.bf16.vlgmr.msra.gmra.mrb[52].mxu1 %vm1398_vm0, %v2582_v27  ;;  %v2244_v45 = vand.u32 %v2236_v42, %v3227_v44 }
 0x2e2   : > { %2747 = vmatpush3.bf16.msra.mxu1 %v1999_v28  ;;  %2748 = vmatprep.mubr.msk.bf16.mxu1 %vm3385_vm3, %v2832_v0 }
 0x2e3   : > { %2752 = vmatprep.subr.bf16.mxu1 %v2832_v0  ;;  %v2230_v41 = vpop.permute.xlu1 %2229  ;;  %v2356_v49 = vpop.permute.xlu0 %2355 }
 0x2e4   : > { %v2235_v50 = vsel %vm3397_vm15, %v2230_v41, %v2232_v33 }
 0x2e5   : > { %v2241_v52 = vand.u32 %v2235_v50, %v3227_v44 }
 0x2e6   : > { %2583 = vmatmul.mubr.msk.bf16.vlgmr.msra.gmra.mrb[52].mxu0 %vm1398_vm0, %v2582_v27 }
 0x2e7   : > { %2002 = vmatpush1.bf16.msra.mxu0 %v1993_v34  ;;  %2033 = vmatprep.mubr.bf16.mxu0 %v2835_v5  ;;  %v2358_v48 = vpop.permute.xlu1 %2357  ;;  %v2354_v29 = vpop.permute.xlu0 %2353 }
 0x2e8   : > { %2125 = vmatprep.subr.bf16.mxu0 %v2120_v35  ;;  %v2360_v51 = vsel %vm3398_vm2, %v2356_v49, %v2358_v48  ;;  %v2371_v55 = vand.u32 %v2358_v48, %v3227_v44  ;;  %v2359_v56 = vsel %vm3399_vm1, %v2354_v29, %v2356_v49 }
 0x2e9   : > { %2749 = vmatmul.mubr.msk.bf16.vlgmr.msra.gmra.mrb[56].mxu1 %vm1398_vm0, %v2585_v36  ;;  %v2368_v53 = vand.u32 %v2360_v51, %v3227_v44  ;;  %v2365_v57 = vand.u32 %v2359_v56, %v3227_v44 }
 0x2ea   : > { %2753 = vmatpush3.bf16.msra.mxu1 %v2123_v37  ;;  %2754 = vmatprep.mubr.msk.bf16.mxu1 %vm3385_vm3, %v2832_v0 }
 0x2eb   : > { %2758 = vmatprep.subr.bf16.mxu1 %v2832_v0 }
 0x2ee   : > { %2586 = vmatmul.mubr.msk.bf16.vlgmr.msra.gmra.mrb[56].mxu0 %vm1398_vm0, %v2585_v36 }
 0x2ef   : > { %2126 = vmatpush1.bf16.msra.mxu0 %v2117_v43  ;;  %2157 = vmatprep.mubr.bf16.mxu0 %v2835_v5 }
 0x2f0   : > { %2249 = vmatprep.subr.bf16.mxu0 %v2244_v45 }
 0x2f1   : > { %2755 = vmatmul.mubr.msk.bf16.vlgmr.msra.gmra.mrb[60].mxu1 %vm1398_vm0, %v2588_v46 }
 0x2f2   : > { %2759 = vmatpush3.bf16.msra.mxu1 %v2247_v47  ;;  %2760 = vmatprep.mubr.msk.bf16.mxu1 %vm3385_vm3, %v2832_v0 }
 0x2f3   : > { %2764 = vmatprep.subr.bf16.mxu1 %v2832_v0 }
 0x2f6   : > { %2589 = vmatmul.mubr.msk.bf16.vlgmr.msra.gmra.mrb[60].mxu0 %vm1398_vm0, %v2588_v46 }
 0x2f7   : > { %2250 = vmatpush1.bf16.msra.mxu0 %v2241_v52  ;;  %2281 = vmatprep.mubr.bf16.mxu0 %v2835_v5 }
 0x2f8   : > { %2373 = vmatprep.subr.bf16.mxu0 %v2368_v53 }
 0x2f9   : > { %2761 = vmatmul.mubr.msk.bf16.vlgmr.msra.gmra.mrb[64].mxu1 %vm1398_vm0, %v2591_v54 }
 0x2fa   : > { %2765 = vmatpush3.bf16.msra.mxu1 %v2371_v55  ;;  %2766 = vmatprep.mubr.msk.bf16.mxu1 %vm3385_vm3, %v2832_v0 }
 0x2fe   : > { %2592 = vmatmul.mubr.msk.bf16.vlgmr.msra.gmra.mrb[64].mxu0 %vm1398_vm0, %v2591_v54 }
 0x2ff   : > { %2374 = vmatpush1.bf16.msra.mxu0 %v2365_v57  ;;  %2405 = vmatprep.mubr.bf16.mxu0 %v2835_v5 }
 0x301   : > { %2767 = vmatmul.mubr.msk.bf16.vlgmr.msra.gmra.mrb[68].mxu1 %vm1398_vm0, %v2594_v58 }
 0x306   : > { %2595 = vmatmul.mubr.msk.bf16.vlgmr.msra.gmra.mrb[68].mxu0 %vm1398_vm0, %v2594_v58  ;;  %vm2474_vm0 = vcmask 256000  }
 0x394   : > { %v1490_v59 = vpop.f32.mrb[36].mxu1 }
 0x395   : > { %v2720_v60 = vpop.f32.mrb[37].mxu1 }
 0x396   : > { %v1493_v61 = vpop.f32.mrb[38].mxu1 }
 0x397   : > { %v2721_v62 = vpop.f32.mrb[39].mxu1 }
 0x399   : > { %v1449_v0 = vpop.f32.mrb[36].mxu0 }
 0x39a   : > { %v1451_v63 = vpop.f32.mrb[37].mxu0 }
 0x39b   : > { %v1453_v44 = vpop.f32.mrb[38].mxu0 }
 0x39c   : > { %v1454_v2 = vpop.f32.mrb[39].mxu0  ;;  %v1583_v3 = vpop.f32.mrb[40].mxu1 }
 0x39d   : > { %v1584_v1 = vadd.f32 %v1583_v3, %v1490_v59  ;;  %v2726_v4 = vpop.f32.mrb[41].mxu1 }
 0x39e   : > { %v1586_v6 = vpop.f32.mrb[42].mxu1 }
 0x39f   : > { %v2727_v38 = vpop.f32.mrb[43].mxu1 }
 0x3a1   : > { %v1542_v7 = vpop.f32.mrb[40].mxu0 }
 0x3a2   : > { %v1543_v8 = vadd.f32 %v1542_v7, %v1449_v0  ;;  %v1544_v5 = vpop.f32.mrb[41].mxu0 }
 0x3a3   : > { %v1545_v9 = vadd.f32 %v1544_v5, %v1451_v63  ;;  %v1546_v10 = vpop.f32.mrb[42].mxu0 }
 0x3a4   : > { %v1704_v11 = vpop.f32.mrb[44].mxu1  ;;  %v1547_v12 = vpop.f32.mrb[43].mxu0 }
 0x3a5   : > { %v1712_v13 = vadd.f32 %v1704_v11, %v1584_v1  ;;  %v2732_v14 = vpop.f32.mrb[45].mxu1 }
 0x3a6   : > { %v1707_v15 = vpop.f32.mrb[46].mxu1 }
 0x3a7   : > { %v2733_v16 = vpop.f32.mrb[47].mxu1 }
 0x3a9   : > { %v1663_v17 = vpop.f32.mrb[44].mxu0 }
 0x3aa   : > { %v1710_v18 = vadd.f32 %v1663_v17, %v1543_v8  ;;  %v1665_v19 = vpop.f32.mrb[45].mxu0 }
 0x3ab   : > { %v1711_v20 = vadd.f32 %v1665_v19, %v1545_v9  ;;  %v1667_v21 = vpop.f32.mrb[46].mxu0 }
 0x3ac   : > { %v1828_v22 = vpop.f32.mrb[48].mxu1  ;;  %v1668_v23 = vpop.f32.mrb[47].mxu0 }
 0x3ad   : > { %v1836_v24 = vadd.f32 %v1828_v22, %v1712_v13  ;;  %v2738_v25 = vpop.f32.mrb[49].mxu1  ;;  %v2461_v13 = vpop.permute.xlu1 %2460 }
 0x3ae   : > { %v1831_v26 = vpop.f32.mrb[50].mxu1 }
 0x3af   : > { %v2739_v27 = vpop.f32.mrb[51].mxu1 }
 0x3b1   : > { %v1787_v28 = vpop.f32.mrb[48].mxu0 }
 0x3b2   : > { %v1834_v30 = vadd.f32 %v1787_v28, %v1710_v18  ;;  %v1789_v31 = vpop.f32.mrb[49].mxu0 }
 0x3b3   : > { %v1835_v32 = vadd.f32 %v1789_v31, %v1711_v20  ;;  %v1791_v33 = vpop.f32.mrb[50].mxu0 }
 0x3b4   : > { %v1952_v34 = vpop.f32.mrb[52].mxu1  ;;  %v1792_v35 = vpop.f32.mrb[51].mxu0 }
 0x3b5   : > { %v1960_v36 = vadd.f32 %v1952_v34, %v1836_v24  ;;  %v2744_v37 = vpop.f32.mrb[53].mxu1 }
 0x3b6   : > { %v1955_v39 = vpop.f32.mrb[54].mxu1 }
 0x3b7   : > { %v2745_v40 = vpop.f32.mrb[55].mxu1 }
 0x3b9   : > { %v1911_v41 = vpop.f32.mrb[52].mxu0 }
 0x3ba   : > { %v1958_v42 = vadd.f32 %v1911_v41, %v1834_v30  ;;  %v1913_v43 = vpop.f32.mrb[53].mxu0 }
 0x3bb   : > { %v1959_v45 = vadd.f32 %v1913_v43, %v1835_v32  ;;  %v1915_v46 = vpop.f32.mrb[54].mxu0 }
 0x3bc   : > { %v2076_v47 = vpop.f32.mrb[56].mxu1  ;;  %v1916_v48 = vpop.f32.mrb[55].mxu0 }
 0x3bd   : > { %v2084_v49 = vadd.f32 %v2076_v47, %v1960_v36  ;;  %v2750_v50 = vpop.f32.mrb[57].mxu1 }
 0x3be   : > { %v2079_v51 = vpop.f32.mrb[58].mxu1 }
 0x3bf   : > { %v2751_v52 = vpop.f32.mrb[59].mxu1 }
 0x3c1   : > { %v2035_v53 = vpop.f32.mrb[56].mxu0 }
 0x3c2   : > { %v2082_v54 = vadd.f32 %v2035_v53, %v1958_v42  ;;  %v2037_v29 = vpop.f32.mrb[57].mxu0 }
 0x3c3   : > { %v2083_v55 = vadd.f32 %v2037_v29, %v1959_v45  ;;  %v2039_v56 = vpop.f32.mrb[58].mxu0 }
 0x3c4   : > { %v2200_v57 = vpop.f32.mrb[60].mxu1  ;;  %v2040_v58 = vpop.f32.mrb[59].mxu0 }
 0x3c5   : > { %v2208_v59 = vadd.f32 %v2200_v57, %v2084_v49  ;;  %v2756_v60 = vpop.f32.mrb[61].mxu1 }
 0x3c6   : > { %v2203_v61 = vpop.f32.mrb[62].mxu1 }
 0x3c7   : > { %v2757_v62 = vpop.f32.mrb[63].mxu1 }
 0x3c9   : > { %v2159_v0 = vpop.f32.mrb[60].mxu0 }
 0x3ca   : > { %v2206_v63 = vadd.f32 %v2159_v0, %v2082_v54  ;;  %v2161_v44 = vpop.f32.mrb[61].mxu0 }
 0x3cb   : > { %v2207_v2 = vadd.f32 %v2161_v44, %v2083_v55  ;;  %v2163_v3 = vpop.f32.mrb[62].mxu0 }
 0x3cc   : > { %v2324_v1 = vpop.f32.mrb[64].mxu1  ;;  %v2164_v4 = vpop.f32.mrb[63].mxu0 }
 0x3cd   : > { %v2332_v6 = vadd.f32 %v2324_v1, %v2208_v59  ;;  %v2762_v38 = vpop.f32.mrb[65].mxu1 }
 0x3ce   : > { %v2327_v7 = vpop.f32.mrb[66].mxu1 }
 0x3cf   : > { %v2763_v8 = vpop.f32.mrb[67].mxu1 }
 0x3d1   : > { %v2283_v5 = vpop.f32.mrb[64].mxu0 }
 0x3d2   : > { %v2330_v9 = vadd.f32 %v2283_v5, %v2206_v63  ;;  %v2285_v10 = vpop.f32.mrb[65].mxu0 }
 0x3d3   : > { %v2331_v11 = vadd.f32 %v2285_v10, %v2207_v2  ;;  %v2287_v12 = vpop.f32.mrb[66].mxu0 }
 0x3d4   : > { %v2448_v14 = vpop.f32.mrb[68].mxu1  ;;  %v2288_v15 = vpop.f32.mrb[67].mxu0 }
 0x3d5   : > { %v2456_v16 = vadd.f32 %v2448_v14, %v2332_v6  ;;  %v2768_v17 = vpop.f32.mrb[69].mxu1 }
 0x3d6   : > { %v2451_v18 = vpop.f32.mrb[70].mxu1 }
 0x3d7   : > { %v2465_v19 = vadd.f32 %v2461_v13, %v2456_v16  ;;  %v2769_v20 = vpop.f32.mrb[71].mxu1 }
 0x3d9   : > { %2818 = vtanh.f32 %v2465_v19  ;;  %v2407_v21 = vpop.f32.mrb[68].mxu0 }
 0x3da   : > { %v2454_v22 = vadd.f32 %v2407_v21, %v2330_v9  ;;  %v2409_v23 = vpop.f32.mrb[69].mxu0 }
 0x3db   : > { %v2455_v24 = vadd.f32 %v2409_v23, %v2331_v11  ;;  %v2411_v25 = vpop.f32.mrb[70].mxu0 }
 0x3dc   : > { %v2463_v26 = vadd.f32 %v2461_v13, %v2454_v22  ;;  %v2412_v27 = vpop.f32.mrb[71].mxu0 }
 0x3dd   : > { %v2464_v28 = vadd.f32 %v2461_v13, %v2455_v24 }
 0x3de   : > { %2820 = vtanh.f32 %v2463_v26 }
 0x3df   : > { %2822 = vtanh.f32 %v2464_v28 }
 0x3e3   : > { %v2819_v30 = vpop.eup %2818 }
 0x3e4   : > { %2475 = vst.msk [vmem:[%s224_s24 + $0x8] sm:$0x7] %vm2474_vm0, %v2819_v30 }
 0x3e8   : > { %v2821_v31 = vpop.eup %2820 }
 0x3e9   : > { %v2823_v32 = vpop.eup %2822 }
 0x3ea   : > { %v2471_v33 = vcombine.low %v2821_v31, %v2823_v32 }
 0x3ec   : > { %2473 = vst [vmem:[%s224_s24] sm:$0x77] %v2471_v33 }
 0x3ed PF: > { %s15_s18 = sadd.s32 1, %s2830_s18  }
 0x3ee   : > { %p12_p4 = scmp.ge.s32.totalorder %s15_s18, 4  }
 0x3f0   :  { %14 = sbr.rel (!%p12_p4) target bundleno = 1 (0x1), region = 86 }

</bundles_post_ra>
